<compile_context>
chip_gen: v7x
topology: tpu7x:2x2x1
jax: 0.10.0
libtpu: 0.0.40
codegen_flags: <defaults>
</compile_context>

<pallas_src>
import functools

import jax
import jax.numpy as jnp
from jax import lax
from jax.experimental import pallas as pl
from jax.experimental.pallas import tpu as pltpu


VMEM_LIMIT = 48 * 1024 * 1024   # safe on v5e/v6e (128 MiB phys) and v7x (64 MiB phys)


# --------------------------------------------------------------------------
# tiling helpers
# --------------------------------------------------------------------------

def _pick_tile(dim, target, mults):
    """Largest tile <= target dividing `dim`, granularity from `mults`; else full."""
    if dim <= target:
        return dim
    for m in mults:
        if m > target:
            continue
        t = (target // m) * m
        while t >= m:
            if dim % t == 0:
                return t
            t -= m
    return dim


def _pick_heads_per_block(num_heads, dh):
    """Smallest head count (dividing num_heads) with hb*dh >= 128 lanes."""
    hb = min(num_heads, max(1, -(-128 // dh)))
    while num_heads % hb:
        hb -= 1
    return hb


def _gelu(x):
    # TODO(synk): HF Roberta uses exact erf GELU; tanh approximation used here.
    c = 0.7978845608028654  # sqrt(2/pi)
    return 0.5 * x * (1.0 + jnp.tanh(c * (x + 0.044715 * x * x * x)))


# --------------------------------------------------------------------------
# Pallas kernels
# --------------------------------------------------------------------------

def _matmul_bias_kernel(x_ref, w_ref, b_ref, o_ref, *, activation):
    acc = jnp.dot(x_ref[...], w_ref[...], preferred_element_type=jnp.float32)
    acc = acc + b_ref[...]
    if activation == "gelu":
        acc = _gelu(acc)
    o_ref[...] = acc.astype(o_ref.dtype)


def matmul_bias(x, w, b, activation=None, out_dtype=jnp.bfloat16):
    """x:[M,K] @ w:[K,N] + b on the MXU (bf16 in, f32 accumulate), tiled over (M,N)."""
    M, K = x.shape
    K2, N = w.shape
    assert K == K2
    x = x.astype(jnp.bfloat16)
    w = w.astype(jnp.bfloat16)
    b2 = b.astype(jnp.float32).reshape(1, N)

    tm = _pick_tile(M, 512, (16, 8))
    tn = _pick_tile(N, 512, (128,))
    gm, gn = M // tm, N // tn

    # Grid ordering: keep whichever operand would be re-streamed more often
    # resident across the fast axis (weights are re-read gm times with N fast,
    # activations gn times with M fast).
    if gm * K * N <= gn * M * K:
        grid = (gm, gn)                                  # N fast; x tile resident
        x_map = lambda i, j: (i, 0)
        w_map = lambda i, j: (0, j)
        b_map = lambda i, j: (0, j)
        o_map = lambda i, j: (i, j)
    else:
        grid = (gn, gm)                                  # M fast; w tile resident
        x_map = lambda j, i: (i, 0)
        w_map = lambda j, i: (0, j)
        b_map = lambda j, i: (0, j)
        o_map = lambda j, i: (i, j)

    cost = pl.CostEstimate(
        flops=2 * M * K * N,
        transcendentals=M * N if activation == "gelu" else 0,
        bytes_accessed=2 * M * K + 2 * K * N + 2 * M * N + 4 * N)

    kernel = functools.partial(_matmul_bias_kernel, activation=activation)
    return pl.pallas_call(
        kernel,
        out_shape=jax.ShapeDtypeStruct((M, N), out_dtype),
        grid=grid,
        in_specs=[pl.BlockSpec((tm, K), x_map),
                  pl.BlockSpec((K, tn), w_map),
                  pl.BlockSpec((1, tn), b_map)],
        out_specs=pl.BlockSpec((tm, tn), o_map),
        compiler_params=pltpu.CompilerParams(
            dimension_semantics=("parallel", "parallel"),
            vmem_limit_bytes=VMEM_LIMIT),
        cost_estimate=cost,
    )(x, w, b2)


def _matmul_bias_res_ln_kernel(x_ref, w_ref, b_ref, r_ref, g_ref, be_ref, o_ref,
                               *, eps):
    acc = jnp.dot(x_ref[...], w_ref[...], preferred_element_type=jnp.float32)
    acc = acc + b_ref[...] + r_ref[...].astype(jnp.float32)
    mu = jnp.mean(acc, axis=-1, keepdims=True)
    var = jnp.mean((acc - mu) ** 2, axis=-1, keepdims=True)
    y = (acc - mu) * lax.rsqrt(var + eps)
    o_ref[...] = (y * g_ref[...] + be_ref[...]).astype(o_ref.dtype)


def matmul_bias_res_ln(x, w, b, residual, gamma, beta, eps=1e-5,
                       out_dtype=jnp.bfloat16):
    """Fused:  LayerNorm(x @ w + b + residual) * gamma + beta.

    The N block spans the full output row (N == H) so the LN reduction stays
    on the f32 accumulator -> no standalone LN kernel / extra HBM round trip.
    """
    M, K = x.shape
    K2, N = w.shape
    assert K == K2 and residual.shape == (M, N)
    x = x.astype(jnp.bfloat16)
    w = w.astype(jnp.bfloat16)
    tm = _pick_tile(M, 256, (16, 8))

    cost = pl.CostEstimate(
        flops=2 * M * K * N + 8 * M * N,
        transcendentals=M,
        bytes_accessed=2 * M * K + 2 * K * N + 4 * M * N + 12 * N)

    kernel = functools.partial(_matmul_bias_res_ln_kernel, eps=eps)
    return pl.pallas_call(
        kernel,
        out_shape=jax.ShapeDtypeStruct((M, N), out_dtype),
        grid=(M // tm,),
        in_specs=[pl.BlockSpec((tm, K), lambda i: (i, 0)),
                  pl.BlockSpec((K, N), lambda i: (0, 0)),
                  pl.BlockSpec((1, N), lambda i: (0, 0)),
                  pl.BlockSpec((tm, N), lambda i: (i, 0)),
                  pl.BlockSpec((1, N), lambda i: (0, 0)),
                  pl.BlockSpec((1, N), lambda i: (0, 0))],
        out_specs=pl.BlockSpec((tm, N), lambda i: (i, 0)),
        compiler_params=pltpu.CompilerParams(
            dimension_semantics=("parallel",),
            vmem_limit_bytes=VMEM_LIMIT),
        cost_estimate=cost,
    )(x, w, b.astype(jnp.float32).reshape(1, N), residual,
      gamma.astype(jnp.float32).reshape(1, N),
      beta.astype(jnp.float32).reshape(1, N))


def _layernorm_kernel(x_ref, g_ref, b_ref, o_ref, *, eps):
    x = x_ref[...].astype(jnp.float32)
    mu = jnp.mean(x, axis=-1, keepdims=True)
    var = jnp.mean((x - mu) ** 2, axis=-1, keepdims=True)
    y = (x - mu) * lax.rsqrt(var + eps)
    o_ref[...] = (y * g_ref[...] + b_ref[...]).astype(o_ref.dtype)


def layernorm(x, gamma, beta, eps=1e-5, out_dtype=jnp.bfloat16):
    """Row-tiled layernorm (used once, for the embedding LN)."""
    M, H = x.shape
    tm = _pick_tile(M, 512, (16, 8))
    kernel = functools.partial(_layernorm_kernel, eps=eps)
    return pl.pallas_call(
        kernel,
        out_shape=jax.ShapeDtypeStruct((M, H), out_dtype),
        grid=(M // tm,),
        in_specs=[pl.BlockSpec((tm, H), lambda i: (i, 0)),
                  pl.BlockSpec((1, H), lambda i: (0, 0)),
                  pl.BlockSpec((1, H), lambda i: (0, 0))],
        out_specs=pl.BlockSpec((tm, H), lambda i: (i, 0)),
        compiler_params=pltpu.CompilerParams(dimension_semantics=("parallel",)),
    )(x, gamma.astype(jnp.float32).reshape(1, H),
      beta.astype(jnp.float32).reshape(1, H))


def _attention_kernel(q_ref, k_ref, v_ref, bias_ref, o_ref, *, scale, hb, dh):
    # q/k/v blocks are [1, S, hb*Dh] column-windows of the fused QKV buffer.
    bias = bias_ref[0]                       # [1, S] f32, added along key dim
    qb = q_ref[0]
    kb = k_ref[0]
    vb = v_ref[0]
    outs = []
    for h in range(hb):                      # small static unroll (hb = 1..4)
        lo, hi = h * dh, (h + 1) * dh
        q = qb[:, lo:hi]
        k = kb[:, lo:hi]
        v = vb[:, lo:hi]
        s = lax.dot_general(q, k, (((1,), (1,)), ((), ())),
                            preferred_element_type=jnp.float32) * scale   # [S, S]
        s = s + bias
        m = jnp.max(s, axis=-1, keepdims=True)
        e = jnp.exp(s - m)
        p = e * pl.reciprocal(jnp.sum(e, axis=-1, keepdims=True), approx=True)
        outs.append(jnp.dot(p.astype(v.dtype), v,
                            preferred_element_type=jnp.float32))          # [S, Dh]
    o = outs[0] if hb == 1 else jnp.concatenate(outs, axis=-1)            # [S, hb*Dh]
    o_ref[...] = o[None].astype(o_ref.dtype)


def attention(qkv, bias, num_heads, dh):
    """qkv: [B, S, 3H] bf16 fused QKV, bias: [B, 1, S] f32 additive mask.

    Grid = (B, num_heads // hb).  Q/K/V head-column windows are read straight
    from the qkv buffer with BlockSpec index_maps (no XLA split/merge
    transposes) and the output is written directly into [B, S, H].
    """
    # TODO(synk): for long sequences (esp. v5e's 16 MiB scoped VMEM) add a KV
    #             grid axis with flash-style online-softmax accumulators.
    B, S, threeH = qkv.shape
    H = threeH // 3
    hb = _pick_heads_per_block(num_heads, dh)
    nhb = num_heads // hb
    scale = 1.0 / (dh ** 0.5)

    def q_map(b, h): return (b, 0, h)
    def k_map(b, h): return (b, 0, nhb + h)
    def v_map(b, h): return (b, 0, 2 * nhb + h)
    def bias_map(b, h): return (b, 0, 0)
    def o_map(b, h): return (b, 0, h)

    kernel = functools.partial(_attention_kernel, scale=scale, hb=hb, dh=dh)
    return pl.pallas_call(
        kernel,
        out_shape=jax.ShapeDtypeStruct((B, S, H), jnp.bfloat16),
        grid=(B, nhb),
        in_specs=[pl.BlockSpec((1, S, hb * dh), q_map),
                  pl.BlockSpec((1, S, hb * dh), k_map),
                  pl.BlockSpec((1, S, hb * dh), v_map),
                  pl.BlockSpec((1, 1, S), bias_map)],
        out_specs=pl.BlockSpec((1, S, hb * dh), o_map),
        compiler_params=pltpu.CompilerParams(
            dimension_semantics=("parallel", "parallel"),
            vmem_limit_bytes=VMEM_LIMIT),
    )(qkv, qkv, qkv, bias)


def _lm_head_loss_kernel(x_ref, dw_ref, db_ref, g_ref, be_ref, cw_ref, cb_ref,
                         label_ref, score_ref, loss_ref, right_ref, *, eps):
    # LM head restricted to the mask token + label-word columns, fused with
    # CrossEntropy loss and accuracy.  Everything is tiny -> single kernel.
    x = x_ref[...]
    h = jnp.dot(x, dw_ref[...], preferred_element_type=jnp.float32) + db_ref[...]
    h = _gelu(h)
    mu = jnp.mean(h, axis=-1, keepdims=True)
    var = jnp.mean((h - mu) ** 2, axis=-1, keepdims=True)
    y = (h - mu) * lax.rsqrt(var + eps) * g_ref[...] + be_ref[...]
    score = jnp.dot(y.astype(jnp.bfloat16), cw_ref[...],
                    preferred_element_type=jnp.float32) + cb_ref[...]      # [B, C]
    score_ref[...] = score

    B, C = score.shape
    label = label_ref[...]                                                 # [B, 1]
    iota = lax.broadcasted_iota(jnp.int32, (B, C), 1)
    onehot = (iota == label).astype(jnp.float32)
    rowmax = jnp.max(score, axis=-1, keepdims=True)
    lse = jnp.log(jnp.sum(jnp.exp(score - rowmax), axis=-1, keepdims=True)) + rowmax
    per_ex = -jnp.sum((score - lse) * onehot, axis=-1, keepdims=True)      # [B, 1]
    loss_ref[...] = jnp.sum(per_ex, axis=0, keepdims=True) / B             # mean CE
    # argmax with first-index tie-break (matches torch.max)
    pred = jnp.min(jnp.where(score == rowmax, iota, C), axis=-1, keepdims=True)
    right_ref[...] = jnp.sum((pred == label).astype(jnp.int32),
                             axis=0, keepdims=True)


def lm_head_loss(params, x2, B, S, label, label_ids):
    H = params["lm_dense_w"].shape[0]
    C = len(label_ids)
    # NOTE: the torch module takes logits[:, 0] as the mask-token logits.
    x_mask = x2.reshape(B, S, H)[:, 0, :]                    # [B, H]
    ids = jnp.asarray(label_ids, jnp.int32)
    dec_w = params["lm_dec_w"][:, ids].astype(jnp.bfloat16)  # [H, C] glue gather
    dec_b = params["lm_dec_b"][ids].astype(jnp.float32).reshape(1, C)
    label2 = label.astype(jnp.int32).reshape(B, 1)

    kernel = functools.partial(_lm_head_loss_kernel, eps=1e-5)
    score, loss, right = pl.pallas_call(
        kernel,
        out_shape=(jax.ShapeDtypeStruct((B, C), jnp.float32),
                   jax.ShapeDtypeStruct((1, 1), jnp.float32),
                   jax.ShapeDtypeStruct((1, 1), jnp.int32)),
        grid=(1,),
        in_specs=[pl.BlockSpec((B, H), lambda i: (0, 0)),
                  pl.BlockSpec((H, H), lambda i: (0, 0)),
                  pl.BlockSpec((1, H), lambda i: (0, 0)),
                  pl.BlockSpec((1, H), lambda i: (0, 0)),
                  pl.BlockSpec((1, H), lambda i: (0, 0)),
                  pl.BlockSpec((H, C), lambda i: (0, 0)),
                  pl.BlockSpec((1, C), lambda i: (0, 0)),
                  pl.BlockSpec((B, 1), lambda i: (0, 0))],
        out_specs=(pl.BlockSpec((B, C), lambda i: (0, 0)),
                   pl.BlockSpec((1, 1), lambda i: (0, 0)),
                   pl.BlockSpec((1, 1), lambda i: (0, 0))),
    )(x_mask.astype(jnp.bfloat16),
      params["lm_dense_w"].astype(jnp.bfloat16),
      params["lm_dense_b"].astype(jnp.float32).reshape(1, H),
      params["lm_ln_g"].astype(jnp.float32).reshape(1, H),
      params["lm_ln_b"].astype(jnp.float32).reshape(1, H),
      dec_w, dec_b, label2)
    return score, loss[0, 0], right[0, 0]


# --------------------------------------------------------------------------
# Roberta-MLM-style encoder built on the Pallas kernels
# --------------------------------------------------------------------------

def transformer_layer(p, x2, bias, B, S, num_heads):
    H = x2.shape[1]
    Dh = H // num_heads
    qkv = matmul_bias(x2, p["qkv_w"], p["qkv_b"])                  # [B*S, 3H] bf16
    ctx = attention(qkv.reshape(B, S, 3 * H), bias, num_heads, Dh) # [B, S, H]
    ctx = ctx.reshape(B * S, H)                                    # free reshape
    # attn-out projection with fused residual-add + LayerNorm epilogue
    x2 = matmul_bias_res_ln(ctx, p["o_w"], p["o_b"], x2, p["ln1_g"], p["ln1_b"])
    ff = matmul_bias(x2, p["ff1_w"], p["ff1_b"], activation="gelu")
    # FF2 with fused residual-add + LayerNorm epilogue
    x2 = matmul_bias_res_ln(ff, p["ff2_w"], p["ff2_b"], x2, p["ln2_g"], p["ln2_b"])
    return x2


def roberta_encoder(params, input_ids, attn_mask, num_heads):
    B, S = input_ids.shape
    H = params["word_emb"].shape[1]
    # glue: embedding gathers + position add
    x = params["word_emb"][input_ids] + params["pos_emb"][:S][None, :, :]
    x2 = layernorm(x.reshape(B * S, H), params["emb_ln_g"], params["emb_ln_b"])
    # attention mask -> additive bias in f32: [B, 1, S]
    bias = ((1.0 - attn_mask.astype(jnp.float32)) * -1e9).reshape(B, 1, S)
    for layer in params["layers"]:
        x2 = transformer_layer(layer, x2, bias, B, S, num_heads)
    return x2                                                      # [B*S, H] bf16


# label-word vocab indices per task (Roberta vocab ids from the torch module)
LABEL_WORD_IDS = {
    "laptop": (33407, 19397, 22173, 17075),
    "restaurant": (33407, 19397, 22173, 17075),
    "tweetevalsentiment": (33407, 19397, 22173),
    "sst2": (33407, 22173), "imdb": (33407, 22173), "movierationales": (33407, 22173),
    "mnli": (2362, 12516, 10932), "snli": (2362, 12516, 10932), "anli": (2362, 12516, 10932),
    "rte": (2362, 10932), "wnli": (2362, 10932), "qnli": (2362, 10932),
    "mrpc": (22303, 29225), "qqp": (22303, 29225),
    "emobankarousal": (5481, 3530), "persuasivenessrelevance": (5481, 3530),
    "persuasivenessspecificity": (5481, 3530), "emobankdominance": (5481, 3530),
    "squinkyimplicature": (5481, 3530), "squinkyformality": (5481, 3530),
}


@functools.partial(jax.jit, static_argnums=(4, 5))
def _forward_jit(params, input_ids, attn_mask, label, num_heads, label_ids):
    B, S = input_ids.shape
    x2 = roberta_encoder(params, input_ids, attn_mask, num_heads)
    score, loss, right = lm_head_loss(params, x2, B, S, label, label_ids)
    return loss, right, score


def prompt_roberta_forward(params, data, acc_result=None, num_heads=4):
    data_name = data["name"].lower()
    # TODO(synk): 'stsb' regression branch (MSELoss + Pearson) not implemented;
    #             only the CrossEntropy classification branches are covered.
    if "ethics" in data_name:
        ids = (897, 32047)
    else:
        ids = LABEL_WORD_IDS.get(data_name, (2362, 10932))  # default / 'recast*'

    loss, right, score = _forward_jit(params, data["inputx"], data["mask"],
                                      data["label"], num_heads, ids)

    if acc_result is None:
        acc_result = {"total": 0, "right": 0}
    acc_result["total"] += int(data["label"].shape[0])
    acc_result["right"] += int(right)
    return {"loss": loss, "acc_result": acc_result, "score": score}


# --------------------------------------------------------------------------
# Deterministic synthetic parameters (matmul weights/embeddings in bf16,
# layernorm params & biases in f32)
# --------------------------------------------------------------------------

def init_params(key, V, H, FFN, LAYERS, MAXPOS):
    keys = jax.random.split(key, 8 + LAYERS)

    def nrm(k, shape, s=0.02):
        return (jax.random.normal(k, shape, jnp.float32) * s).astype(jnp.bfloat16)

    params = {
        "word_emb": nrm(keys[0], (V, H)),
        "pos_emb": nrm(keys[1], (MAXPOS, H)),
        "emb_ln_g": jnp.ones((H,), jnp.float32),
        "emb_ln_b": jnp.zeros((H,), jnp.float32),
        "lm_dense_w": nrm(keys[2], (H, H)),
        "lm_dense_b": jnp.zeros((H,), jnp.float32),
        "lm_ln_g": jnp.ones((H,), jnp.float32),
        "lm_ln_b": jnp.zeros((H,), jnp.float32),
        "lm_dec_w": nrm(keys[3], (H, V)),
        "lm_dec_b": jnp.zeros((V,), jnp.float32),
        "layers": [],
    }
    for l in range(LAYERS):
        lk = jax.random.split(keys[8 + l], 4)
        params["layers"].append({
            "qkv_w": nrm(lk[0], (H, 3 * H)),
            "qkv_b": jnp.zeros((3 * H,), jnp.float32),
            "o_w": nrm(lk[1], (H, H)),
            "o_b": jnp.zeros((H,), jnp.float32),
            "ln1_g": jnp.ones((H,), jnp.float32),
            "ln1_b": jnp.zeros((H,), jnp.float32),
            "ff1_w": nrm(lk[2], (H, FFN)),
            "ff1_b": jnp.zeros((FFN,), jnp.float32),
            "ff2_w": nrm(lk[3], (FFN, H)),
            "ff2_b": jnp.zeros((H,), jnp.float32),
            "ln2_g": jnp.ones((H,), jnp.float32),
            "ln2_b": jnp.zeros((H,), jnp.float32),
        })
    return params


if __name__ == "__main__":
    # 'roberta-small'-shaped config (hidden=256 per the torch module), scaled
    # down in depth/sequence; vocab kept full-size so the real label-word ids
    # are valid.  Dh=64 -> 2 heads per attention block (128-lane output).
    B, S, H, NH, FFN, LAYERS = 2, 8, 256, 4, 1024, 2
    V = 50304          # roberta vocab (50265) padded up to a multiple of 128
    MAXPOS = 64

    key = jax.random.PRNGKey(0)
    kp, kx, kl = jax.random.split(key, 3)
    params = init_params(kp, V, H, FFN, LAYERS, MAXPOS)

    input_ids = jax.random.randint(kx, (B, S), 0, 50265, dtype=jnp.int32)
    attn_mask = jnp.ones((B, S), jnp.float32).at[1, 6:].set(0.0)
    label = jax.random.randint(kl, (B,), 0, 2, dtype=jnp.int32)

    data = {"inputx": input_ids, "mask": attn_mask, "label": label, "name": "RTE"}

    out = prompt_roberta_forward(params, data, acc_result=None, num_heads=NH)
    loss = jax.block_until_ready(out["loss"])

    # sanity: fused Pallas CE loss matches a pure-JAX reference on the same score
    score = out["score"]
    ref_loss = -jnp.mean(jax.nn.log_softmax(score, axis=-1)[jnp.arange(B), label])
    assert bool(jnp.isfinite(loss))
    assert abs(float(loss) - float(ref_loss)) < 1e-4
    assert out["acc_result"]["total"] == B
    assert 0 <= out["acc_result"]["right"] <= B

    print("KERNEL_OK")
</pallas_src>

<mosaic_0001>
module attributes {stable_mosaic.version = 11 : i64} {
  func.func @_layernorm_kernel(%arg0: i32, %arg1: memref<16x256xbf16, #tpu.memory_space<vmem>>, %arg2: memref<1x256xf32, #tpu.memory_space<vmem>>, %arg3: memref<1x256xf32, #tpu.memory_space<vmem>>, %arg4: memref<16x256xbf16, #tpu.memory_space<vmem>>) attributes {dimension_semantics = [#tpu.dimension_semantics<parallel>], iteration_bounds = array<i64: 1>, scalar_prefetch = 0 : i64, scratch_operands = 0 : i64, tpu.core_type = #tpu.core_type<tc>, window_params = [{transform_indices = @transform_0, window_bounds = array<i64: 16, 256>}, {pipeline_mode = #tpu.pipeline_mode<synchronous>, transform_indices = @transform_1, window_bounds = array<i64: 1, 256>}, {pipeline_mode = #tpu.pipeline_mode<synchronous>, transform_indices = @transform_2, window_bounds = array<i64: 1, 256>}, {transform_indices = @transform_3, window_bounds = array<i64: 16, 256>}]} {
    %c0 = arith.constant 0 : index
    %c0_0 = arith.constant 0 : index
    %0 = vector.load %arg1[%c0, %c0_0] : memref<16x256xbf16, #tpu.memory_space<vmem>>, vector<16x256xbf16>
    %1 = arith.extf %0 : vector<16x256xbf16> to vector<16x256xf32>
    %cst = arith.constant dense<0.000000e+00> : vector<16xf32>
    %2 = vector.multi_reduction <add>, %1, %cst [1] : vector<16x256xf32> to vector<16xf32>
    %3 = vector.shape_cast %2 : vector<16xf32> to vector<16x1xf32>
    %cst_1 = arith.constant 2.560000e+02 : f32
    %4 = vector.broadcast %cst_1 : f32 to vector<16x1xf32>
    %5 = arith.divf %3, %4 : vector<16x1xf32>
    %6 = vector.broadcast %5 : vector<16x1xf32> to vector<16x256xf32>
    %7 = arith.subf %1, %6 : vector<16x256xf32>
    %8 = arith.mulf %7, %7 : vector<16x256xf32>
    %cst_2 = arith.constant dense<0.000000e+00> : vector<16xf32>
    %9 = vector.multi_reduction <add>, %8, %cst_2 [1] : vector<16x256xf32> to vector<16xf32>
    %10 = vector.shape_cast %9 : vector<16xf32> to vector<16x1xf32>
    %cst_3 = arith.constant 2.560000e+02 : f32
    %11 = vector.broadcast %cst_3 : f32 to vector<16x1xf32>
    %12 = arith.divf %10, %11 : vector<16x1xf32>
    %13 = vector.broadcast %5 : vector<16x1xf32> to vector<16x256xf32>
    %14 = arith.subf %1, %13 : vector<16x256xf32>
    %cst_4 = arith.constant 9.99999974E-6 : f32
    %15 = vector.broadcast %cst_4 : f32 to vector<16x1xf32>
    %16 = arith.addf %12, %15 : vector<16x1xf32>
    %17 = math.rsqrt %16 : vector<16x1xf32>
    %18 = vector.broadcast %17 : vector<16x1xf32> to vector<16x256xf32>
    %19 = arith.mulf %14, %18 : vector<16x256xf32>
    %c0_5 = arith.constant 0 : index
    %c0_6 = arith.constant 0 : index
    %20 = vector.load %arg2[%c0_5, %c0_6] : memref<1x256xf32, #tpu.memory_space<vmem>>, vector<1x256xf32>
    %21 = vector.broadcast %20 : vector<1x256xf32> to vector<16x256xf32>
    %22 = arith.mulf %19, %21 : vector<16x256xf32>
    %c0_7 = arith.constant 0 : index
    %c0_8 = arith.constant 0 : index
    %23 = vector.load %arg3[%c0_7, %c0_8] : memref<1x256xf32, #tpu.memory_space<vmem>>, vector<1x256xf32>
    %24 = vector.broadcast %23 : vector<1x256xf32> to vector<16x256xf32>
    %25 = arith.addf %22, %24 : vector<16x256xf32>
    %26 = arith.truncf %25 : vector<16x256xf32> to vector<16x256xbf16>
    %c0_9 = arith.constant 0 : index
    %c0_10 = arith.constant 0 : index
    %27 = vector.load %arg4[%c0_9, %c0_10] : memref<16x256xbf16, #tpu.memory_space<vmem>>, vector<16x256xbf16>
    tpu.vector_store %arg4[%c0_9, %c0_10], %26 {strides = array<i32>} : memref<16x256xbf16, #tpu.memory_space<vmem>>, vector<16x256xbf16>,
    return
  }
  func.func @transform_0(%arg0: i32) -> (i32, i32) {
    %c0_i32 = arith.constant 0 : i32
    %c0_i32_0 = arith.constant 0 : i32
    return %arg0, %c0_i32 : i32, i32
  }
  func.func @transform_1(%arg0: i32) -> (i32, i32) {
    %c0_i32 = arith.constant 0 : i32
    %c0_i32_0 = arith.constant 0 : i32
    %c0_i32_1 = arith.constant 0 : i32
    return %c0_i32, %c0_i32_0 : i32, i32
  }
  func.func @transform_2(%arg0: i32) -> (i32, i32) {
    %c0_i32 = arith.constant 0 : i32
    %c0_i32_0 = arith.constant 0 : i32
    %c0_i32_1 = arith.constant 0 : i32
    return %c0_i32, %c0_i32_0 : i32, i32
  }
  func.func @transform_3(%arg0: i32) -> (i32, i32) {
    %c0_i32 = arith.constant 0 : i32
    %c0_i32_0 = arith.constant 0 : i32
    return %arg0, %c0_i32 : i32, i32
  }
}

module attributes {stable_mosaic.version = 11 : i64} {
  func.func @_attention_kernel(%arg0: i32, %arg1: i32, %arg2: memref<1x8x128xbf16, #tpu.memory_space<vmem>>, %arg3: memref<1x8x128xbf16, #tpu.memory_space<vmem>>, %arg4: memref<1x8x128xbf16, #tpu.memory_space<vmem>>, %arg5: memref<1x1x8xf32, #tpu.memory_space<vmem>>, %arg6: memref<1x8x128xbf16, #tpu.memory_space<vmem>>) attributes {dimension_semantics = [#tpu.dimension_semantics<parallel>, #tpu.dimension_semantics<parallel>], iteration_bounds = array<i64: 2, 2>, scalar_prefetch = 0 : i64, scratch_operands = 0 : i64, tpu.core_type = #tpu.core_type<tc>, window_params = [{transform_indices = @transform_0, window_bounds = array<i64: 1, 8, 128>}, {transform_indices = @transform_1, window_bounds = array<i64: 1, 8, 128>}, {transform_indices = @transform_2, window_bounds = array<i64: 1, 8, 128>}, {transform_indices = @transform_3, window_bounds = array<i64: 1, 1, 8>}, {transform_indices = @transform_4, window_bounds = array<i64: 1, 8, 128>}]} {
    %c0 = arith.constant 0 : index
    %c0_0 = arith.constant 0 : index
    %c0_1 = arith.constant 0 : index
    %0 = vector.load %arg5[%c0, %c0_0, %c0_1] : memref<1x1x8xf32, #tpu.memory_space<vmem>>, vector<1x1x8xf32>
    %1 = vector.shape_cast %0 : vector<1x1x8xf32> to vector<1x8xf32>
    %c0_2 = arith.constant 0 : index
    %c0_3 = arith.constant 0 : index
    %c0_4 = arith.constant 0 : index
    %2 = vector.load %arg2[%c0_2, %c0_3, %c0_4] : memref<1x8x128xbf16, #tpu.memory_space<vmem>>, vector<1x8x128xbf16>
    %3 = vector.shape_cast %2 : vector<1x8x128xbf16> to vector<8x128xbf16>
    %c0_5 = arith.constant 0 : index
    %c0_6 = arith.constant 0 : index
    %c0_7 = arith.constant 0 : index
    %4 = vector.load %arg3[%c0_5, %c0_6, %c0_7] : memref<1x8x128xbf16, #tpu.memory_space<vmem>>, vector<1x8x128xbf16>
    %5 = vector.shape_cast %4 : vector<1x8x128xbf16> to vector<8x128xbf16>
    %c0_8 = arith.constant 0 : index
    %c0_9 = arith.constant 0 : index
    %c0_10 = arith.constant 0 : index
    %6 = vector.load %arg4[%c0_8, %c0_9, %c0_10] : memref<1x8x128xbf16, #tpu.memory_space<vmem>>, vector<1x8x128xbf16>
    %7 = vector.shape_cast %6 : vector<1x8x128xbf16> to vector<8x128xbf16>
    %8 = vector.extract_strided_slice %3 {offsets = [0, 0], sizes = [8, 64], strides = [1, 1]} : vector<8x128xbf16> to vector<8x64xbf16>
    %9 = vector.extract_strided_slice %5 {offsets = [0, 0], sizes = [8, 64], strides = [1, 1]} : vector<8x128xbf16> to vector<8x64xbf16>
    %10 = vector.extract_strided_slice %7 {offsets = [0, 0], sizes = [8, 64], strides = [1, 1]} : vector<8x128xbf16> to vector<8x64xbf16>
    %cst = arith.constant dense<0.000000e+00> : vector<8x8xf32>
    %11 = tpu.matmul %8, %9, %cst {dimension_numbers = #tpu.dot_dimension_numbers<[1], [1], [0], [0], [0, 0, 1, 0], [], []>} : vector<8x64xbf16>, vector<8x64xbf16>, vector<8x8xf32> -> vector<8x8xf32>
    %cst_11 = arith.constant 1.250000e-01 : f32
    %12 = vector.broadcast %cst_11 : f32 to vector<8x8xf32>
    %13 = arith.mulf %11, %12 : vector<8x8xf32>
    %14 = vector.broadcast %1 : vector<1x8xf32> to vector<8x8xf32>
    %15 = arith.addf %13, %14 : vector<8x8xf32>
    %cst_12 = arith.constant dense<0xFF800000> : vector<8xf32>
    %16 = vector.multi_reduction <maximumf>, %15, %cst_12 [1] : vector<8x8xf32> to vector<8xf32>
    %17 = vector.shape_cast %16 : vector<8xf32> to vector<8x1xf32>
    %18 = vector.broadcast %17 : vector<8x1xf32> to vector<8x8xf32>
    %19 = arith.subf %15, %18 : vector<8x8xf32>
    %20 = math.exp %19 : vector<8x8xf32>
    %cst_13 = arith.constant dense<0.000000e+00> : vector<8xf32>
    %21 = vector.multi_reduction <add>, %20, %cst_13 [1] : vector<8x8xf32> to vector<8xf32>
    %22 = vector.shape_cast %21 : vector<8xf32> to vector<8x1xf32>
    %23 = tpu.reciprocal %22 {approx = true} : vector<8x1xf32> -> vector<8x1xf32>
    %24 = vector.broadcast %23 : vector<8x1xf32> to vector<8x8xf32>
    %25 = arith.mulf %20, %24 : vector<8x8xf32>
    %26 = arith.truncf %25 : vector<8x8xf32> to vector<8x8xbf16>
    %cst_14 = arith.constant dense<0.000000e+00> : vector<8x64xf32>
    %27 = tpu.matmul %26, %10, %cst_14 {dimension_numbers = #tpu.dot_dimension_numbers<[1], [0], [0], [1], [0, 0, 1, 1], [], []>} : vector<8x8xbf16>, vector<8x64xbf16>, vector<8x64xf32> -> vector<8x64xf32>
    %28 = vector.extract_strided_slice %3 {offsets = [0, 64], sizes = [8, 64], strides = [1, 1]} : vector<8x128xbf16> to vector<8x64xbf16>
    %29 = vector.extract_strided_slice %5 {offsets = [0, 64], sizes = [8, 64], strides = [1, 1]} : vector<8x128xbf16> to vector<8x64xbf16>
    %30 = vector.extract_strided_slice %7 {offsets = [0, 64], sizes = [8, 64], strides = [1, 1]} : vector<8x128xbf16> to vector<8x64xbf16>
    %cst_15 = arith.constant dense<0.000000e+00> : vector<8x8xf32>
    %31 = tpu.matmul %28, %29, %cst_15 {dimension_numbers = #tpu.dot_dimension_numbers<[1], [1], [0], [0], [0, 0, 1, 0], [], []>} : vector<8x64xbf16>, vector<8x64xbf16>, vector<8x8xf32> -> vector<8x8xf32>
    %cst_16 = arith.constant 1.250000e-01 : f32
    %32 = vector.broadcast %cst_16 : f32 to vector<8x8xf32>
    %33 = arith.mulf %31, %32 : vector<8x8xf32>
    %34 = vector.broadcast %1 : vector<1x8xf32> to vector<8x8xf32>
    %35 = arith.addf %33, %34 : vector<8x8xf32>
    %cst_17 = arith.constant dense<0xFF800000> : vector<8xf32>
    %36 = vector.multi_reduction <maximumf>, %35, %cst_17 [1] : vector<8x8xf32> to vector<8xf32>
    %37 = vector.shape_cast %36 : vector<8xf32> to vector<8x1xf32>
    %38 = vector.broadcast %37 : vector<8x1xf32> to vector<8x8xf32>
    %39 = arith.subf %35, %38 : vector<8x8xf32>
    %40 = math.exp %39 : vector<8x8xf32>
    %cst_18 = arith.constant dense<0.000000e+00> : vector<8xf32>
    %41 = vector.multi_reduction <add>, %40, %cst_18 [1] : vector<8x8xf32> to vector<8xf32>
    %42 = vector.shape_cast %41 : vector<8xf32> to vector<8x1xf32>
    %43 = tpu.reciprocal %42 {approx = true} : vector<8x1xf32> -> vector<8x1xf32>
    %44 = vector.broadcast %43 : vector<8x1xf32> to vector<8x8xf32>
    %45 = arith.mulf %40, %44 : vector<8x8xf32>
    %46 = arith.truncf %45 : vector<8x8xf32> to vector<8x8xbf16>
    %cst_19 = arith.constant dense<0.000000e+00> : vector<8x64xf32>
    %47 = tpu.matmul %46, %30, %cst_19 {dimension_numbers = #tpu.dot_dimension_numbers<[1], [0], [0], [1], [0, 0, 1, 1], [], []>} : vector<8x8xbf16>, vector<8x64xbf16>, vector<8x64xf32> -> vector<8x64xf32>
    %48 = tpu.concatenate %27, %47 in 1 : vector<8x64xf32>, vector<8x64xf32> -> vector<8x128xf32>
    %49 = vector.shape_cast %48 : vector<8x128xf32> to vector<1x8x128xf32>
    %50 = arith.truncf %49 : vector<1x8x128xf32> to vector<1x8x128xbf16>
    %c0_20 = arith.constant 0 : index
    %c0_21 = arith.constant 0 : index
    %c0_22 = arith.constant 0 : index
    %51 = vector.load %arg6[%c0_20, %c0_21, %c0_22] : memref<1x8x128xbf16, #tpu.memory_space<vmem>>, vector<1x8x128xbf16>
    tpu.vector_store %arg6[%c0_20, %c0_21, %c0_22], %50 {strides = array<i32>} : memref<1x8x128xbf16, #tpu.memory_space<vmem>>, vector<1x8x128xbf16>,
    return
  }
  func.func @transform_0(%arg0: i32, %arg1: i32) -> (i32, i32, i32) {
    %c0_i32 = arith.constant 0 : i32
    %c0_i32_0 = arith.constant 0 : i32
    return %arg0, %c0_i32, %arg1 : i32, i32, i32
  }
  func.func @transform_1(%arg0: i32, %arg1: i32) -> (i32, i32, i32) {
    %c2_i32 = arith.constant 2 : i32
    %0 = arith.addi %c2_i32, %arg1 : i32
    %c0_i32 = arith.constant 0 : i32
    %c0_i32_0 = arith.constant 0 : i32
    return %arg0, %c0_i32, %0 : i32, i32, i32
  }
  func.func @transform_2(%arg0: i32, %arg1: i32) -> (i32, i32, i32) {
    %c4_i32 = arith.constant 4 : i32
    %0 = arith.addi %c4_i32, %arg1 : i32
    %c0_i32 = arith.constant 0 : i32
    %c0_i32_0 = arith.constant 0 : i32
    return %arg0, %c0_i32, %0 : i32, i32, i32
  }
  func.func @transform_3(%arg0: i32, %arg1: i32) -> (i32, i32, i32) {
    %c0_i32 = arith.constant 0 : i32
    %c0_i32_0 = arith.constant 0 : i32
    %c0_i32_1 = arith.constant 0 : i32
    return %arg0, %c0_i32, %c0_i32_0 : i32, i32, i32
  }
  func.func @transform_4(%arg0: i32, %arg1: i32) -> (i32, i32, i32) {
    %c0_i32 = arith.constant 0 : i32
    %c0_i32_0 = arith.constant 0 : i32
    return %arg0, %c0_i32, %arg1 : i32, i32, i32
  }
}

module attributes {stable_mosaic.version = 11 : i64} {
  func.func @_matmul_bias_res_ln_kernel(%arg0: i32, %arg1: memref<16x256xbf16, #tpu.memory_space<vmem>>, %arg2: memref<256x256xbf16, #tpu.memory_space<vmem>>, %arg3: memref<1x256xf32, #tpu.memory_space<vmem>>, %arg4: memref<16x256xbf16, #tpu.memory_space<vmem>>, %arg5: memref<1x256xf32, #tpu.memory_space<vmem>>, %arg6: memref<1x256xf32, #tpu.memory_space<vmem>>, %arg7: memref<16x256xbf16, #tpu.memory_space<vmem>>) attributes {dimension_semantics = [#tpu.dimension_semantics<parallel>], iteration_bounds = array<i64: 1>, scalar_prefetch = 0 : i64, scratch_operands = 0 : i64, tpu.core_type = #tpu.core_type<tc>, window_params = [{transform_indices = @transform_0, window_bounds = array<i64: 16, 256>}, {pipeline_mode = #tpu.pipeline_mode<synchronous>, transform_indices = @transform_1, window_bounds = array<i64: 256, 256>}, {pipeline_mode = #tpu.pipeline_mode<synchronous>, transform_indices = @transform_2, window_bounds = array<i64: 1, 256>}, {transform_indices = @transform_3, window_bounds = array<i64: 16, 256>}, {pipeline_mode = #tpu.pipeline_mode<synchronous>, transform_indices = @transform_4, window_bounds = array<i64: 1, 256>}, {pipeline_mode = #tpu.pipeline_mode<synchronous>, transform_indices = @transform_5, window_bounds = array<i64: 1, 256>}, {transform_indices = @transform_6, window_bounds = array<i64: 16, 256>}]} {
    %c0 = arith.constant 0 : index
    %c0_0 = arith.constant 0 : index
    %0 = vector.load %arg1[%c0, %c0_0] : memref<16x256xbf16, #tpu.memory_space<vmem>>, vector<16x256xbf16>
    %c0_1 = arith.constant 0 : index
    %c0_2 = arith.constant 0 : index
    %1 = vector.load %arg2[%c0_1, %c0_2] : memref<256x256xbf16, #tpu.memory_space<vmem>>, vector<256x256xbf16>
    %cst = arith.constant dense<0.000000e+00> : vector<16x256xf32>
    %2 = tpu.matmul %0, %1, %cst {dimension_numbers = #tpu.dot_dimension_numbers<[1], [0], [0], [1], [0, 0, 1, 1], [], []>} : vector<16x256xbf16>, vector<256x256xbf16>, vector<16x256xf32> -> vector<16x256xf32>
    %c0_3 = arith.constant 0 : index
    %c0_4 = arith.constant 0 : index
    %3 = vector.load %arg3[%c0_3, %c0_4] : memref<1x256xf32, #tpu.memory_space<vmem>>, vector<1x256xf32>
    %4 = vector.broadcast %3 : vector<1x256xf32> to vector<16x256xf32>
    %5 = arith.addf %2, %4 : vector<16x256xf32>
    %c0_5 = arith.constant 0 : index
    %c0_6 = arith.constant 0 : index
    %6 = vector.load %arg4[%c0_5, %c0_6] : memref<16x256xbf16, #tpu.memory_space<vmem>>, vector<16x256xbf16>
    %7 = arith.extf %6 : vector<16x256xbf16> to vector<16x256xf32>
    %8 = arith.addf %5, %7 : vector<16x256xf32>
    %cst_7 = arith.constant dense<0.000000e+00> : vector<16xf32>
    %9 = vector.multi_reduction <add>, %8, %cst_7 [1] : vector<16x256xf32> to vector<16xf32>
    %10 = vector.shape_cast %9 : vector<16xf32> to vector<16x1xf32>
    %cst_8 = arith.constant 2.560000e+02 : f32
    %11 = vector.broadcast %cst_8 : f32 to vector<16x1xf32>
    %12 = arith.divf %10, %11 : vector<16x1xf32>
    %13 = vector.broadcast %12 : vector<16x1xf32> to vector<16x256xf32>
    %14 = arith.subf %8, %13 : vector<16x256xf32>
    %15 = arith.mulf %14, %14 : vector<16x256xf32>
    %cst_9 = arith.constant dense<0.000000e+00> : vector<16xf32>
    %16 = vector.multi_reduction <add>, %15, %cst_9 [1] : vector<16x256xf32> to vector<16xf32>
    %17 = vector.shape_cast %16 : vector<16xf32> to vector<16x1xf32>
    %cst_10 = arith.constant 2.560000e+02 : f32
    %18 = vector.broadcast %cst_10 : f32 to vector<16x1xf32>
    %19 = arith.divf %17, %18 : vector<16x1xf32>
    %20 = vector.broadcast %12 : vector<16x1xf32> to vector<16x256xf32>
    %21 = arith.subf %8, %20 : vector<16x256xf32>
    %cst_11 = arith.constant 9.99999974E-6 : f32
    %22 = vector.broadcast %cst_11 : f32 to vector<16x1xf32>
    %23 = arith.addf %19, %22 : vector<16x1xf32>
    %24 = math.rsqrt %23 : vector<16x1xf32>
    %25 = vector.broadcast %24 : vector<16x1xf32> to vector<16x256xf32>
    %26 = arith.mulf %21, %25 : vector<16x256xf32>
    %c0_12 = arith.constant 0 : index
    %c0_13 = arith.constant 0 : index
    %27 = vector.load %arg5[%c0_12, %c0_13] : memref<1x256xf32, #tpu.memory_space<vmem>>, vector<1x256xf32>
    %28 = vector.broadcast %27 : vector<1x256xf32> to vector<16x256xf32>
    %29 = arith.mulf %26, %28 : vector<16x256xf32>
    %c0_14 = arith.constant 0 : index
    %c0_15 = arith.constant 0 : index
    %30 = vector.load %arg6[%c0_14, %c0_15] : memref<1x256xf32, #tpu.memory_space<vmem>>, vector<1x256xf32>
    %31 = vector.broadcast %30 : vector<1x256xf32> to vector<16x256xf32>
    %32 = arith.addf %29, %31 : vector<16x256xf32>
    %33 = arith.truncf %32 : vector<16x256xf32> to vector<16x256xbf16>
    %c0_16 = arith.constant 0 : index
    %c0_17 = arith.constant 0 : index
    %34 = vector.load %arg7[%c0_16, %c0_17] : memref<16x256xbf16, #tpu.memory_space<vmem>>, vector<16x256xbf16>
    tpu.vector_store %arg7[%c0_16, %c0_17], %33 {strides = array<i32>} : memref<16x256xbf16, #tpu.memory_space<vmem>>, vector<16x256xbf16>,
    return
  }
  func.func @transform_0(%arg0: i32) -> (i32, i32) {
    %c0_i32 = arith.constant 0 : i32
    %c0_i32_0 = arith.constant 0 : i32
    return %arg0, %c0_i32 : i32, i32
  }
  func.func @transform_1(%arg0: i32) -> (i32, i32) {
    %c0_i32 = arith.constant 0 : i32
    %c0_i32_0 = arith.constant 0 : i32
    %c0_i32_1 = arith.constant 0 : i32
    return %c0_i32, %c0_i32_0 : i32, i32
  }
  func.func @transform_2(%arg0: i32) -> (i32, i32) {
    %c0_i32 = arith.constant 0 : i32
    %c0_i32_0 = arith.constant 0 : i32
    %c0_i32_1 = arith.constant 0 : i32
    return %c0_i32, %c0_i32_0 : i32, i32
  }
  func.func @transform_3(%arg0: i32) -> (i32, i32) {
    %c0_i32 = arith.constant 0 : i32
    %c0_i32_0 = arith.constant 0 : i32
    return %arg0, %c0_i32 : i32, i32
  }
  func.func @transform_4(%arg0: i32) -> (i32, i32) {
    %c0_i32 = arith.constant 0 : i32
    %c0_i32_0 = arith.constant 0 : i32
    %c0_i32_1 = arith.constant 0 : i32
    return %c0_i32, %c0_i32_0 : i32, i32
  }
  func.func @transform_5(%arg0: i32) -> (i32, i32) {
    %c0_i32 = arith.constant 0 : i32
    %c0_i32_0 = arith.constant 0 : i32
    %c0_i32_1 = arith.constant 0 : i32
    return %c0_i32, %c0_i32_0 : i32, i32
  }
  func.func @transform_6(%arg0: i32) -> (i32, i32) {
    %c0_i32 = arith.constant 0 : i32
    %c0_i32_0 = arith.constant 0 : i32
    return %arg0, %c0_i32 : i32, i32
  }
}

module attributes {stable_mosaic.version = 11 : i64} {
  func.func @_matmul_bias_kernel(%arg0: i32, %arg1: i32, %arg2: memref<16x256xbf16, #tpu.memory_space<vmem>>, %arg3: memref<256x384xbf16, #tpu.memory_space<vmem>>, %arg4: memref<1x384xf32, #tpu.memory_space<vmem>>, %arg5: memref<16x384xbf16, #tpu.memory_space<vmem>>) attributes {dimension_semantics = [#tpu.dimension_semantics<parallel>, #tpu.dimension_semantics<parallel>], iteration_bounds = array<i64: 2, 1>, scalar_prefetch = 0 : i64, scratch_operands = 0 : i64, tpu.core_type = #tpu.core_type<tc>, window_params = [{transform_indices = @transform_0, window_bounds = array<i64: 16, 256>}, {transform_indices = @transform_1, window_bounds = array<i64: 256, 384>}, {transform_indices = @transform_2, window_bounds = array<i64: 1, 384>}, {transform_indices = @transform_3, window_bounds = array<i64: 16, 384>}]} {
    %c0 = arith.constant 0 : index
    %c0_0 = arith.constant 0 : index
    %0 = vector.load %arg2[%c0, %c0_0] : memref<16x256xbf16, #tpu.memory_space<vmem>>, vector<16x256xbf16>
    %c0_1 = arith.constant 0 : index
    %c0_2 = arith.constant 0 : index
    %1 = vector.load %arg3[%c0_1, %c0_2] : memref<256x384xbf16, #tpu.memory_space<vmem>>, vector<256x384xbf16>
    %cst = arith.constant dense<0.000000e+00> : vector<16x384xf32>
    %2 = tpu.matmul %0, %1, %cst {dimension_numbers = #tpu.dot_dimension_numbers<[1], [0], [0], [1], [0, 0, 1, 1], [], []>} : vector<16x256xbf16>, vector<256x384xbf16>, vector<16x384xf32> -> vector<16x384xf32>
    %c0_3 = arith.constant 0 : index
    %c0_4 = arith.constant 0 : index
    %3 = vector.load %arg4[%c0_3, %c0_4] : memref<1x384xf32, #tpu.memory_space<vmem>>, vector<1x384xf32>
    %4 = vector.broadcast %3 : vector<1x384xf32> to vector<16x384xf32>
    %5 = arith.addf %2, %4 : vector<16x384xf32>
    %6 = arith.truncf %5 : vector<16x384xf32> to vector<16x384xbf16>
    %c0_5 = arith.constant 0 : index
    %c0_6 = arith.constant 0 : index
    %7 = vector.load %arg5[%c0_5, %c0_6] : memref<16x384xbf16, #tpu.memory_space<vmem>>, vector<16x384xbf16>
    tpu.vector_store %arg5[%c0_5, %c0_6], %6 {strides = array<i32>} : memref<16x384xbf16, #tpu.memory_space<vmem>>, vector<16x384xbf16>,
    return
  }
  func.func @transform_0(%arg0: i32, %arg1: i32) -> (i32, i32) {
    %c0_i32 = arith.constant 0 : i32
    %c0_i32_0 = arith.constant 0 : i32
    return %arg1, %c0_i32 : i32, i32
  }
  func.func @transform_1(%arg0: i32, %arg1: i32) -> (i32, i32) {
    %c0_i32 = arith.constant 0 : i32
    %c0_i32_0 = arith.constant 0 : i32
    return %c0_i32, %arg0 : i32, i32
  }
  func.func @transform_2(%arg0: i32, %arg1: i32) -> (i32, i32) {
    %c0_i32 = arith.constant 0 : i32
    %c0_i32_0 = arith.constant 0 : i32
    return %c0_i32, %arg0 : i32, i32
  }
  func.func @transform_3(%arg0: i32, %arg1: i32) -> (i32, i32) {
    %c0_i32 = arith.constant 0 : i32
    return %arg1, %arg0 : i32, i32
  }
}

module attributes {stable_mosaic.version = 11 : i64} {
  func.func @_matmul_bias_kernel(%arg0: i32, %arg1: i32, %arg2: memref<16x256xbf16, #tpu.memory_space<vmem>>, %arg3: memref<256x512xbf16, #tpu.memory_space<vmem>>, %arg4: memref<1x512xf32, #tpu.memory_space<vmem>>, %arg5: memref<16x512xbf16, #tpu.memory_space<vmem>>) attributes {dimension_semantics = [#tpu.dimension_semantics<parallel>, #tpu.dimension_semantics<parallel>], iteration_bounds = array<i64: 2, 1>, scalar_prefetch = 0 : i64, scratch_operands = 0 : i64, tpu.core_type = #tpu.core_type<tc>, window_params = [{transform_indices = @transform_0, window_bounds = array<i64: 16, 256>}, {transform_indices = @transform_1, window_bounds = array<i64: 256, 512>}, {transform_indices = @transform_2, window_bounds = array<i64: 1, 512>}, {transform_indices = @transform_3, window_bounds = array<i64: 16, 512>}]} {
    %c0 = arith.constant 0 : index
    %c0_0 = arith.constant 0 : index
    %0 = vector.load %arg2[%c0, %c0_0] : memref<16x256xbf16, #tpu.memory_space<vmem>>, vector<16x256xbf16>
    %c0_1 = arith.constant 0 : index
    %c0_2 = arith.constant 0 : index
    %1 = vector.load %arg3[%c0_1, %c0_2] : memref<256x512xbf16, #tpu.memory_space<vmem>>, vector<256x512xbf16>
    %cst = arith.constant dense<0.000000e+00> : vector<16x512xf32>
    %2 = tpu.matmul %0, %1, %cst {dimension_numbers = #tpu.dot_dimension_numbers<[1], [0], [0], [1], [0, 0, 1, 1], [], []>} : vector<16x256xbf16>, vector<256x512xbf16>, vector<16x512xf32> -> vector<16x512xf32>
    %c0_3 = arith.constant 0 : index
    %c0_4 = arith.constant 0 : index
    %3 = vector.load %arg4[%c0_3, %c0_4] : memref<1x512xf32, #tpu.memory_space<vmem>>, vector<1x512xf32>
    %4 = vector.broadcast %3 : vector<1x512xf32> to vector<16x512xf32>
    %5 = arith.addf %2, %4 : vector<16x512xf32>
    %cst_5 = arith.constant 5.000000e-01 : f32
    %6 = vector.broadcast %cst_5 : f32 to vector<16x512xf32>
    %7 = arith.mulf %6, %5 : vector<16x512xf32>
    %cst_6 = arith.constant 4.471500e-02 : f32
    %8 = vector.broadcast %cst_6 : f32 to vector<16x512xf32>
    %9 = arith.mulf %8, %5 : vector<16x512xf32>
    %10 = arith.mulf %9, %5 : vector<16x512xf32>
    %11 = arith.mulf %10, %5 : vector<16x512xf32>
    %12 = arith.addf %5, %11 : vector<16x512xf32>
    %cst_7 = arith.constant 0.797884583 : f32
    %13 = vector.broadcast %cst_7 : f32 to vector<16x512xf32>
    %14 = arith.mulf %13, %12 : vector<16x512xf32>
    %15 = math.tanh %14 : vector<16x512xf32>
    %cst_8 = arith.constant 1.000000e+00 : f32
    %16 = vector.broadcast %cst_8 : f32 to vector<16x512xf32>
    %17 = arith.addf %16, %15 : vector<16x512xf32>
    %18 = arith.mulf %7, %17 : vector<16x512xf32>
    %19 = arith.truncf %18 : vector<16x512xf32> to vector<16x512xbf16>
    %c0_9 = arith.constant 0 : index
    %c0_10 = arith.constant 0 : index
    %20 = vector.load %arg5[%c0_9, %c0_10] : memref<16x512xbf16, #tpu.memory_space<vmem>>, vector<16x512xbf16>
    tpu.vector_store %arg5[%c0_9, %c0_10], %19 {strides = array<i32>} : memref<16x512xbf16, #tpu.memory_space<vmem>>, vector<16x512xbf16>,
    return
  }
  func.func @transform_0(%arg0: i32, %arg1: i32) -> (i32, i32) {
    %c0_i32 = arith.constant 0 : i32
    %c0_i32_0 = arith.constant 0 : i32
    return %arg1, %c0_i32 : i32, i32
  }
  func.func @transform_1(%arg0: i32, %arg1: i32) -> (i32, i32) {
    %c0_i32 = arith.constant 0 : i32
    %c0_i32_0 = arith.constant 0 : i32
    return %c0_i32, %arg0 : i32, i32
  }
  func.func @transform_2(%arg0: i32, %arg1: i32) -> (i32, i32) {
    %c0_i32 = arith.constant 0 : i32
    %c0_i32_0 = arith.constant 0 : i32
    return %c0_i32, %arg0 : i32, i32
  }
  func.func @transform_3(%arg0: i32, %arg1: i32) -> (i32, i32) {
    %c0_i32 = arith.constant 0 : i32
    return %arg1, %arg0 : i32, i32
  }
}

module attributes {stable_mosaic.version = 11 : i64} {
  func.func @_matmul_bias_res_ln_kernel(%arg0: i32, %arg1: memref<16x1024xbf16, #tpu.memory_space<vmem>>, %arg2: memref<1024x256xbf16, #tpu.memory_space<vmem>>, %arg3: memref<1x256xf32, #tpu.memory_space<vmem>>, %arg4: memref<16x256xbf16, #tpu.memory_space<vmem>>, %arg5: memref<1x256xf32, #tpu.memory_space<vmem>>, %arg6: memref<1x256xf32, #tpu.memory_space<vmem>>, %arg7: memref<16x256xbf16, #tpu.memory_space<vmem>>) attributes {dimension_semantics = [#tpu.dimension_semantics<parallel>], iteration_bounds = array<i64: 1>, scalar_prefetch = 0 : i64, scratch_operands = 0 : i64, tpu.core_type = #tpu.core_type<tc>, window_params = [{transform_indices = @transform_0, window_bounds = array<i64: 16, 1024>}, {pipeline_mode = #tpu.pipeline_mode<synchronous>, transform_indices = @transform_1, window_bounds = array<i64: 1024, 256>}, {pipeline_mode = #tpu.pipeline_mode<synchronous>, transform_indices = @transform_2, window_bounds = array<i64: 1, 256>}, {transform_indices = @transform_3, window_bounds = array<i64: 16, 256>}, {pipeline_mode = #tpu.pipeline_mode<synchronous>, transform_indices = @transform_4, window_bounds = array<i64: 1, 256>}, {pipeline_mode = #tpu.pipeline_mode<synchronous>, transform_indices = @transform_5, window_bounds = array<i64: 1, 256>}, {transform_indices = @transform_6, window_bounds = array<i64: 16, 256>}]} {
    %c0 = arith.constant 0 : index
    %c0_0 = arith.constant 0 : index
    %0 = vector.load %arg1[%c0, %c0_0] : memref<16x1024xbf16, #tpu.memory_space<vmem>>, vector<16x1024xbf16>
    %c0_1 = arith.constant 0 : index
    %c0_2 = arith.constant 0 : index
    %1 = vector.load %arg2[%c0_1, %c0_2] : memref<1024x256xbf16, #tpu.memory_space<vmem>>, vector<1024x256xbf16>
    %cst = arith.constant dense<0.000000e+00> : vector<16x256xf32>
    %2 = tpu.matmul %0, %1, %cst {dimension_numbers = #tpu.dot_dimension_numbers<[1], [0], [0], [1], [0, 0, 1, 1], [], []>} : vector<16x1024xbf16>, vector<1024x256xbf16>, vector<16x256xf32> -> vector<16x256xf32>
    %c0_3 = arith.constant 0 : index
    %c0_4 = arith.constant 0 : index
    %3 = vector.load %arg3[%c0_3, %c0_4] : memref<1x256xf32, #tpu.memory_space<vmem>>, vector<1x256xf32>
    %4 = vector.broadcast %3 : vector<1x256xf32> to vector<16x256xf32>
    %5 = arith.addf %2, %4 : vector<16x256xf32>
    %c0_5 = arith.constant 0 : index
    %c0_6 = arith.constant 0 : index
    %6 = vector.load %arg4[%c0_5, %c0_6] : memref<16x256xbf16, #tpu.memory_space<vmem>>, vector<16x256xbf16>
    %7 = arith.extf %6 : vector<16x256xbf16> to vector<16x256xf32>
    %8 = arith.addf %5, %7 : vector<16x256xf32>
    %cst_7 = arith.constant dense<0.000000e+00> : vector<16xf32>
    %9 = vector.multi_reduction <add>, %8, %cst_7 [1] : vector<16x256xf32> to vector<16xf32>
    %10 = vector.shape_cast %9 : vector<16xf32> to vector<16x1xf32>
    %cst_8 = arith.constant 2.560000e+02 : f32
    %11 = vector.broadcast %cst_8 : f32 to vector<16x1xf32>
    %12 = arith.divf %10, %11 : vector<16x1xf32>
    %13 = vector.broadcast %12 : vector<16x1xf32> to vector<16x256xf32>
    %14 = arith.subf %8, %13 : vector<16x256xf32>
    %15 = arith.mulf %14, %14 : vector<16x256xf32>
    %cst_9 = arith.constant dense<0.000000e+00> : vector<16xf32>
    %16 = vector.multi_reduction <add>, %15, %cst_9 [1] : vector<16x256xf32> to vector<16xf32>
    %17 = vector.shape_cast %16 : vector<16xf32> to vector<16x1xf32>
    %cst_10 = arith.constant 2.560000e+02 : f32
    %18 = vector.broadcast %cst_10 : f32 to vector<16x1xf32>
    %19 = arith.divf %17, %18 : vector<16x1xf32>
    %20 = vector.broadcast %12 : vector<16x1xf32> to vector<16x256xf32>
    %21 = arith.subf %8, %20 : vector<16x256xf32>
    %cst_11 = arith.constant 9.99999974E-6 : f32
    %22 = vector.broadcast %cst_11 : f32 to vector<16x1xf32>
    %23 = arith.addf %19, %22 : vector<16x1xf32>
    %24 = math.rsqrt %23 : vector<16x1xf32>
    %25 = vector.broadcast %24 : vector<16x1xf32> to vector<16x256xf32>
    %26 = arith.mulf %21, %25 : vector<16x256xf32>
    %c0_12 = arith.constant 0 : index
    %c0_13 = arith.constant 0 : index
    %27 = vector.load %arg5[%c0_12, %c0_13] : memref<1x256xf32, #tpu.memory_space<vmem>>, vector<1x256xf32>
    %28 = vector.broadcast %27 : vector<1x256xf32> to vector<16x256xf32>
    %29 = arith.mulf %26, %28 : vector<16x256xf32>
    %c0_14 = arith.constant 0 : index
    %c0_15 = arith.constant 0 : index
    %30 = vector.load %arg6[%c0_14, %c0_15] : memref<1x256xf32, #tpu.memory_space<vmem>>, vector<1x256xf32>
    %31 = vector.broadcast %30 : vector<1x256xf32> to vector<16x256xf32>
    %32 = arith.addf %29, %31 : vector<16x256xf32>
    %33 = arith.truncf %32 : vector<16x256xf32> to vector<16x256xbf16>
    %c0_16 = arith.constant 0 : index
    %c0_17 = arith.constant 0 : index
    %34 = vector.load %arg7[%c0_16, %c0_17] : memref<16x256xbf16, #tpu.memory_space<vmem>>, vector<16x256xbf16>
    tpu.vector_store %arg7[%c0_16, %c0_17], %33 {strides = array<i32>} : memref<16x256xbf16, #tpu.memory_space<vmem>>, vector<16x256xbf16>,
    return
  }
  func.func @transform_0(%arg0: i32) -> (i32, i32) {
    %c0_i32 = arith.constant 0 : i32
    %c0_i32_0 = arith.constant 0 : i32
    return %arg0, %c0_i32 : i32, i32
  }
  func.func @transform_1(%arg0: i32) -> (i32, i32) {
    %c0_i32 = arith.constant 0 : i32
    %c0_i32_0 = arith.constant 0 : i32
    %c0_i32_1 = arith.constant 0 : i32
    return %c0_i32, %c0_i32_0 : i32, i32
  }
  func.func @transform_2(%arg0: i32) -> (i32, i32) {
    %c0_i32 = arith.constant 0 : i32
    %c0_i32_0 = arith.constant 0 : i32
    %c0_i32_1 = arith.constant 0 : i32
    return %c0_i32, %c0_i32_0 : i32, i32
  }
  func.func @transform_3(%arg0: i32) -> (i32, i32) {
    %c0_i32 = arith.constant 0 : i32
    %c0_i32_0 = arith.constant 0 : i32
    return %arg0, %c0_i32 : i32, i32
  }
  func.func @transform_4(%arg0: i32) -> (i32, i32) {
    %c0_i32 = arith.constant 0 : i32
    %c0_i32_0 = arith.constant 0 : i32
    %c0_i32_1 = arith.constant 0 : i32
    return %c0_i32, %c0_i32_0 : i32, i32
  }
  func.func @transform_5(%arg0: i32) -> (i32, i32) {
    %c0_i32 = arith.constant 0 : i32
    %c0_i32_0 = arith.constant 0 : i32
    %c0_i32_1 = arith.constant 0 : i32
    return %c0_i32, %c0_i32_0 : i32, i32
  }
  func.func @transform_6(%arg0: i32) -> (i32, i32) {
    %c0_i32 = arith.constant 0 : i32
    %c0_i32_0 = arith.constant 0 : i32
    return %arg0, %c0_i32 : i32, i32
  }
}

module attributes {stable_mosaic.version = 11 : i64} {
  func.func @_lm_head_loss_kernel(%arg0: i32, %arg1: memref<2x256xbf16, #tpu.memory_space<vmem>>, %arg2: memref<256x256xbf16, #tpu.memory_space<vmem>>, %arg3: memref<1x256xf32, #tpu.memory_space<vmem>>, %arg4: memref<1x256xf32, #tpu.memory_space<vmem>>, %arg5: memref<1x256xf32, #tpu.memory_space<vmem>>, %arg6: memref<256x2xbf16, #tpu.memory_space<vmem>>, %arg7: memref<1x2xf32, #tpu.memory_space<vmem>>, %arg8: memref<2x1xi32, #tpu.memory_space<vmem>>, %arg9: memref<2x2xf32, #tpu.memory_space<vmem>>, %arg10: memref<1x1xf32, #tpu.memory_space<vmem>>, %arg11: memref<1x1xi32, #tpu.memory_space<vmem>>) attributes {dimension_semantics = [#tpu.dimension_semantics<arbitrary>], iteration_bounds = array<i64: 1>, scalar_prefetch = 0 : i64, scratch_operands = 0 : i64, tpu.core_type = #tpu.core_type<tc>, window_params = [{pipeline_mode = #tpu.pipeline_mode<synchronous>, transform_indices = @transform_0, window_bounds = array<i64: 2, 256>}, {pipeline_mode = #tpu.pipeline_mode<synchronous>, transform_indices = @transform_1, window_bounds = array<i64: 256, 256>}, {pipeline_mode = #tpu.pipeline_mode<synchronous>, transform_indices = @transform_2, window_bounds = array<i64: 1, 256>}, {pipeline_mode = #tpu.pipeline_mode<synchronous>, transform_indices = @transform_3, window_bounds = array<i64: 1, 256>}, {pipeline_mode = #tpu.pipeline_mode<synchronous>, transform_indices = @transform_4, window_bounds = array<i64: 1, 256>}, {pipeline_mode = #tpu.pipeline_mode<synchronous>, transform_indices = @transform_5, window_bounds = array<i64: 256, 2>}, {pipeline_mode = #tpu.pipeline_mode<synchronous>, transform_indices = @transform_6, window_bounds = array<i64: 1, 2>}, {pipeline_mode = #tpu.pipeline_mode<synchronous>, transform_indices = @transform_7, window_bounds = array<i64: 2, 1>}, {pipeline_mode = #tpu.pipeline_mode<synchronous>, transform_indices = @transform_8, window_bounds = array<i64: 2, 2>}, {pipeline_mode = #tpu.pipeline_mode<synchronous>, transform_indices = @transform_9, window_bounds = array<i64: 1, 1>}, {pipeline_mode = #tpu.pipeline_mode<synchronous>, transform_indices = @transform_10, window_bounds = array<i64: 1, 1>}]} {
    %c0 = arith.constant 0 : index
    %c0_0 = arith.constant 0 : index
    %0 = vector.load %arg1[%c0, %c0_0] : memref<2x256xbf16, #tpu.memory_space<vmem>>, vector<2x256xbf16>
    %c0_1 = arith.constant 0 : index
    %c0_2 = arith.constant 0 : index
    %1 = vector.load %arg2[%c0_1, %c0_2] : memref<256x256xbf16, #tpu.memory_space<vmem>>, vector<256x256xbf16>
    %cst = arith.constant dense<0.000000e+00> : vector<2x256xf32>
    %2 = tpu.matmul %0, %1, %cst {dimension_numbers = #tpu.dot_dimension_numbers<[1], [0], [0], [1], [0, 0, 1, 1], [], []>} : vector<2x256xbf16>, vector<256x256xbf16>, vector<2x256xf32> -> vector<2x256xf32>
    %c0_3 = arith.constant 0 : index
    %c0_4 = arith.constant 0 : index
    %3 = vector.load %arg3[%c0_3, %c0_4] : memref<1x256xf32, #tpu.memory_space<vmem>>, vector<1x256xf32>
    %4 = vector.broadcast %3 : vector<1x256xf32> to vector<2x256xf32>
    %5 = arith.addf %2, %4 : vector<2x256xf32>
    %cst_5 = arith.constant 5.000000e-01 : f32
    %6 = vector.broadcast %cst_5 : f32 to vector<2x256xf32>
    %7 = arith.mulf %6, %5 : vector<2x256xf32>
    %cst_6 = arith.constant 4.471500e-02 : f32
    %8 = vector.broadcast %cst_6 : f32 to vector<2x256xf32>
    %9 = arith.mulf %8, %5 : vector<2x256xf32>
    %10 = arith.mulf %9, %5 : vector<2x256xf32>
    %11 = arith.mulf %10, %5 : vector<2x256xf32>
    %12 = arith.addf %5, %11 : vector<2x256xf32>
    %cst_7 = arith.constant 0.797884583 : f32
    %13 = vector.broadcast %cst_7 : f32 to vector<2x256xf32>
    %14 = arith.mulf %13, %12 : vector<2x256xf32>
    %15 = math.tanh %14 : vector<2x256xf32>
    %cst_8 = arith.constant 1.000000e+00 : f32
    %16 = vector.broadcast %cst_8 : f32 to vector<2x256xf32>
    %17 = arith.addf %16, %15 : vector<2x256xf32>
    %18 = arith.mulf %7, %17 : vector<2x256xf32>
    %cst_9 = arith.constant dense<0.000000e+00> : vector<2xf32>
    %19 = vector.multi_reduction <add>, %18, %cst_9 [1] : vector<2x256xf32> to vector<2xf32>
    %20 = vector.shape_cast %19 : vector<2xf32> to vector<2x1xf32>
    %cst_10 = arith.constant 2.560000e+02 : f32
    %21 = vector.broadcast %cst_10 : f32 to vector<2x1xf32>
    %22 = arith.divf %20, %21 : vector<2x1xf32>
    %23 = vector.broadcast %22 : vector<2x1xf32> to vector<2x256xf32>
    %24 = arith.subf %18, %23 : vector<2x256xf32>
    %25 = arith.mulf %24, %24 : vector<2x256xf32>
    %cst_11 = arith.constant dense<0.000000e+00> : vector<2xf32>
    %26 = vector.multi_reduction <add>, %25, %cst_11 [1] : vector<2x256xf32> to vector<2xf32>
    %27 = vector.shape_cast %26 : vector<2xf32> to vector<2x1xf32>
    %cst_12 = arith.constant 2.560000e+02 : f32
    %28 = vector.broadcast %cst_12 : f32 to vector<2x1xf32>
    %29 = arith.divf %27, %28 : vector<2x1xf32>
    %30 = vector.broadcast %22 : vector<2x1xf32> to vector<2x256xf32>
    %31 = arith.subf %18, %30 : vector<2x256xf32>
    %cst_13 = arith.constant 9.99999974E-6 : f32
    %32 = vector.broadcast %cst_13 : f32 to vector<2x1xf32>
    %33 = arith.addf %29, %32 : vector<2x1xf32>
    %34 = math.rsqrt %33 : vector<2x1xf32>
    %35 = vector.broadcast %34 : vector<2x1xf32> to vector<2x256xf32>
    %36 = arith.mulf %31, %35 : vector<2x256xf32>
    %c0_14 = arith.constant 0 : index
    %c0_15 = arith.constant 0 : index
    %37 = vector.load %arg4[%c0_14, %c0_15] : memref<1x256xf32, #tpu.memory_space<vmem>>, vector<1x256xf32>
    %38 = vector.broadcast %37 : vector<1x256xf32> to vector<2x256xf32>
    %39 = arith.mulf %36, %38 : vector<2x256xf32>
    %c0_16 = arith.constant 0 : index
    %c0_17 = arith.constant 0 : index
    %40 = vector.load %arg5[%c0_16, %c0_17] : memref<1x256xf32, #tpu.memory_space<vmem>>, vector<1x256xf32>
    %41 = vector.broadcast %40 : vector<1x256xf32> to vector<2x256xf32>
    %42 = arith.addf %39, %41 : vector<2x256xf32>
    %43 = arith.truncf %42 : vector<2x256xf32> to vector<2x256xbf16>
    %c0_18 = arith.constant 0 : index
    %c0_19 = arith.constant 0 : index
    %44 = vector.load %arg6[%c0_18, %c0_19] : memref<256x2xbf16, #tpu.memory_space<vmem>>, vector<256x2xbf16>
    %cst_20 = arith.constant dense<0.000000e+00> : vector<2x2xf32>
    %45 = tpu.matmul %43, %44, %cst_20 {dimension_numbers = #tpu.dot_dimension_numbers<[1], [0], [0], [1], [0, 0, 1, 1], [], []>} : vector<2x256xbf16>, vector<256x2xbf16>, vector<2x2xf32> -> vector<2x2xf32>
    %c0_21 = arith.constant 0 : index
    %c0_22 = arith.constant 0 : index
    %46 = vector.load %arg7[%c0_21, %c0_22] : memref<1x2xf32, #tpu.memory_space<vmem>>, vector<1x2xf32>
    %47 = vector.broadcast %46 : vector<1x2xf32> to vector<2x2xf32>
    %48 = arith.addf %45, %47 : vector<2x2xf32>
    %c0_23 = arith.constant 0 : index
    %c0_24 = arith.constant 0 : index
    %49 = vector.load %arg9[%c0_23, %c0_24] : memref<2x2xf32, #tpu.memory_space<vmem>>, vector<2x2xf32>
    tpu.vector_store %arg9[%c0_23, %c0_24], %48 {strides = array<i32>} : memref<2x2xf32, #tpu.memory_space<vmem>>, vector<2x2xf32>,
    %c0_25 = arith.constant 0 : index
    %c0_26 = arith.constant 0 : index
    %50 = vector.load %arg8[%c0_25, %c0_26] : memref<2x1xi32, #tpu.memory_space<vmem>>, vector<2x1xi32>
    %51 = tpu.iota {dimensions = array<i32: 1>} : vector<2x2xi32>
    %52 = vector.broadcast %50 : vector<2x1xi32> to vector<2x2xi32>
    %53 = arith.cmpi eq, %51, %52 : vector<2x2xi32>
    %54 = arith.extui %53 : vector<2x2xi1> to vector<2x2xi32>
    %55 = arith.sitofp %54 : vector<2x2xi32> to vector<2x2xf32>
    %cst_27 = arith.constant dense<0xFF800000> : vector<2xf32>
    %56 = vector.multi_reduction <maximumf>, %48, %cst_27 [1] : vector<2x2xf32> to vector<2xf32>
    %57 = vector.shape_cast %56 : vector<2xf32> to vector<2x1xf32>
    %58 = vector.broadcast %57 : vector<2x1xf32> to vector<2x2xf32>
    %59 = arith.subf %48, %58 : vector<2x2xf32>
    %60 = math.exp %59 : vector<2x2xf32>
    %cst_28 = arith.constant dense<0.000000e+00> : vector<2xf32>
    %61 = vector.multi_reduction <add>, %60, %cst_28 [1] : vector<2x2xf32> to vector<2xf32>
    %62 = vector.shape_cast %61 : vector<2xf32> to vector<2x1xf32>
    %63 = math.log %62 : vector<2x1xf32>
    %64 = arith.addf %63, %57 : vector<2x1xf32>
    %65 = vector.broadcast %64 : vector<2x1xf32> to vector<2x2xf32>
    %66 = arith.subf %48, %65 : vector<2x2xf32>
    %67 = arith.mulf %66, %55 : vector<2x2xf32>
    %cst_29 = arith.constant dense<0.000000e+00> : vector<2xf32>
    %68 = vector.multi_reduction <add>, %67, %cst_29 [1] : vector<2x2xf32> to vector<2xf32>
    %69 = vector.shape_cast %68 : vector<2xf32> to vector<2x1xf32>
    %cst_30 = arith.constant 0.000000e+00 : f32
    %70 = vector.broadcast %cst_30 : f32 to vector<2x1xf32>
    %71 = arith.subf %70, %69 : vector<2x1xf32>
    %cst_31 = arith.constant dense<0.000000e+00> : vector<1xf32>
    %72 = vector.multi_reduction <add>, %71, %cst_31 [0] : vector<2x1xf32> to vector<1xf32>
    %73 = vector.shape_cast %72 : vector<1xf32> to vector<1x1xf32>
    %cst_32 = arith.constant 2.000000e+00 : f32
    %74 = vector.broadcast %cst_32 : f32 to vector<1x1xf32>
    %75 = arith.divf %73, %74 : vector<1x1xf32>
    %c0_33 = arith.constant 0 : index
    %c0_34 = arith.constant 0 : index
    %76 = vector.load %arg10[%c0_33, %c0_34] : memref<1x1xf32, #tpu.memory_space<vmem>>, vector<1x1xf32>
    tpu.vector_store %arg10[%c0_33, %c0_34], %75 {strides = array<i32>} : memref<1x1xf32, #tpu.memory_space<vmem>>, vector<1x1xf32>,
    %77 = vector.broadcast %57 : vector<2x1xf32> to vector<2x2xf32>
    %78 = arith.cmpf oeq, %48, %77 : vector<2x2xf32>
    %c2_i32 = arith.constant 2 : i32
    %79 = vector.broadcast %c2_i32 : i32 to vector<2x2xi32>
    %80 = arith.select %78, %51, %79 : vector<2x2xi1>, vector<2x2xi32>
    %cst_35 = arith.constant dense<2147483647> : vector<2xi32>
    %81 = vector.multi_reduction <minsi>, %80, %cst_35 [1] : vector<2x2xi32> to vector<2xi32>
    %82 = vector.shape_cast %81 : vector<2xi32> to vector<2x1xi32>
    %83 = arith.cmpi eq, %82, %50 : vector<2x1xi32>
    %84 = arith.extui %83 : vector<2x1xi1> to vector<2x1xi32>
    %cst_36 = arith.constant dense<0> : vector<1xi32>
    %85 = vector.multi_reduction <add>, %84, %cst_36 [0] : vector<2x1xi32> to vector<1xi32>
    %86 = vector.shape_cast %85 : vector<1xi32> to vector<1x1xi32>
    %c0_37 = arith.constant 0 : index
    %c0_38 = arith.constant 0 : index
    %87 = vector.load %arg11[%c0_37, %c0_38] : memref<1x1xi32, #tpu.memory_space<vmem>>, vector<1x1xi32>
    tpu.vector_store %arg11[%c0_37, %c0_38], %86 {strides = array<i32>} : memref<1x1xi32, #tpu.memory_space<vmem>>, vector<1x1xi32>,
    return
  }
  func.func @transform_0(%arg0: i32) -> (i32, i32) {
    %c0_i32 = arith.constant 0 : i32
    %c0_i32_0 = arith.constant 0 : i32
    %c0_i32_1 = arith.constant 0 : i32
    return %c0_i32, %c0_i32_0 : i32, i32
  }
  func.func @transform_1(%arg0: i32) -> (i32, i32) {
    %c0_i32 = arith.constant 0 : i32
    %c0_i32_0 = arith.constant 0 : i32
    %c0_i32_1 = arith.constant 0 : i32
    return %c0_i32, %c0_i32_0 : i32, i32
  }
  func.func @transform_2(%arg0: i32) -> (i32, i32) {
    %c0_i32 = arith.constant 0 : i32
    %c0_i32_0 = arith.constant 0 : i32
    %c0_i32_1 = arith.constant 0 : i32
    return %c0_i32, %c0_i32_0 : i32, i32
  }
  func.func @transform_3(%arg0: i32) -> (i32, i32) {
    %c0_i32 = arith.constant 0 : i32
    %c0_i32_0 = arith.constant 0 : i32
    %c0_i32_1 = arith.constant 0 : i32
    return %c0_i32, %c0_i32_0 : i32, i32
  }
  func.func @transform_4(%arg0: i32) -> (i32, i32) {
    %c0_i32 = arith.constant 0 : i32
    %c0_i32_0 = arith.constant 0 : i32
    %c0_i32_1 = arith.constant 0 : i32
    return %c0_i32, %c0_i32_0 : i32, i32
  }
  func.func @transform_5(%arg0: i32) -> (i32, i32) {
    %c0_i32 = arith.constant 0 : i32
    %c0_i32_0 = arith.constant 0 : i32
    %c0_i32_1 = arith.constant 0 : i32
    return %c0_i32, %c0_i32_0 : i32, i32
  }
  func.func @transform_6(%arg0: i32) -> (i32, i32) {
    %c0_i32 = arith.constant 0 : i32
    %c0_i32_0 = arith.constant 0 : i32
    %c0_i32_1 = arith.constant 0 : i32
    return %c0_i32, %c0_i32_0 : i32, i32
  }
  func.func @transform_7(%arg0: i32) -> (i32, i32) {
    %c0_i32 = arith.constant 0 : i32
    %c0_i32_0 = arith.constant 0 : i32
    %c0_i32_1 = arith.constant 0 : i32
    return %c0_i32, %c0_i32_0 : i32, i32
  }
  func.func @transform_8(%arg0: i32) -> (i32, i32) {
    %c0_i32 = arith.constant 0 : i32
    %c0_i32_0 = arith.constant 0 : i32
    %c0_i32_1 = arith.constant 0 : i32
    return %c0_i32, %c0_i32_0 : i32, i32
  }
  func.func @transform_9(%arg0: i32) -> (i32, i32) {
    %c0_i32 = arith.constant 0 : i32
    %c0_i32_0 = arith.constant 0 : i32
    %c0_i32_1 = arith.constant 0 : i32
    return %c0_i32, %c0_i32_0 : i32, i32
  }
  func.func @transform_10(%arg0: i32) -> (i32, i32) {
    %c0_i32 = arith.constant 0 : i32
    %c0_i32_0 = arith.constant 0 : i32
    %c0_i32_1 = arith.constant 0 : i32
    return %c0_i32, %c0_i32_0 : i32, i32
  }
}

</mosaic_0001>

<bundles_post_ra>
// kernel: _forward_jit.12
= control target key start
LH: loop header
LB: loop body
LE: loop exit
PB: predicated region body
PF: predicated region fallthrough
CT: control target
= control target key end

     0   :  { %8 = vsyncpa [#allocation3], 0  ;;  %s245_s0 = inlined_call_operand.vmem [shape: bf16[16,256], index: 0, kind: input, shape index: {}]   ;;  %s246_s1 = inlined_call_operand.hbm [shape: f32[1,256], index: 1, kind: input, shape index: {}]   ;;  %s247_s2 = inlined_call_operand.hbm [shape: f32[1,256], index: 2, kind: input, shape index: {}]   ;;  %s248_s3 = inlined_call_operand.vmem [shape: bf16[16,256], index: 3, kind: output, shape index: {}]  }
   0x1   :  { %9 = vsyncpa [#allocation5], 0  ;;  %s187_s12 = smov [#allocation2]   ;;  %s188_s14 = smov [#allocation4]  }
   0x2   :  { %s18_s13 = sshll.u32 %s187_s12, 4  ;;  %s28_s15 = sshll.u32 %s188_s14, 4  ;;  %s19_s13 = int_to_ptr.vmem [resolvable:$true] %s18_s13  ;;  %s29_s15 = int_to_ptr.vmem [resolvable:$true] %s28_s15 }
   0x3   :  { %s139_s18 = scalar_lea.hbm %s246_s1, 32 }
   0x4   :  { %p140_p0 = scmp.ne.s32.totalorder %s246_s1, %s139_s18  ;;  %p143_p1 = scmp.lt.u32.totalorder %s139_s18, %s246_s1 }
   0x6   :  { %p145_p2 = pnand %p143_p1, %p140_p0 }
   0x8   :  { %148 = shalt.err (!%p145_p2)
}
   0x9   :  { %s149_s23 = scalar_lea.vmem %s19_s13, 32  ;;  %p154_p4 = scmp.lt.s32.totalorder %s19_s13, %s19_s13 }
   0xa   :  { %p150_p3 = scmp.ne.s32.totalorder %s19_s13, %s149_s23  ;;  %p155_p5 = scmp.lt.s32.totalorder %s149_s23, %s149_s23 }
   0xc   :  { %p156_p6 = por %p155_p5, %p154_p4 }
   0xe   :  { %p157_p7 = pnand %p156_p6, %p150_p3 }
  0x10   :  { %160 = shalt.err (!%p157_p7)
}
  0x11   :  { %21 = dma.hbm_to_vmem [thread:$0]  %s246_s1, 32, %s19_s13, [#allocation3]  }
  0x12   :  { %s161_s28 = scalar_lea.hbm %s247_s2, 32 }
  0x13   :  { %p162_p8 = scmp.ne.s32.totalorder %s247_s2, %s161_s28  ;;  %p165_p9 = scmp.lt.u32.totalorder %s161_s28, %s247_s2 }
  0x15   :  { %p167_p10 = pnand %p165_p9, %p162_p8 }
  0x17   :  { %170 = shalt.err (!%p167_p10)
}
  0x18   :  { %s171_s6 = scalar_lea.vmem %s29_s15, 32  ;;  %p176_p12 = scmp.lt.s32.totalorder %s29_s15, %s29_s15 }
  0x19   :  { %p172_p11 = scmp.ne.s32.totalorder %s29_s15, %s171_s6  ;;  %p177_p13 = scmp.lt.s32.totalorder %s171_s6, %s171_s6 }
  0x1b   :  { %p178_p0 = por %p177_p13, %p176_p12 }
  0x1d   :  { %p179_p1 = pnand %p178_p0, %p172_p11 }
  0x1f   :  { %182 = shalt.err (!%p179_p1)
}
  0x20   :  { %31 = dma.hbm_to_vmem [thread:$0]  %s247_s2, 32, %s29_s15, [#allocation5]  }
  0x21   :  { %183 = dma.done.wait [#allocation3], 32  }
  0x22   :  { %184 = vsyncadd [#allocation3], 4294967264 }
  0x23   :  { %185 = dma.done.wait [#allocation5], 32  }
  0x24   :  { %186 = vsyncadd [#allocation5], 4294967264  ;;  %v38_v0 = vld [vmem:[%s245_s0] sm:$0xff]  ;;  %v39_v1 = vld [vmem:[%s245_s0 + $0x8] sm:$0xff]  ;;  %v79_v24 = vlaneseq }
  0x25   :  { %v40_v2 = vunpack.c.l.bf16 %v38_v0  ;;  %v41_v3 = vunpack.c.h.bf16 %v38_v0  ;;  %v42_v4 = vunpack.c.l.bf16 %v39_v1  ;;  %v43_v5 = vunpack.c.h.bf16 %v39_v1  ;;  %v77_v32 = vld [vmem:[#allocation2] sm:$0x3]  ;;  %v93_v33 = vld [vmem:[#allocation4] sm:$0x3] }
  0x26   :  { %v80_v28 = vshrl.u32 %v79_v24, 7 }
  0x27   :  { %v44_v6 = vadd.f32 %v41_v3, %v40_v2  ;;  %v47_v7 = vadd.f32 %v43_v5, %v42_v4 }
  0x28   :  { %v81_v30 = vsub.s32 0, %v80_v28  ;;  %v85_v31 = vsub.s32 1, %v80_v28 }
  0x29   :  { %45 = vadd.xlane.f32.xlu0 %v44_v6 }
  0x2a   :  { %v82_v34 = vrot.slane %v77_v32, %v81_v30  ;;  %v86_v35 = vrot.slane %v77_v32, %v85_v31  ;;  %v98_v37 = vrot.slane %v93_v33, %v81_v30  ;;  %v102_v38 = vrot.slane %v93_v33, %v85_v31 }
  0x2d   :  { %48 = vadd.xlane.f32.xlu0 %v47_v7 }
  0xb6   :  { %v46_v8 = vpop.xlane.xlu0 %45 }
  0xb7   :  { %v51_v9 = vmul.f32 0.00390625, %v46_v8 }
  0xb9   :  { %v53_v10 = vsub.f32 %v40_v2, %v51_v9  ;;  %v54_v11 = vsub.f32 %v41_v3, %v51_v9 }
  0xba   :  { %v49_v12 = vpop.xlane.xlu0 %48 }
  0xbb   :  { %v52_v13 = vmul.f32 0.00390625, %v49_v12  ;;  %v57_v14 = vmul.f32 %v53_v10, %v53_v10  ;;  %v58_v15 = vmul.f32 %v54_v11, %v54_v11 }
  0xbd   :  { %v55_v16 = vsub.f32 %v42_v4, %v52_v13  ;;  %v56_v17 = vsub.f32 %v43_v5, %v52_v13  ;;  %v61_v18 = vadd.f32 %v58_v15, %v57_v14 }
  0xbf   :  { %62 = vadd.xlane.f32.xlu1 %v61_v18  ;;  %v59_v19 = vmul.f32 %v55_v16, %v55_v16  ;;  %v60_v20 = vmul.f32 %v56_v17, %v56_v17 }
  0xc1   :  { %v64_v21 = vadd.f32 %v60_v20, %v59_v19 }
  0xc3   :  { %65 = vadd.xlane.f32.xlu1 %v64_v21 }
 0x14c   :  { %v63_v22 = vpop.xlane.xlu1 %62 }
 0x14d   :  { %v67_v23 = vmul.f32 0.00390625, %v63_v22 }
 0x14f   :  { %v69_v25 = vadd.f32 1e-05, %v67_v23 }
 0x150   :  { %v66_v26 = vpop.xlane.xlu1 %65 }
 0x151   :  { %135 = vrsqrt.f32 %v69_v25  ;;  %v68_v27 = vmul.f32 0.00390625, %v66_v26 }
 0x153   :  { %v70_v29 = vadd.f32 1e-05, %v68_v27 }
 0x155   :  { %137 = vrsqrt.f32 %v70_v29 }
 0x15b   :  { %v136_v36 = vpop.eup %135 }
 0x15c   :  { %v73_v39 = vmul.f32 %v136_v36, %v53_v10  ;;  %v74_v40 = vmul.f32 %v136_v36, %v54_v11 }
 0x15e   :  { %v89_v41 = vmul.f32 %v82_v34, %v73_v39  ;;  %v90_v42 = vmul.f32 %v86_v35, %v74_v40 }
 0x15f   :  { %v138_v43 = vpop.eup %137 }
 0x160   :  { %v105_v44 = vadd.f32 %v98_v37, %v89_v41  ;;  %v106_v45 = vadd.f32 %v102_v38, %v90_v42  ;;  %v75_v46 = vmul.f32 %v138_v43, %v55_v16  ;;  %v76_v47 = vmul.f32 %v138_v43, %v56_v17 }
 0x162   :  { %v131_v48 = vpack.c.bf16 %v106_v45, %v105_v44  ;;  %v91_v49 = vmul.f32 %v82_v34, %v75_v46  ;;  %v92_v50 = vmul.f32 %v86_v35, %v76_v47 }
 0x164   :  { %121 = vst [vmem:[%s248_s3] sm:$0xff] %v131_v48  ;;  %v107_v51 = vadd.f32 %v98_v37, %v91_v49  ;;  %v108_v52 = vadd.f32 %v102_v38, %v92_v50 }
 0x166   :  { %v132_v53 = vpack.c.bf16 %v108_v52, %v107_v51 }
 0x168   :  { %122 = vst [vmem:[%s248_s3 + $0x8] sm:$0xff] %v132_v53 }
 0x169   :  { %127 = vsyncpa [#allocation3], 1 }
 0x16a   :  { %128 = vsyncpa [#allocation5], 1 }

// kernel: _forward_jit.14
= control target key start
LH: loop header
LB: loop body
LE: loop exit
PB: predicated region body
PF: predicated region fallthrough
CT: control target
= control target key end

     0   :  { %s873_s15 = smov 0   ;;  %s875_s16 = smov 0   ;;  %s980_s0 = inlined_call_operand.vmem [shape: bf16[2,8,768], index: 0, kind: input, shape index: {}, may-alias: {0,1,2}]   ;;  %s981_s1 = inlined_call_operand.vmem [shape: bf16[2,8,768], index: 1, kind: input, shape index: {}, may-alias: {0,1,2}]   ;;  %s982_s2 = inlined_call_operand.vmem [shape: bf16[2,8,768], index: 2, kind: input, shape index: {}, may-alias: {0,1,2}]   ;;  %s983_s3 = inlined_call_operand.vmem [shape: f32[2,1,8], index: 3, kind: input, shape index: {}]   ;;  %s984_s4 = inlined_call_operand.vmem [shape: bf16[2,8,256], index: 4, kind: output, shape index: {}]  }
   0x1   :  { %s877_s17 = smov 0   ;;  %s879_s18 = smov 0  }
   0x2   :  { %s881_s19 = smov 0  }
   0x3 LB: > { %s23_s20 = sadd.s32 1, %s835_s17  ;;  %s26_s21 = sadd.s32 1, %s839_s18  ;;  %s843_s19 = sphi %s881_s19, %s14_s19   ;;  %s839_s18 = sphi %s879_s18, %s988_s18   ;;  %s835_s17 = sphi %s877_s17, %s987_s17   ;;  %s831_s16 = sphi %s875_s16, %s986_s16   ;;  %s827_s15 = sphi %s873_s15, %s985_s15  }
   0x4   : > { %p24_p0 = scmp.ge.s32.totalorder %s23_s20, 2  ;;  %p702_p1 = scmp.ge.s32.totalorder %s843_s19, 1 }
   0x5   : > { %p227_p2 = scmp.lt.s32.totalorder %s843_s19, 5 }
   0x6   : > { %s990_s20 = smov (%p24_p0, %s23_s20), 0  ;;  %s992_s21 = smov (!%p24_p0, %s26_s21), %s839_s18 }
   0x7   : > { %p228_p3 = pnand %p702_p1, %p227_p2  ;;  %p28_p4 = scmp.ge.s32.totalorder %s992_s21, 2 }
   0x8   : > { %p280_p5 = scmp.lt.s32.totalorder (!%p228_p3), %s831_s16, 1  ;;  %s288_s22 = sadd.s32 (!%p228_p3), 2, %s827_s15  ;;  %v845_v0 = vmov (!%p228_p3), 0.0   ;;  %vm846_vm0 = vmmov (!%p228_p3), 0   ;;  %vm324_vm1 = vcmask (!%p228_p3), 523264   ;;  %vm379_vm2 = vcmask (!%p228_p3), 64512  }
   0x9   : > { %s994_s21 = smov (%p28_p4, %s992_s21), 0  ;;  %231 = sbr.rel (%p228_p3) target bundleno = 1434 (0x59a), region = 36 }
   0xa   : > { %726 = vmatprep.subr.bf16.mxu0 (!%p228_p3), %v845_v0  ;;  %p291_p6 = scmp.lt.s32.totalorder (!%p228_p3), %s288_s22, 5  ;;  %728 = vmatprep.mubr.msk.bf16.mxu0 (!%p228_p3), %vm846_vm0, %v845_v0  ;;  %p282_p7 = scmp.lt.s32.totalorder (!%p228_p3), %s827_s15, 5  ;;  %vm395_vm3 = vcmask (!%p228_p3), 1043456  }
   0xb   : > { %732 = vmatprep.subr.bf16.mxu1 (!%p228_p3), %v845_v0  ;;  %734 = vmatprep.mubr.msk.bf16.mxu1 (!%p228_p3), %vm846_vm0, %v845_v0  ;;  %s847_s12 = smov (!%p228_p3), 64   ;;  %s298_s13 = sadd.s32 (!%p228_p3), 4, %s827_s15 }
   0xc   : > { %p301_p8 = scmp.lt.s32.totalorder (!%p228_p3), %s298_s13, 5  ;;  %p313_p9 = scmp.lt.s32.totalorder (!%p228_p3), %s827_s15, 1 }
  0x10   : > { %s996_s16 = smov (!%p280_p5, %s831_s16), 1  ;;  %s998_s22 = smov (!%p291_p6, %s288_s22), 5 }
  0x11   : > { %s916_s23 = smul.u32 6, %s996_s16  ;;  %s310_s11 = scalar_lea.vmem %s983_s3, %s996_s16 }
  0x12   : > { %s283_s24 = scalar_select %p282_p7, %s827_s15, 5  ;;  %v709_v5 = vld [vmem:[%s310_s11] ss:$0 sm:$0xff] }
  0x13   : > { %s294_s25 = sadd.s32 %s916_s23, %s998_s22  ;;  %s1000_s13 = smov (!%p301_p8, %s298_s13), 5 }
  0x14   : > { %s704_s26 = sshll.u32 %s294_s25, 2  ;;  %s285_s27 = sadd.s32 %s916_s23, %s283_s24 }
  0x15   : > { %s296_s30 = scalar_lea.vmem %s981_s1, %s704_s26  ;;  %s703_s5 = sshll.u32 %s285_s27, 2 }
  0x16   : > { %v322_v1 = vld [vmem:[%s296_s30] sm:$0xf]  ;;  %s287_s8 = scalar_lea.vmem %s980_s0, %s703_s5  ;;  %s304_s14 = sadd.s32 %s916_s23, %s1000_s13 }
  0x17   : > { %v329_v2 = vsel %vm324_vm1, %v322_v1, 0  ;;  %v321_v3 = vld [vmem:[%s287_s8] sm:$0xf]  ;;  %v712_v12 = vcombine.low %v322_v1, %v322_v1  ;;  %s705_s22 = sshll.u32 %s304_s14, 2  ;;  %s1002_s15 = smov (!%p313_p9, %s827_s15), 1 }
  0x18   : > { %727 = vmatpush3.bf16.xpose.msra.mxu0 %v329_v2  ;;  %v711_v13 = vcombine.low %v321_v3, %v321_v3  ;;  %s306_s26 = scalar_lea.vmem %s982_s2, %s705_s22  ;;  %s706_s23 = sshll.u32 %s996_s16, 1 }
  0x19   : > { %744 = vmatprep.subr.bf16.mxu0 %v845_v0  ;;  %447 = vrot.lane.b32.xlu1 %v712_v12, %s847_s12  ;;  %v323_v19 = vld [vmem:[%s306_s26] sm:$0xf]  ;;  %s316_s27 = sadd.s32 %s706_s23, %s1002_s15 }
  0x1a   : > { %v397_v20 = vsel %vm395_vm3, %v323_v19, 0  ;;  %v714_v39 = vcombine.low %v323_v19, %v323_v19  ;;  %s707_s28 = sshll.u32 %s316_s27, 2 }
  0x1b   : > { %733 = vmatpush3.bf16.msra.mxu1 %v397_v20  ;;  %s318_s5 = scalar_lea.vmem %s984_s4, %s707_s28 }
  0x1c   : > { %738 = vmatprep.subr.bf16.mxu1 %v845_v0 }
  0x1d   : > { %442 = vrot.lane.b32.xlu1 %v711_v13, %s847_s12 }
  0x1f   : > { %729 = vmatmul.mubr.msk.bf16.vlgmr.msra.gmra.mrb[0].mxu0 %vm324_vm1, %v321_v3 }
  0x20   : > { %746 = vmatprep.mubr.msk.bf16.mxu0 %vm846_vm0, %v845_v0 }
  0x8b   : > { %v448_v23 = vpop.permute.xlu1 %447 }
  0x8c   : > { %v453_v25 = vsel %vm324_vm1, %v448_v23, 0 }
  0x8f   : > { %v443_v27 = vpop.permute.xlu1 %442 }
  0xf2   : > { %v365_v4 = vpop.f32.mrb[0].mxu0 }
  0xf3   : > { %v371_v6 = vmul.f32 0.125, %v365_v4  ;;  %v730_v7 = vpop.f32.mrb[1].mxu0 }
  0xf4   : > { %v368_v8 = vpop.f32.mrb[2].mxu0 }
  0xf5   : > { %v731_v9 = vpop.f32.mrb[3].mxu0  ;;  %v378_v10 = vadd.f32 %v709_v5, %v371_v6 }
  0xf7   : > { %v380_v11 = vsel %vm379_vm2, %v378_v10, -inf }
  0xf8   : > { %381 = vmax.xlane.f32.xlu0 %v380_v11 }
 0x185   : > { %v382_v14 = vpop.xlane.xlu0 %381 }
 0x186   : > { %v383_v15 = vsub.f32 %v378_v10, %v382_v14 }
 0x188   : > { %v384_v16 = vmul.f32 1.442695, %v383_v15 }
 0x18a   : > { %797 = vpow2.f32 %v384_v16 }
 0x194   : > { %v798_v17 = vpop.eup %797 }
 0x195   : > { %v386_v18 = vsel %vm379_vm2, %v798_v17, 0.0 }
 0x196   : > { %387 = vadd.xlane.f32.xlu0 %v386_v18 }
 0x223   : > { %v388_v21 = vpop.xlane.xlu0 %387 }
 0x224   : > { %799 = vrcp.f32 %v388_v21 }
 0x22e   : > { %v800_v22 = vpop.eup %799 }
 0x22f   : > { %v390_v24 = vmul.f32 %v800_v22, %v798_v17 }
 0x231   : > { %v391_v26 = vpack.c.bf16 %v390_v24, %v390_v24 }
 0x233   : > { %735 = vmatmul.mubr.msk.bf16.vlgmr.msra.gmra.mrb[0].mxu1 %vm379_vm2, %v391_v26 }
 0x234   : > { %739 = vmatpush3.bf16.xpose.msra.mxu1 %v453_v25  ;;  %740 = vmatprep.mubr.msk.bf16.mxu1 %vm846_vm0, %v845_v0 }
 0x23b   : > { %741 = vmatmul.mubr.msk.bf16.vlgmr.msra.gmra.mrb[4].mxu1 %vm324_vm1, %v443_v27 }
 0x306   : > { %v433_v28 = vpop.f32.mrb[0].mxu1 }
 0x307   : > { %v736_v29 = vpop.f32.mrb[1].mxu1 }
 0x308   : > { %v436_v30 = vpop.f32.mrb[2].mxu1 }
 0x309   : > { %v737_v31 = vpop.f32.mrb[3].mxu1 }
 0x30e   : > { %v489_v32 = vpop.f32.mrb[4].mxu1 }
 0x30f   : > { %v495_v33 = vmul.f32 0.125, %v489_v32  ;;  %v742_v34 = vpop.f32.mrb[5].mxu1 }
 0x310   : > { %v492_v35 = vpop.f32.mrb[6].mxu1 }
 0x311   : > { %v743_v36 = vpop.f32.mrb[7].mxu1  ;;  %v496_v37 = vadd.f32 %v709_v5, %v495_v33 }
 0x313   : > { %v497_v38 = vsel %vm379_vm2, %v496_v37, -inf }
 0x314   : > { %498 = vmax.xlane.f32.xlu0 %v497_v38 }
 0x32a   : > { %512 = vrot.lane.b32.xlu0 %v714_v39, %s847_s12 }
 0x3a1   : > { %v499_v40 = vpop.xlane.xlu0 %498 }
 0x3a2   : > { %v500_v41 = vsub.f32 %v496_v37, %v499_v40 }
 0x3a4   : > { %v501_v42 = vmul.f32 1.442695, %v500_v41 }
 0x3a5   : > { %v513_v45 = vpop.permute.xlu0 %512 }
 0x3a6   : > { %801 = vpow2.f32 %v501_v42  ;;  %v518_v46 = vsel %vm395_vm3, %v513_v45, 0 }
 0x3a7   : > { %745 = vmatpush3.bf16.msra.mxu0 %v518_v46 }
 0x3b0   : > { %v802_v43 = vpop.eup %801 }
 0x3b1   : > { %v503_v44 = vsel %vm379_vm2, %v802_v43, 0.0 }
 0x3b2   : > { %504 = vadd.xlane.f32.xlu1 %v503_v44 }
 0x43f   : > { %v505_v47 = vpop.xlane.xlu1 %504 }
 0x440   : > { %803 = vrcp.f32 %v505_v47 }
 0x44a   : > { %v804_v48 = vpop.eup %803 }
 0x44b   : > { %v507_v49 = vmul.f32 %v804_v48, %v802_v43 }
 0x44d   : > { %v508_v50 = vpack.c.bf16 %v507_v49, %v507_v49 }
 0x44f   : > { %747 = vmatmul.mubr.msk.bf16.vlgmr.msra.gmra.mrb[4].mxu0 %vm379_vm2, %v508_v50 }
 0x522   : > { %v554_v51 = vpop.f32.mrb[4].mxu0 }
 0x523   : > { %561 = vrot.lane.b32.xlu0 %v554_v51, %s847_s12  ;;  %v748_v52 = vpop.f32.mrb[5].mxu0 }
 0x524   : > { %v557_v53 = vpop.f32.mrb[6].mxu0 }
 0x525   : > { %v749_v54 = vpop.f32.mrb[7].mxu0 }
 0x595   : > { %v562_v55 = vpop.permute.xlu0 %561 }
 0x596   : > { %v564_v56 = vsel %vm324_vm1, %v433_v28, %v562_v55 }
 0x597   : > { %v565_v57 = vpack.c.bf16 %v564_v56, %v564_v56 }
 0x599   : > { %566 = vst [vmem:[%s318_s5] sm:$0xf] %v565_v57 }
 0x59a PF: > { %s14_s19 = sadd.s32 1, %s843_s19   ;;  %s985_s15 = smov %s835_s17 }
 0x59b   : > { %p11_p10 = scmp.ge.s32.totalorder %s14_s19, 6   ;;  %s986_s16 = smov %s839_s18 }
 0x59c   : > { %s987_s17 = smov %s990_s20  ;;  %s988_s18 = smov %s994_s21 }
 0x59d   :  { %13 = sbr.rel (!%p11_p10) target bundleno = 3 (0x3), region = 75 }

// kernel: _forward_jit.15
= control target key start
LH: loop header
LB: loop body
LE: loop exit
PB: predicated region body
PF: predicated region fallthrough
CT: control target
= control target key end

     0   :  { %11 = vsyncpa [#allocation3], 0  ;;  %s734_s0 = inlined_call_operand.vmem [shape: bf16[16,256], index: 0, kind: input, shape index: {}]   ;;  %s735_s1 = inlined_call_operand.hbm [shape: bf16[256,256], index: 1, kind: input, shape index: {}]   ;;  %s736_s2 = inlined_call_operand.hbm [shape: f32[1,256], index: 2, kind: input, shape index: {}]   ;;  %s737_s3 = inlined_call_operand.vmem [shape: bf16[16,256], index: 3, kind: input, shape index: {}]   ;;  %s738_s4 = inlined_call_operand.hbm [shape: f32[1,256], index: 4, kind: input, shape index: {}]   ;;  %s739_s5 = inlined_call_operand.hbm [shape: f32[1,256], index: 5, kind: input, shape index: {}]   ;;  %s740_s6 = inlined_call_operand.vmem [shape: bf16[16,256], index: 6, kind: output, shape index: {}]  }
   0x1   :  { %12 = vsyncpa [#allocation5], 0 }
   0x2   :  { %13 = vsyncpa [#allocation8], 0  ;;  %s620_s21 = smov [#allocation4]   ;;  %s621_s23 = smov [#allocation2]  }
   0x3   :  { %s34_s22 = sshll.u32 %s620_s21, 4  ;;  %s21_s24 = sshll.u32 %s621_s23, 4  ;;  %s35_s22 = int_to_ptr.vmem [resolvable:$true] %s34_s22  ;;  %s661_s24 = int_to_ptr.vmem [resolvable:$true] %s21_s24 }
   0x4   :  { %s526_s27 = scalar_lea.hbm %s736_s2, 32 }
   0x5   :  { %p527_p0 = scmp.ne.s32.totalorder %s736_s2, %s526_s27  ;;  %p530_p1 = scmp.lt.u32.totalorder %s526_s27, %s736_s2 }
   0x7   :  { %p532_p2 = pnand %p530_p1, %p527_p0 }
   0x9   :  { %535 = shalt.err (!%p532_p2)
}
   0xa   :  { %s536_s8 = scalar_lea.vmem %s35_s22, 32  ;;  %p541_p4 = scmp.lt.s32.totalorder %s35_s22, %s35_s22 }
   0xb   :  { %p537_p3 = scmp.ne.s32.totalorder %s35_s22, %s536_s8  ;;  %p542_p5 = scmp.lt.s32.totalorder %s536_s8, %s536_s8 }
   0xd   :  { %p543_p6 = por %p542_p5, %p541_p4 }
   0xf   :  { %p544_p7 = pnand %p543_p6, %p537_p3 }
  0x11   :  { %547 = shalt.err (!%p544_p7)
}
  0x12   :  { %37 = dma.hbm_to_vmem [thread:$0]  %s736_s2, 32, %s35_s22, [#allocation5]  }
  0x13   :  { %s548_s13 = scalar_lea.hbm %s735_s1, 4096 }
  0x14   :  { %p549_p8 = scmp.ne.s32.totalorder %s735_s1, %s548_s13  ;;  %p552_p9 = scmp.lt.u32.totalorder %s548_s13, %s735_s1 }
  0x16   :  { %p554_p10 = pnand %p552_p9, %p549_p8 }
  0x18   :  { %557 = shalt.err (!%p554_p10)
}
  0x19   :  { %s558_s18 = scalar_lea.vmem %s661_s24, 4096  ;;  %p563_p12 = scmp.lt.s32.totalorder %s661_s24, %s661_s24 }
  0x1a   :  { %p559_p11 = scmp.ne.s32.totalorder %s661_s24, %s558_s18  ;;  %p564_p13 = scmp.lt.s32.totalorder %s558_s18, %s558_s18 }
  0x1c   :  { %p565_p0 = por %p564_p13, %p563_p12 }
  0x1e   :  { %p566_p1 = pnand %p565_p0, %p559_p11 }
  0x20   :  { %569 = shalt.err (!%p566_p1)
}
  0x21   :  { %s622_s2 = smov 128   ;;  %s623_s19 = smov 8  }
  0x22   :  { %27 = dma.hbm_to_vmem [thread:$0]  %s735_s1, 4096, %s661_s24, [#allocation3], %s622_s2, %s622_s2, %s623_s19  }
  0x23   :  { %s624_s22 = smov [#allocation6]   ;;  %s625_s25 = smov [#allocation7]  }
  0x24   :  { %s46_s23 = sshll.u32 %s624_s22, 4  ;;  %s56_s26 = sshll.u32 %s625_s25, 4  ;;  %s47_s23 = int_to_ptr.vmem [resolvable:$true] %s46_s23  ;;  %s57_s26 = int_to_ptr.vmem [resolvable:$true] %s56_s26 }
  0x25   :  { %s570_s29 = scalar_lea.hbm %s738_s4, 32 }
  0x26   :  { %p571_p2 = scmp.ne.s32.totalorder %s738_s4, %s570_s29  ;;  %p574_p3 = scmp.lt.u32.totalorder %s570_s29, %s738_s4 }
  0x28   :  { %p576_p4 = pnand %p574_p3, %p571_p2 }
  0x2a   :  { %579 = shalt.err (!%p576_p4)
}
  0x2b   :  { %s580_s1 = scalar_lea.vmem %s47_s23, 32  ;;  %p585_p6 = scmp.lt.s32.totalorder %s47_s23, %s47_s23 }
  0x2c   :  { %p581_p5 = scmp.ne.s32.totalorder %s47_s23, %s580_s1  ;;  %p586_p7 = scmp.lt.s32.totalorder %s580_s1, %s580_s1 }
  0x2e   :  { %p587_p8 = por %p586_p7, %p585_p6 }
  0x30   :  { %p588_p9 = pnand %p587_p8, %p581_p5 }
  0x32   :  { %591 = shalt.err (!%p588_p9)
}
  0x33   :  { %49 = dma.hbm_to_vmem [thread:$0]  %s738_s4, 32, %s47_s23, [#allocation5]  }
  0x34   :  { %s592_s13 = scalar_lea.hbm %s739_s5, 32 }
  0x35   :  { %p593_p10 = scmp.ne.s32.totalorder %s739_s5, %s592_s13  ;;  %p596_p11 = scmp.lt.u32.totalorder %s592_s13, %s739_s5 }
  0x37   :  { %p598_p12 = pnand %p596_p11, %p593_p10 }
  0x39   :  { %601 = shalt.err (!%p598_p12)
}
  0x3a   :  { %s602_s18 = scalar_lea.vmem %s57_s26, 32  ;;  %p607_p0 = scmp.lt.s32.totalorder %s57_s26, %s57_s26 }
  0x3b   :  { %p603_p13 = scmp.ne.s32.totalorder %s57_s26, %s602_s18  ;;  %p608_p1 = scmp.lt.s32.totalorder %s602_s18, %s602_s18 }
  0x3d   :  { %p609_p2 = por %p608_p1, %p607_p0 }
  0x3f   :  { %p610_p3 = pnand %p609_p2, %p603_p13 }
  0x41   :  { %613 = shalt.err (!%p610_p3)
}
  0x42   :  { %59 = dma.hbm_to_vmem [thread:$0]  %s739_s5, 32, %s57_s26, [#allocation8]  }
  0x43   :  { %614 = dma.done.wait [#allocation3], 4096  }
  0x44   :  { %615 = vsyncadd [#allocation3], 4294963200 }
  0x45   :  { %616 = dma.done.wait [#allocation5], 64  }
  0x46   :  { %617 = vsyncadd [#allocation5], 4294967232 }
  0x47   :  { %618 = dma.done.wait [#allocation8], 32  }
  0x48   :  { %619 = vsyncadd [#allocation8], 4294967264  ;;  %v471_v0 = vld [vmem:[#allocation2 + $0x4] ss:$8 sps:$4 sm:$0xff]   ;;  %v473_v1 = vld [vmem:[#allocation2] ss:$8 sps:$4 sm:$0xff]   ;;  %v108_v34 = vlaneseq }
  0x49   :  { %288 = vmatprep.subr.bf16.mxu0 %v471_v0  ;;  %v474_v2 = vld [vmem:[#allocation2 + $0x14] ss:$8 sps:$4 sm:$0xff]   ;;  %v476_v3 = vld [vmem:[#allocation2 + $0x10] ss:$8 sps:$4 sm:$0xff]   ;;  %v477_v4 = vld [vmem:[#allocation2 + $0x24] ss:$8 sps:$4 sm:$0xff]  }
  0x4a   :  { %289 = vmatpush1.bf16.msra.mxu0 %v473_v1  ;;  %v479_v5 = vld [vmem:[#allocation2 + $0x20] ss:$8 sps:$4 sm:$0xff]   ;;  %v480_v6 = vld [vmem:[#allocation2 + $0x34] ss:$8 sps:$4 sm:$0xff]   ;;  %v482_v7 = vld [vmem:[#allocation2 + $0x30] ss:$8 sps:$4 sm:$0xff]  }
  0x4b   :  { %290 = vmatprep.subr.bf16.mxu0 %v474_v2  ;;  %v483_v8 = vld [vmem:[#allocation2 + $0x44] ss:$8 sps:$4 sm:$0xff]   ;;  %v485_v9 = vld [vmem:[#allocation2 + $0x40] ss:$8 sps:$4 sm:$0xff]   ;;  %v486_v10 = vld [vmem:[#allocation2 + $0x54] ss:$8 sps:$4 sm:$0xff]  }
  0x4c   :  { %v488_v11 = vld [vmem:[#allocation2 + $0x50] ss:$8 sps:$4 sm:$0xff]   ;;  %v489_v12 = vld [vmem:[#allocation2 + $0x64] ss:$8 sps:$4 sm:$0xff]   ;;  %v521_v13 = vld [vmem:[%s734_s0 + $0x4] ss:$8 sps:$4 sm:$0xff]  }
  0x4d   :  { %v491_v14 = vld [vmem:[#allocation2 + $0x60] ss:$8 sps:$4 sm:$0xff]   ;;  %v492_v15 = vld [vmem:[#allocation2 + $0x74] ss:$8 sps:$4 sm:$0xff]   ;;  %320 = vmatprep.mubr.bf16.mxu0 %v521_v13  ;;  %v494_v16 = vld [vmem:[#allocation2 + $0x70] ss:$8 sps:$4 sm:$0xff]  }
  0x4e   :  { %291 = vmatpush1.bf16.msra.mxu0 %v476_v3  ;;  %v495_v17 = vld [vmem:[#allocation2 + $0x84] ss:$8 sps:$4 sm:$0xff]   ;;  %v497_v18 = vld [vmem:[#allocation2 + $0x80] ss:$8 sps:$4 sm:$0xff]   ;;  %v498_v19 = vld [vmem:[#allocation2 + $0x94] ss:$8 sps:$4 sm:$0xff]  }
  0x4f   :  { %292 = vmatprep.subr.bf16.mxu0 %v477_v4  ;;  %v500_v20 = vld [vmem:[#allocation2 + $0x90] ss:$8 sps:$4 sm:$0xff]   ;;  %v501_v21 = vld [vmem:[#allocation2 + $0xa4] ss:$8 sps:$4 sm:$0xff]   ;;  %v503_v22 = vld [vmem:[#allocation2 + $0xa0] ss:$8 sps:$4 sm:$0xff]  }
  0x50   :  { %v504_v23 = vld [vmem:[#allocation2 + $0xb4] ss:$8 sps:$4 sm:$0xff]   ;;  %v506_v24 = vld [vmem:[#allocation2 + $0xb0] ss:$8 sps:$4 sm:$0xff]   ;;  %v507_v25 = vld [vmem:[#allocation2 + $0xc4] ss:$8 sps:$4 sm:$0xff]  }
  0x51   :  { %v509_v26 = vld [vmem:[#allocation2 + $0xc0] ss:$8 sps:$4 sm:$0xff]   ;;  %v510_v27 = vld [vmem:[#allocation2 + $0xd4] ss:$8 sps:$4 sm:$0xff]   ;;  %v512_v28 = vld [vmem:[#allocation2 + $0xd0] ss:$8 sps:$4 sm:$0xff]  }
  0x52   :  { %293 = vmatpush1.bf16.msra.mxu0 %v479_v5  ;;  %v513_v29 = vld [vmem:[#allocation2 + $0xe4] ss:$8 sps:$4 sm:$0xff]   ;;  %v515_v30 = vld [vmem:[#allocation2 + $0xe0] ss:$8 sps:$4 sm:$0xff]   ;;  %v516_v31 = vld [vmem:[#allocation2 + $0xf4] ss:$8 sps:$4 sm:$0xff]  }
  0x53   :  { %294 = vmatprep.subr.bf16.mxu0 %v480_v6  ;;  %v518_v32 = vld [vmem:[#allocation2 + $0xf0] ss:$8 sps:$4 sm:$0xff]   ;;  %v109_v35 = vshrl.u32 %v108_v34, 7  ;;  %v106_v37 = vld [vmem:[#allocation4] sm:$0x3] }
  0x54   :  { %v519_v33 = vld [vmem:[%s734_s0] ss:$8 sps:$4 sm:$0xff]  }
  0x55   :  { %v110_v36 = vsub.s32 0, %v109_v35  ;;  %v114_v38 = vsub.s32 1, %v109_v35  ;;  %v331_v39 = vld [vmem:[%s737_s3] sm:$0xff]  ;;  %v332_v42 = vld [vmem:[%s737_s3 + $0x8] sm:$0xff] }
  0x56   :  { %295 = vmatpush1.bf16.msra.mxu0 %v482_v7  ;;  %v333_v43 = vunpack.c.l.bf16 %v331_v39  ;;  %v334_v45 = vunpack.c.h.bf16 %v331_v39  ;;  %v335_v50 = vunpack.c.l.bf16 %v332_v42  ;;  %v336_v51 = vunpack.c.h.bf16 %v332_v42 }
  0x57   :  { %296 = vmatprep.subr.bf16.mxu0 %v483_v8  ;;  %v111_v40 = vrot.slane %v106_v37, %v110_v36  ;;  %v115_v41 = vrot.slane %v106_v37, %v114_v38 }
  0x5a   :  { %297 = vmatpush1.bf16.msra.mxu0 %v485_v9 }
  0x5b   :  { %298 = vmatprep.subr.bf16.mxu0 %v486_v10 }
  0x5e   :  { %299 = vmatpush1.bf16.msra.mxu0 %v488_v11 }
  0x5f   :  { %300 = vmatprep.subr.bf16.mxu0 %v489_v12 }
  0x62   :  { %301 = vmatpush1.bf16.msra.mxu0 %v491_v14 }
  0x63   :  { %302 = vmatprep.subr.bf16.mxu0 %v492_v15 }
  0x66   :  { %303 = vmatpush1.bf16.msra.mxu0 %v494_v16 }
  0x67   :  { %304 = vmatprep.subr.bf16.mxu0 %v495_v17  ;;  %v374_v17 = vld [vmem:[#allocation6] sm:$0x3] }
  0x6a   :  { %305 = vmatpush1.bf16.msra.mxu0 %v497_v18  ;;  %v390_v18 = vld [vmem:[#allocation7] sm:$0x3] }
  0x6b   :  { %306 = vmatprep.subr.bf16.mxu0 %v498_v19  ;;  %v379_v19 = vrot.slane %v374_v17, %v110_v36 }
  0x6e   :  { %307 = vmatpush1.bf16.msra.mxu0 %v500_v20  ;;  %v383_v20 = vrot.slane %v374_v17, %v114_v38 }
  0x6f   :  { %308 = vmatprep.subr.bf16.mxu0 %v501_v21 }
  0x72   :  { %309 = vmatpush1.bf16.msra.mxu0 %v503_v22  ;;  %v395_v22 = vrot.slane %v390_v18, %v110_v36 }
  0x73   :  { %310 = vmatprep.subr.bf16.mxu0 %v504_v23  ;;  %v399_v23 = vrot.slane %v390_v18, %v114_v38 }
  0x76   :  { %311 = vmatpush1.bf16.msra.mxu0 %v506_v24 }
  0x77   :  { %312 = vmatprep.subr.bf16.mxu0 %v507_v25 }
  0x7a   :  { %313 = vmatpush1.bf16.msra.mxu0 %v509_v26 }
  0x7b   :  { %314 = vmatprep.subr.bf16.mxu0 %v510_v27 }
  0x7e   :  { %315 = vmatpush1.bf16.msra.mxu0 %v512_v28 }
  0x7f   :  { %316 = vmatprep.subr.bf16.mxu0 %v513_v29 }
  0x82   :  { %317 = vmatpush1.bf16.msra.mxu0 %v515_v30 }
  0x83   :  { %318 = vmatprep.subr.bf16.mxu0 %v516_v31 }
  0x86   :  { %319 = vmatpush1.bf16.msra.mxu0 %v518_v32 }
  0x89   :  { %321 = vmatmul.mubr.bf16.vlgmr.msra.gmra.mrb[0].mxu0 %v519_v33 }
 0x15c   :  { %v322_v44 = vpop.f32.mrb[0].mxu0 }
 0x15d   :  { %v323_v46 = vadd.f32 %v322_v44, %v111_v40  ;;  %v324_v47 = vpop.f32.mrb[1].mxu0 }
 0x15e   :  { %v325_v48 = vadd.f32 %v324_v47, %v115_v41  ;;  %v326_v49 = vpop.f32.mrb[2].mxu0 }
 0x15f   :  { %v327_v52 = vadd.f32 %v326_v49, %v111_v40  ;;  %v328_v53 = vpop.f32.mrb[3].mxu0  ;;  %v337_v54 = vadd.f32 %v333_v43, %v323_v46 }
 0x160   :  { %v329_v55 = vadd.f32 %v328_v53, %v115_v41  ;;  %v338_v56 = vadd.f32 %v334_v45, %v325_v48 }
 0x161   :  { %v339_v57 = vadd.f32 %v335_v50, %v327_v52 }
 0x162   :  { %v340_v58 = vadd.f32 %v336_v51, %v329_v55  ;;  %v341_v59 = vadd.f32 %v338_v56, %v337_v54 }
 0x164   :  { %342 = vadd.xlane.f32.xlu0 %v341_v59  ;;  %v344_v60 = vadd.f32 %v340_v58, %v339_v57 }
 0x168   :  { %345 = vadd.xlane.f32.xlu0 %v344_v60 }
 0x1f1   :  { %v343_v61 = vpop.xlane.xlu0 %342 }
 0x1f2   :  { %v348_v62 = vmul.f32 0.00390625, %v343_v61 }
 0x1f4   :  { %v350_v63 = vsub.f32 %v337_v54, %v348_v62  ;;  %v351_v0 = vsub.f32 %v338_v56, %v348_v62 }
 0x1f5   :  { %v346_v1 = vpop.xlane.xlu0 %345 }
 0x1f6   :  { %v349_v2 = vmul.f32 0.00390625, %v346_v1  ;;  %v354_v3 = vmul.f32 %v350_v63, %v350_v63  ;;  %v355_v4 = vmul.f32 %v351_v0, %v351_v0 }
 0x1f8   :  { %v352_v5 = vsub.f32 %v339_v57, %v349_v2  ;;  %v353_v6 = vsub.f32 %v340_v58, %v349_v2  ;;  %v358_v7 = vadd.f32 %v355_v4, %v354_v3 }
 0x1fa   :  { %359 = vadd.xlane.f32.xlu1 %v358_v7  ;;  %v356_v8 = vmul.f32 %v352_v5, %v352_v5  ;;  %v357_v9 = vmul.f32 %v353_v6, %v353_v6 }
 0x1fc   :  { %v361_v10 = vadd.f32 %v357_v9, %v356_v8 }
 0x1fe   :  { %362 = vadd.xlane.f32.xlu1 %v361_v10 }
 0x287   :  { %v360_v11 = vpop.xlane.xlu1 %359 }
 0x288   :  { %v364_v12 = vmul.f32 0.00390625, %v360_v11 }
 0x28a   :  { %v366_v13 = vadd.f32 1e-05, %v364_v12 }
 0x28b   :  { %v363_v14 = vpop.xlane.xlu1 %362 }
 0x28c   :  { %522 = vrsqrt.f32 %v366_v13  ;;  %v365_v15 = vmul.f32 0.00390625, %v363_v14 }
 0x28e   :  { %v367_v16 = vadd.f32 1e-05, %v365_v15 }
 0x290   :  { %524 = vrsqrt.f32 %v367_v16 }
 0x296   :  { %v523_v21 = vpop.eup %522 }
 0x297   :  { %v370_v24 = vmul.f32 %v523_v21, %v350_v63  ;;  %v371_v25 = vmul.f32 %v523_v21, %v351_v0 }
 0x299   :  { %v386_v26 = vmul.f32 %v379_v19, %v370_v24  ;;  %v387_v27 = vmul.f32 %v383_v20, %v371_v25 }
 0x29a   :  { %v525_v28 = vpop.eup %524 }
 0x29b   :  { %v402_v29 = vadd.f32 %v395_v22, %v386_v26  ;;  %v403_v30 = vadd.f32 %v399_v23, %v387_v27  ;;  %v372_v31 = vmul.f32 %v525_v28, %v352_v5  ;;  %v373_v32 = vmul.f32 %v525_v28, %v353_v6 }
 0x29d   :  { %v463_v33 = vpack.c.bf16 %v403_v30, %v402_v29  ;;  %v388_v34 = vmul.f32 %v379_v19, %v372_v31  ;;  %v389_v35 = vmul.f32 %v383_v20, %v373_v32 }
 0x29f   :  { %418 = vst [vmem:[%s740_s6] sm:$0xff] %v463_v33  ;;  %v404_v37 = vadd.f32 %v395_v22, %v388_v34  ;;  %v405_v39 = vadd.f32 %v399_v23, %v389_v35 }
 0x2a1   :  { %v464_v36 = vpack.c.bf16 %v405_v39, %v404_v37 }
 0x2a3   :  { %419 = vst [vmem:[%s740_s6 + $0x8] sm:$0xff] %v464_v36 }
 0x2a4   :  { %424 = vsyncpa [#allocation3], 1 }
 0x2a5   :  { %425 = vsyncpa [#allocation5], 1 }
 0x2a6   :  { %426 = vsyncpa [#allocation8], 1 }

// kernel: _forward_jit.13
= control target key start
LH: loop header
LB: loop body
LE: loop exit
PB: predicated region body
PF: predicated region fallthrough
CT: control target
= control target key end

     0   :  { %8 = vsyncpa [#allocation3], 0  ;;  %s1376_s0 = inlined_call_operand.vmem [shape: bf16[16,256], index: 0, kind: input, shape index: {}]   ;;  %s1377_s1 = inlined_call_operand.hbm [shape: bf16[256,768], index: 1, kind: input, shape index: {}]   ;;  %s1378_s2 = inlined_call_operand.vmem [shape: f32[1,768], index: 2, kind: input, shape index: {}]   ;;  %s1379_s3 = inlined_call_operand.vmem [shape: bf16[16,768], index: 3, kind: output, shape index: {}]  }
   0x1   :  { %10 = vsyncpa [#allocation3 + $0x1], 0  ;;  %s1180_s12 = smov 0   ;;  %s1182_s13 = smov 0  }
   0x2   :  { %s1184_s14 = smov 0   ;;  %s1186_s15 = smov 0  }
   0x3   :  { %s1188_s16 = smov 0   ;;  %s1190_s17 = smov 0  }
   0x4 LB: > { %s850_s18 = sadd.s32 4294967295, %s1154_s17   ;;  %s28_s19 = sadd.s32 1, %s1150_s16  ;;  %s1154_s17 = sphi %s1190_s17, %s16_s17   ;;  %s1150_s16 = sphi %s1188_s16, %s1390_s16   ;;  %s1146_s15 = sphi %s1186_s15, %s1389_s15   ;;  %s1142_s14 = sphi %s1184_s14, %s1388_s14   ;;  %s1138_s13 = sphi %s1182_s13, %s1387_s13   ;;  %s1134_s12 = sphi %s1180_s12, %s1386_s12  }
   0x5   : > { %p30_p0 = scmp.ge.s32.totalorder %s28_s19, 2  ;;  %s61_s20 = sadd.s32 1, %s1142_s14 }
   0x6   : > { %p68_p1 = scmp.ne.s32.totalorder %s1142_s14, %s1138_s13  ;;  %p69_p2 = scmp.eq.s32.totalorder %s1154_s17, 0 }
   0x7   : > { %s1392_s19 = smov (%p30_p0, %s28_s19), 0  ;;  %p74_p4 = scmp.ne.s32.totalorder %s1138_s13, %s1134_s12 }
   0x8   : > { %p1216_p3 = por %p69_p2, %p68_p1  ;;  %s58_s22 = ssub.s32 %s1150_s16, %s1392_s19 }
   0x9   : > { %p75_p5 = scmp.eq.s32.totalorder %s850_s18, 0  ;;  %p59_p6 = scmp.eq.s32.totalorder %s58_s22, 0 }
   0xa   : > { %p126_p7 = scmp.eq.s32.totalorder %s850_s18, 1  ;;  %p955_p10 = scmp.lt.s32.totalorder %s1154_s17, 2 }
   0xb   : > { %p1223_p8 = por %p75_p5, %p74_p4  ;;  %s162_s26 = sand.u32 1, %s1142_s14  }
   0xc   : > { %s1228_s24 = scalar_select %p59_p6, %s1142_s14, %s61_s20  }
   0xd   : > { %p1230_p9 = por %p126_p7, %p68_p1  ;;  %s918_s27 = smul.u32 192, %s1150_s16 }
   0xe   : > { %s946_s28 = smul.u32 384, %s162_s26  ;;  %p1244_p11 = pnand %p955_p10, %p1216_p3 }
   0xf   : > { %s1382_s25 = scalar_select %p1230_p9, 1, 0 }
  0x10   : > { %s1240_s4 = scalar_lea.hbm %s1377_s1, %s918_s27  ;;  %s166_s6 = scalar_lea.vmem [#allocation2], %s946_s28 }
  0x11   : > { %s173_s7 = sshll.u32 %s166_s6, 4  ;;  %s1251_s8 = scalar_lea.sflag [#allocation3], %s162_s26  ;;  %s1248_s7 = int_to_ptr.vmem [resolvable:$true] %s173_s7 }
  0x12   : > { %s1074_s9 = scalar_lea.hbm %s1240_s4, 6144  ;;  %p1076_p0 = pneg %p1244_p11 }
  0x13   : > { %p1075_p13 = scmp.ne.s32.totalorder %s1240_s4, %s1074_s9  ;;  %s1079_s12 = scalar_lea.hbm %s1377_s1, 12288 }
  0x14   : > { %p1080_p3 = scmp.lt.u32.totalorder %s1240_s4, %s1377_s1  ;;  %p1081_p4 = scmp.lt.u32.totalorder %s1079_s12, %s1074_s9 }
  0x15   : > { %p1077_p1 = pnand %p1076_p0, %p1075_p13  ;;  %p1083_p6 = scmp.lt.u32.totalorder %s1074_s9, %s1240_s4 }
  0x16   : > { %p1082_p5 = por %p1081_p4, %p1080_p3 }
  0x17   : > { %p1078_p2 = pneg %p1077_p1 }
  0x18   : > { %p1084_p7 = por %p1083_p6, %p1082_p5 }
  0x1a   : > { %p1085_p10 = pnand %p1084_p7, %p1078_p2 }
  0x1c   : > { %1088 = shalt.err (!%p1085_p10)
}
  0x1d   : > { %s1089_s21 = scalar_lea.vmem %s1248_s7, 6144  ;;  %s1156_s22 = smov [#allocation2]  }
  0x1e   : > { %p1090_p13 = scmp.ne.s32.totalorder %s1248_s7, %s1089_s21  ;;  %s1094_s26 = sshll.u32 %s1156_s22, 4  ;;  %s1095_s26 = int_to_ptr.vmem [resolvable:$false] %s1094_s26 }
  0x1f   : > { %s1096_s27 = scalar_lea.vmem %s1095_s26, 12288  ;;  %p1097_p9 = scmp.lt.s32.totalorder %s1248_s7, %s1095_s26 }
  0x20   : > { %p1092_p1 = pnand %p1090_p13, %p1076_p0  ;;  %p1098_p3 = scmp.lt.s32.totalorder %s1096_s27, %s1089_s21 }
  0x22   : > { %p1093_p12 = pneg %p1092_p1  ;;  %p1099_p4 = por %p1098_p3, %p1097_p9 }
  0x24   : > { %p1100_p5 = pnand %p1099_p4, %p1093_p12 }
  0x26   : > { %1103 = shalt.err (!%p1100_p5)
}
  0x27   : > { %s1157_s28 = smov 384   ;;  %s1158_s29 = smov 192  }
  0x28   : > { %s1159_s30 = smov 12   ;;  %p189_p0 = scmp.lt.s32.totalorder %s1154_s17, 3 }
  0x29   : > { %954 = dma.hbm_to_vmem [thread:$0]  (!%p1244_p11), %s1240_s4, 6144, %s1248_s7, %s1251_s8, %s1157_s28, %s1158_s29, %s1159_s30  }
  0x2a   : > { %p1384_p2 = scmp.ge.s32.totalorder %s1154_s17, 1 }
  0x2c   : > { %p190_p6 = pnand %p1384_p2, %p189_p0 }
  0x2d   : > { %s1283_s6 = sand.u32 (!%p190_p6), 1, %s1138_s13  }
  0x2e   : > { %193 = sbr.rel (%p190_p6) target bundleno = 347 (0x15b), region = 32  ;;  %s196_s10 = scalar_lea.sflag (!%p190_p6), [#allocation3], %s1283_s6 }
  0x2f   : > { %s947_s9 = smul.u32 (!%p190_p6), 384, %s1283_s6 }
  0x31   : > { %s1287_s11 = scalar_lea.vmem (!%p190_p6), [#allocation2], %s947_s9 }
  0x35   : > { %1129 = dma.done.wait (%p1223_p8), %s196_s10, 6144  }
  0x36   : > { %1131 = vsyncadd (%p1223_p8), %s196_s10, 4294961152  ;;  %v1007_v0 = vld [vmem:[%s1287_s11 + $0x4] ss:$12 sps:$4 sm:$0xff]   ;;  %v1009_v1 = vld [vmem:[%s1287_s11] ss:$12 sps:$4 sm:$0xff]   ;;  %s239_s8 = smul.u32 3, %s1146_s15  ;;  %v315_v50 = vlaneseq }
  0x37   : > { %596 = vmatprep.subr.bf16.mxu0 %v1007_v0  ;;  %v1010_v2 = vld [vmem:[%s1287_s11 + $0x1c] ss:$12 sps:$4 sm:$0xff]   ;;  %v1012_v3 = vld [vmem:[%s1287_s11 + $0x18] ss:$12 sps:$4 sm:$0xff]   ;;  %v1013_v4 = vld [vmem:[%s1287_s11 + $0x34] ss:$12 sps:$4 sm:$0xff]  }
  0x38   : > { %597 = vmatpush1.bf16.msra.mxu0 %v1009_v1  ;;  %v1015_v5 = vld [vmem:[%s1287_s11 + $0x30] ss:$12 sps:$4 sm:$0xff]   ;;  %v1016_v6 = vld [vmem:[%s1287_s11 + $0x4c] ss:$12 sps:$4 sm:$0xff]   ;;  %v1028_v7 = vld [vmem:[%s1287_s11 + $0xc8] ss:$12 sps:$4 sm:$0xff]  }
  0x39   : > { %598 = vmatprep.subr.bf16.mxu0 %v1010_v2  ;;  %v1018_v8 = vld [vmem:[%s1287_s11 + $0x48] ss:$12 sps:$4 sm:$0xff]   ;;  %v1019_v9 = vld [vmem:[%s1287_s11 + $0x64] ss:$12 sps:$4 sm:$0xff]   ;;  %924 = vmatprep.subr.bf16.mxu1 %v1028_v7  ;;  %v1033_v11 = vld [vmem:[%s1287_s11 + $0xe0] ss:$12 sps:$4 sm:$0xff]  }
  0x3a   : > { %v1031_v10 = vld [vmem:[%s1287_s11 + $0x8] ss:$12 sps:$4 sm:$0xff]   ;;  %v1021_v12 = vld [vmem:[%s1287_s11 + $0x60] ss:$12 sps:$4 sm:$0xff]   ;;  %v1038_v15 = vld [vmem:[%s1287_s11 + $0xf8] ss:$12 sps:$4 sm:$0xff]  }
  0x3b   : > { %925 = vmatpush3.bf16.msra.mxu1 %v1031_v10  ;;  %v1022_v13 = vld [vmem:[%s1287_s11 + $0x7c] ss:$12 sps:$4 sm:$0xff]   ;;  %v1036_v14 = vld [vmem:[%s1287_s11 + $0x20] ss:$12 sps:$4 sm:$0xff]   ;;  %v1024_v16 = vld [vmem:[%s1287_s11 + $0x78] ss:$12 sps:$4 sm:$0xff]  }
  0x3c   : > { %599 = vmatpush1.bf16.msra.mxu0 %v1012_v3  ;;  %926 = vmatprep.subr.bf16.mxu1 %v1033_v11  ;;  %v1041_v17 = vld [vmem:[%s1287_s11 + $0x38] ss:$12 sps:$4 sm:$0xff]   ;;  %v1025_v18 = vld [vmem:[%s1287_s11 + $0x94] ss:$12 sps:$4 sm:$0xff]   ;;  %v1043_v19 = vld [vmem:[%s1287_s11 + $0x110] ss:$12 sps:$4 sm:$0xff]  }
  0x3d   : > { %600 = vmatprep.subr.bf16.mxu0 %v1013_v4  ;;  %v1027_v20 = vld [vmem:[%s1287_s11 + $0x90] ss:$12 sps:$4 sm:$0xff]   ;;  %v1048_v22 = vld [vmem:[%s1287_s11 + $0x128] ss:$12 sps:$4 sm:$0xff]   ;;  %v1029_v23 = vld [vmem:[%s1287_s11 + $0xac] ss:$12 sps:$4 sm:$0xff]  }
  0x3e   : > { %v1046_v21 = vld [vmem:[%s1287_s11 + $0x50] ss:$12 sps:$4 sm:$0xff]   ;;  %v1032_v24 = vld [vmem:[%s1287_s11 + $0xa8] ss:$12 sps:$4 sm:$0xff]   ;;  %v1053_v26 = vld [vmem:[%s1287_s11 + $0x140] ss:$12 sps:$4 sm:$0xff]  }
  0x3f   : > { %927 = vmatpush3.bf16.msra.mxu1 %v1036_v14  ;;  %v1051_v25 = vld [vmem:[%s1287_s11 + $0x68] ss:$12 sps:$4 sm:$0xff]   ;;  %v1034_v27 = vld [vmem:[%s1287_s11 + $0xc4] ss:$12 sps:$4 sm:$0xff]   ;;  %v1037_v28 = vld [vmem:[%s1287_s11 + $0xc0] ss:$12 sps:$4 sm:$0xff]  }
  0x40   : > { %601 = vmatpush1.bf16.msra.mxu0 %v1015_v5  ;;  %928 = vmatprep.subr.bf16.mxu1 %v1038_v15  ;;  %v1056_v29 = vld [vmem:[%s1287_s11 + $0x80] ss:$12 sps:$4 sm:$0xff]   ;;  %v1058_v30 = vld [vmem:[%s1287_s11 + $0x158] ss:$12 sps:$4 sm:$0xff]   ;;  %v1039_v31 = vld [vmem:[%s1287_s11 + $0xdc] ss:$12 sps:$4 sm:$0xff]  }
  0x41   : > { %602 = vmatprep.subr.bf16.mxu0 %v1016_v6  ;;  %v1061_v32 = vld [vmem:[%s1287_s11 + $0x98] ss:$12 sps:$4 sm:$0xff]   ;;  %v1063_v34 = vld [vmem:[%s1287_s11 + $0x170] ss:$12 sps:$4 sm:$0xff]   ;;  %v1044_v35 = vld [vmem:[%s1287_s11 + $0xf4] ss:$12 sps:$4 sm:$0xff]  }
  0x42   : > { %v1042_v33 = vld [vmem:[%s1287_s11 + $0xd8] ss:$12 sps:$4 sm:$0xff]   ;;  %v1070_v36 = vld [vmem:[%s1376_s0 + $0x4] ss:$8 sps:$4 sm:$0xff]   ;;  %v1057_v43 = vld [vmem:[%s1287_s11 + $0x120] ss:$12 sps:$4 sm:$0xff]  }
  0x43   : > { %929 = vmatpush3.bf16.msra.mxu1 %v1041_v17  ;;  %v1066_v37 = vld [vmem:[%s1287_s11 + $0xb0] ss:$12 sps:$4 sm:$0xff]   ;;  %v1049_v39 = vld [vmem:[%s1287_s11 + $0x10c] ss:$12 sps:$4 sm:$0xff]   ;;  %671 = vmatprep.mubr.bf16.mxu1 %v1070_v36  ;;  %v1052_v41 = vld [vmem:[%s1287_s11 + $0x108] ss:$12 sps:$4 sm:$0xff]  }
  0x44   : > { %603 = vmatpush1.bf16.msra.mxu0 %v1018_v8  ;;  %930 = vmatprep.subr.bf16.mxu1 %v1043_v19  ;;  %v1047_v38 = vld [vmem:[%s1287_s11 + $0xf0] ss:$12 sps:$4 sm:$0xff]   ;;  %v1062_v45 = vld [vmem:[%s1287_s11 + $0x138] ss:$12 sps:$4 sm:$0xff]   ;;  %v1064_v46 = vld [vmem:[%s1287_s11 + $0x154] ss:$12 sps:$4 sm:$0xff]  }
  0x45   : > { %604 = vmatprep.subr.bf16.mxu0 %v1019_v9  ;;  %v1068_v40 = vld [vmem:[%s1376_s0] ss:$8 sps:$4 sm:$0xff]   ;;  %628 = vmatprep.mubr.bf16.mxu0 %v1070_v36  ;;  %v1059_v44 = vld [vmem:[%s1287_s11 + $0x13c] ss:$12 sps:$4 sm:$0xff]   ;;  %p240_p8 = scmp.lt.s32.totalorder %s239_s8, 5  ;;  %v316_v51 = vshrl.u32 %v315_v50, 7 }
  0x46   : > { %v1054_v42 = vld [vmem:[%s1287_s11 + $0x124] ss:$12 sps:$4 sm:$0xff]   ;;  %v1071_v48 = vld [vmem:[%s1287_s11 + $0x16c] ss:$12 sps:$4 sm:$0xff]   ;;  %v1073_v49 = vld [vmem:[%s1287_s11 + $0x168] ss:$12 sps:$4 sm:$0xff]  }
  0x47   : > { %931 = vmatpush3.bf16.msra.mxu1 %v1046_v21  ;;  %v1067_v47 = vld [vmem:[%s1287_s11 + $0x150] ss:$12 sps:$4 sm:$0xff]   ;;  %s1394_s8 = smov (!%p240_p8, %s239_s8), 5  ;;  %v325_v52 = vsub.s32 2, %v316_v51  ;;  %s948_s21 = smul.u32 24, %s1283_s6  ;;  %v317_v1 = vsub.s32 0, %v316_v51 }
  0x48   : > { %605 = vmatpush1.bf16.msra.mxu0 %v1021_v12  ;;  %932 = vmatprep.subr.bf16.mxu1 %v1048_v22  ;;  %s242_s20 = scalar_lea.vmem %s1378_s2, %s1394_s8  ;;  %v321_v2 = vsub.s32 1, %v316_v51  ;;  %p1385_p9 = scmp.ne.s32.totalorder %s1382_s25, 0 }
  0x49   : > { %606 = vmatprep.subr.bf16.mxu0 %v1022_v13  ;;  %v313_v53 = vld [vmem:[%s242_s20] sm:$0x7]  ;;  %s230_s22 = scalar_lea.vmem [#allocation4], %s948_s21  ;;  %s923_s26 = smul.u32 (%p1385_p9), 12, %s1146_s15 }
  0x4a   : > { %v326_v55 = vrot.slane %v313_v53, %v325_v52  ;;  %v318_v3 = vrot.slane %v313_v53, %v317_v1  ;;  %v322_v4 = vrot.slane %v313_v53, %v321_v2 }
  0x4b   : > { %933 = vmatpush3.bf16.msra.mxu1 %v1051_v25  ;;  %s716_s29 = scalar_lea.vmem (%p1385_p9), %s1379_s3, %s923_s26 }
  0x4c   : > { %607 = vmatpush1.bf16.msra.mxu0 %v1024_v16  ;;  %934 = vmatprep.subr.bf16.mxu1 %v1053_v26 }
  0x4d   : > { %608 = vmatprep.subr.bf16.mxu0 %v1025_v18 }
  0x4f   : > { %935 = vmatpush3.bf16.msra.mxu1 %v1056_v29 }
  0x50   : > { %609 = vmatpush1.bf16.msra.mxu0 %v1027_v20  ;;  %936 = vmatprep.subr.bf16.mxu1 %v1058_v30 }
  0x51   : > { %610 = vmatprep.subr.bf16.mxu0 %v1029_v23 }
  0x53   : > { %937 = vmatpush3.bf16.msra.mxu1 %v1061_v32 }
  0x54   : > { %611 = vmatpush1.bf16.msra.mxu0 %v1032_v24  ;;  %938 = vmatprep.subr.bf16.mxu1 %v1063_v34 }
  0x55   : > { %612 = vmatprep.subr.bf16.mxu0 %v1034_v27 }
  0x57   : > { %939 = vmatpush3.bf16.msra.mxu1 %v1066_v37 }
  0x58   : > { %613 = vmatpush1.bf16.msra.mxu0 %v1037_v28 }
  0x59   : > { %614 = vmatprep.subr.bf16.mxu0 %v1039_v31 }
  0x5a   : > { %672 = vmatmul.mubr.bf16.vlgmr.msra.gmra.mrb[0].mxu1 %v1068_v40 }
  0x5c   : > { %615 = vmatpush1.bf16.msra.mxu0 %v1042_v33 }
  0x5d   : > { %616 = vmatprep.subr.bf16.mxu0 %v1044_v35 }
  0x60   : > { %617 = vmatpush1.bf16.msra.mxu0 %v1047_v38 }
  0x61   : > { %618 = vmatprep.subr.bf16.mxu0 %v1049_v39 }
  0x64   : > { %619 = vmatpush1.bf16.msra.mxu0 %v1052_v41 }
  0x65   : > { %620 = vmatprep.subr.bf16.mxu0 %v1054_v42 }
  0x68   : > { %621 = vmatpush1.bf16.msra.mxu0 %v1057_v43 }
  0x69   : > { %622 = vmatprep.subr.bf16.mxu0 %v1059_v44 }
  0x6c   : > { %623 = vmatpush1.bf16.msra.mxu0 %v1062_v45 }
  0x6d   : > { %624 = vmatprep.subr.bf16.mxu0 %v1064_v46 }
  0x70   : > { %625 = vmatpush1.bf16.msra.mxu0 %v1067_v47 }
  0x71   : > { %626 = vmatprep.subr.bf16.mxu0 %v1071_v48 }
  0x74   : > { %627 = vmatpush1.bf16.msra.mxu0 %v1073_v49 }
  0x77   : > { %629 = vmatmul.mubr.bf16.vlgmr.msra.gmra.mrb[0].mxu0 %v1068_v40 }
 0x12d   : > { %v940_v54 = vpop.f32.mrb[0].mxu1 }
 0x12e   : > { %v941_v56 = vpop.f32.mrb[1].mxu1 }
 0x12f   : > { %v942_v57 = vadd.f32 %v941_v56, %v940_v54  ;;  %v943_v58 = vpop.f32.mrb[2].mxu1 }
 0x130   : > { %v944_v59 = vpop.f32.mrb[3].mxu1 }
 0x131   : > { %v674_v60 = vadd.f32 %v942_v57, %v326_v55  ;;  %v945_v61 = vadd.f32 %v944_v59, %v943_v58 }
 0x133   : > { %v920_v62 = vpack.c.bf16 %v674_v60, %v674_v60  ;;  %v677_v63 = vadd.f32 %v945_v61, %v326_v55 }
 0x135   : > { %701 = vst [vmem:[%s230_s22 + $0x8] sm:$0xf] %v920_v62  ;;  %v922_v0 = vpack.c.bf16 %v677_v63, %v677_v63 }
 0x137   : > { %703 = vst [vmem:[%s230_s22 + $0x14] sm:$0xf] %v922_v0 }
 0x13c   : > { %v912_v17 = vld [vmem:[%s230_s22 + $0x8] sm:$0xf] (%p1385_p9) }
 0x13d   : > { %913 = vst [vmem:[%s716_s29 + $0x8] sm:$0xf] (%p1385_p9), %v912_v17 }
 0x13e   : > { %v914_v18 = vld [vmem:[%s230_s22 + $0x14] sm:$0xf] (%p1385_p9) }
 0x13f   : > { %915 = vst [vmem:[%s716_s29 + $0x20] sm:$0xf] (%p1385_p9), %v914_v18 }
 0x14a   : > { %v630_v5 = vpop.f32.mrb[0].mxu0 }
 0x14b   : > { %v631_v6 = vadd.f32 %v630_v5, %v318_v3  ;;  %v632_v7 = vpop.f32.mrb[1].mxu0 }
 0x14c   : > { %v633_v8 = vadd.f32 %v632_v7, %v322_v4  ;;  %v634_v9 = vpop.f32.mrb[2].mxu0  ;;  %710 = sbr.rel (!%p1385_p9) target bundleno = 347 (0x15b), region = 40 }
 0x14d   : > { %v635_v10 = vadd.f32 %v634_v9, %v318_v3  ;;  %v636_v11 = vpop.f32.mrb[3].mxu0 }
 0x14e   : > { %v919_v12 = vpack.c.bf16 %v633_v8, %v631_v6  ;;  %v637_v13 = vadd.f32 %v636_v11, %v322_v4 }
 0x150   : > { %700 = vst [vmem:[%s230_s22] sm:$0xff] %v919_v12  ;;  %v921_v14 = vpack.c.bf16 %v637_v13, %v635_v10 }
 0x152   : > { %702 = vst [vmem:[%s230_s22 + $0xc] sm:$0xff] %v921_v14 }
 0x157   : > { %v731_v15 = vld [vmem:[%s230_s22] sm:$0xff] }
 0x158   : > { %732 = vst [vmem:[%s716_s29] sm:$0xff] %v731_v15 }
 0x159   : > { %v733_v16 = vld [vmem:[%s230_s22 + $0xc] sm:$0xff] }
 0x15a   : > { %734 = vst [vmem:[%s716_s29 + $0x18] sm:$0xff] %v733_v16 }
 0x15b PF: > { %s16_s17 = sadd.s32 1, %s1154_s17   ;;  %s1386_s12 = smov %s1138_s13 }
 0x15c   : > { %p13_p11 = scmp.ge.s32.totalorder %s16_s17, 4   ;;  %s1387_s13 = smov %s1142_s14 }
 0x15d   : > { %s1388_s14 = smov %s1228_s24  ;;  %s1389_s15 = smov %s1150_s16 }
 0x15e   : > { %s1390_s16 = smov %s1392_s19  ;;  %15 = sbr.rel (!%p13_p11) target bundleno = 4 (0x4), region = 110 }
 0x165   :  { %761 = vsyncpa [#allocation3], 1 }
 0x166   :  { %763 = vsyncpa [#allocation3 + $0x1], 1 }

// kernel: _forward_jit.16
= control target key start
LH: loop header
LB: loop body
LE: loop exit
PB: predicated region body
PF: predicated region fallthrough
CT: control target
= control target key end

     0   :  { %8 = vsyncpa [#allocation3], 0  ;;  %s1742_s0 = inlined_call_operand.vmem [shape: bf16[16,256], index: 0, kind: input, shape index: {}]   ;;  %s1743_s1 = inlined_call_operand.hbm [shape: bf16[256,1024], index: 1, kind: input, shape index: {}]   ;;  %s1744_s2 = inlined_call_operand.hbm [shape: f32[1,1024], index: 2, kind: input, shape index: {}]   ;;  %s1745_s3 = inlined_call_operand.vmem [shape: bf16[16,1024], index: 3, kind: output, shape index: {}]  }
   0x1   :  { %10 = vsyncpa [#allocation3 + $0x1], 0 }
   0x2   :  { %11 = vsyncpa [#allocation5], 0 }
   0x3   :  { %13 = vsyncpa [#allocation5 + $0x1], 0  ;;  %s1433_s12 = smov 0   ;;  %s1435_s13 = smov 0  }
   0x4   :  { %s1437_s14 = smov 0   ;;  %s1439_s15 = smov 0  }
   0x5   :  { %s1441_s16 = smov 0   ;;  %s1443_s17 = smov 0  }
   0x6 LB: > { %s1017_s18 = sadd.s32 4294967295, %s1406_s17   ;;  %s31_s19 = sadd.s32 1, %s1402_s16  ;;  %s1406_s17 = sphi %s1443_s17, %s19_s17   ;;  %s1402_s16 = sphi %s1441_s16, %s1760_s16   ;;  %s1398_s15 = sphi %s1439_s15, %s1759_s15   ;;  %s1394_s14 = sphi %s1437_s14, %s1758_s14   ;;  %s1390_s13 = sphi %s1435_s13, %s1757_s13   ;;  %s1386_s12 = sphi %s1433_s12, %s1756_s12  }
   0x7   : > { %p33_p0 = scmp.ge.s32.totalorder %s31_s19, 2  ;;  %s64_s20 = sadd.s32 1, %s1394_s14 }
   0x8   : > { %p71_p1 = scmp.ne.s32.totalorder %s1394_s14, %s1390_s13  ;;  %p72_p2 = scmp.eq.s32.totalorder %s1406_s17, 0 }
   0x9   : > { %s1762_s19 = smov (%p33_p0, %s31_s19), 0  ;;  %p77_p4 = scmp.ne.s32.totalorder %s1390_s13, %s1386_s12 }
   0xa   : > { %p1469_p3 = por %p72_p2, %p71_p1  ;;  %s61_s22 = ssub.s32 %s1402_s16, %s1762_s19 }
   0xb   : > { %p78_p5 = scmp.eq.s32.totalorder %s1017_s18, 0  ;;  %p62_p6 = scmp.eq.s32.totalorder %s61_s22, 0 }
   0xc   : > { %p129_p7 = scmp.eq.s32.totalorder %s1017_s18, 1  ;;  %p1125_p10 = scmp.lt.s32.totalorder %s1406_s17, 2 }
   0xd   : > { %p1476_p8 = por %p78_p5, %p77_p4  ;;  %s1489_s26 = sand.u32 1, %s1394_s14  }
   0xe   : > { %s1481_s24 = scalar_select %p62_p6, %s1394_s14, %s64_s20  }
   0xf   : > { %s1748_s23 = scalar_select %p1476_p8, 1, 0 }
  0x10   : > { %p1483_p9 = por %p129_p7, %p71_p1  ;;  %s1107_s27 = sshll.u32 %s1402_s16, 8 }
  0x11   : > { %s1022_s28 = sshll.u32 %s1489_s26, 9  ;;  %s1496_s4 = scalar_lea.hbm %s1743_s1, %s1107_s27 }
  0x12   : > { %s1749_s25 = scalar_select %p1483_p9, 1, 0 }
  0x13   : > { %s169_s5 = scalar_lea.vmem [#allocation2], %s1022_s28  ;;  %p1500_p11 = pnand %p1125_p10, %p1469_p3 }
  0x14   : > { %s176_s6 = sshll.u32 %s169_s5, 4  ;;  %s166_s8 = scalar_lea.sflag [#allocation3], %s1489_s26  ;;  %s1504_s6 = int_to_ptr.vmem [resolvable:$true] %s176_s6 }
  0x15   : > { %s1292_s9 = scalar_lea.hbm %s1496_s4, 8192  ;;  %p1294_p0 = pneg %p1500_p11 }
  0x16   : > { %p1293_p13 = scmp.ne.s32.totalorder %s1496_s4, %s1292_s9  ;;  %s1297_s12 = scalar_lea.hbm %s1743_s1, 16384 }
  0x17   : > { %p1298_p3 = scmp.lt.u32.totalorder %s1496_s4, %s1743_s1  ;;  %p1299_p4 = scmp.lt.u32.totalorder %s1297_s12, %s1292_s9 }
  0x18   : > { %p1295_p1 = pnand %p1294_p0, %p1293_p13  ;;  %p1301_p6 = scmp.lt.u32.totalorder %s1292_s9, %s1496_s4 }
  0x19   : > { %p1300_p5 = por %p1299_p4, %p1298_p3 }
  0x1a   : > { %p1296_p2 = pneg %p1295_p1 }
  0x1b   : > { %p1302_p7 = por %p1301_p6, %p1300_p5 }
  0x1d   : > { %p1303_p10 = pnand %p1302_p7, %p1296_p2 }
  0x1f   : > { %1306 = shalt.err (!%p1303_p10)
}
  0x20   : > { %s1307_s21 = scalar_lea.vmem %s1504_s6, 8192  ;;  %s1408_s22 = smov [#allocation2]  }
  0x21   : > { %p1308_p13 = scmp.ne.s32.totalorder %s1504_s6, %s1307_s21  ;;  %s1312_s27 = sshll.u32 %s1408_s22, 4  ;;  %s1313_s27 = int_to_ptr.vmem [resolvable:$false] %s1312_s27 }
  0x22   : > { %s1314_s28 = scalar_lea.vmem %s1313_s27, 16384  ;;  %p1315_p9 = scmp.lt.s32.totalorder %s1504_s6, %s1313_s27 }
  0x23   : > { %p1310_p1 = pnand %p1308_p13, %p1294_p0  ;;  %p1316_p3 = scmp.lt.s32.totalorder %s1314_s28, %s1307_s21 }
  0x25   : > { %p1311_p12 = pneg %p1310_p1  ;;  %p1317_p4 = por %p1316_p3, %p1315_p9 }
  0x27   : > { %p1318_p5 = pnand %p1317_p4, %p1311_p12 }
  0x29   : > { %1321 = shalt.err (!%p1318_p5)
}
  0x2a   : > { %s1409_s29 = smov 512   ;;  %s1410_s30 = smov 256  }
  0x2b   : > { %s1411_s5 = smov 16   ;;  %p203_p2 = scmp.lt.s32.totalorder %s1406_s17, 3 }
  0x2c   : > { %1121 = dma.hbm_to_vmem [thread:$0]  (!%p1500_p11), %s1496_s4, 8192, %s1504_s6, %s166_s8, %s1409_s29, %s1410_s30, %s1411_s5  }
  0x2d   : > { %s1025_s9 = sshll.u32 %s1489_s26, 2  ;;  %s1108_s10 = sshll.u32 %s1402_s16, 6 }
  0x2e   : > { %p1751_p9 = scmp.ge.s32.totalorder %s1406_s17, 1  ;;  %s1547_s20 = scalar_lea.hbm %s1744_s2, %s1108_s10 }
  0x2f   : > { %s190_s21 = scalar_lea.vmem [#allocation4], %s1025_s9  ;;  %s187_s4 = scalar_lea.sflag [#allocation5], %s1489_s26 }
  0x30   : > { %p1540_p12 = pnand %p1751_p9, %p203_p2  ;;  %s198_s22 = sshll.u32 %s190_s21, 4  ;;  %s199_s22 = int_to_ptr.vmem [resolvable:$true] %s198_s22 }
  0x31   : > { %s1322_s6 = scalar_lea.hbm %s1547_s20, 64  ;;  %s1327_s28 = scalar_lea.hbm %s1744_s2, 128 }
  0x32   : > { %s1752_s11 = scalar_select %p1540_p12, 1, 0 }
  0x33   : > { %p1323_p6 = scmp.ne.s32.totalorder %s1547_s20, %s1322_s6  ;;  %p1328_p13 = scmp.lt.u32.totalorder %s1547_s20, %s1744_s2 }
  0x34   : > { %p1329_p1 = scmp.lt.u32.totalorder %s1327_s28, %s1322_s6  ;;  %p1331_p4 = scmp.lt.u32.totalorder %s1322_s6, %s1547_s20 }
  0x35   : > { %p1325_p7 = pnand %p1323_p6, %p1294_p0 }
  0x36   : > { %p1330_p3 = por %p1329_p1, %p1328_p13 }
  0x37   : > { %p1326_p10 = pneg %p1325_p7 }
  0x38   : > { %p1332_p5 = por %p1331_p4, %p1330_p3 }
  0x3a   : > { %p1333_p2 = pnand %p1332_p5, %p1326_p10 }
  0x3c   : > { %1336 = shalt.err (!%p1333_p2)
}
  0x3d   : > { %s1337_s26 = scalar_lea.vmem %s199_s22, 64  ;;  %s1412_s5 = smov [#allocation4]  }
  0x3e   : > { %p1338_p9 = scmp.ne.s32.totalorder %s199_s22, %s1337_s26  ;;  %s1342_s9 = sshll.u32 %s1412_s5, 4  ;;  %s1343_s9 = int_to_ptr.vmem [resolvable:$false] %s1342_s9 }
  0x3f   : > { %s1344_s10 = scalar_lea.vmem %s1343_s9, 128  ;;  %p1345_p8 = scmp.lt.s32.totalorder %s199_s22, %s1343_s9 }
  0x40   : > { %p1340_p6 = pnand %p1338_p9, %p1294_p0  ;;  %p1346_p12 = scmp.lt.s32.totalorder %s1344_s10, %s1337_s26 }
  0x42   : > { %p1341_p7 = pneg %p1340_p6  ;;  %p1347_p1 = por %p1346_p12, %p1345_p8 }
  0x44   : > { %p1348_p13 = pnand %p1347_p1, %p1341_p7 }
  0x46   : > { %1351 = shalt.err (!%p1348_p13)
}
  0x47   : > { %1124 = dma.hbm_to_vmem [thread:$0]  (!%p1500_p11), %s1547_s20, 64, %s199_s22, %s187_s4  }
  0x48   : > { %p1753_p10 = scmp.ne.s32.totalorder %s1752_s11, 0 }
  0x49   : > { %s1572_s12 = sand.u32 (!%p1753_p10), 1, %s1390_s13   ;;  %p1754_p8 = scmp.ne.s32.totalorder (!%p1753_p10), %s1748_s23, 0 }
  0x4a   : > { %207 = sbr.rel (%p1753_p10) target bundleno = 407 (0x197), region = 32  ;;  %s1029_s18 = sshll.u32 (!%p1753_p10), %s1572_s12, 9 }
  0x4b   : > { %s210_s21 = scalar_lea.sflag (!%p1753_p10), [#allocation3], %s1572_s12  ;;  %s1576_s6 = scalar_lea.vmem (!%p1753_p10), [#allocation2], %s1029_s18 }
  0x51   : > { %1377 = dma.done.wait (%p1754_p8), %s210_s21, 8192  }
  0x52   : > { %1379 = vsyncadd (%p1754_p8), %s210_s21, 4294959104  ;;  %s1030_s7 = sshll.u32 %s1572_s12, 2  ;;  %s219_s11 = scalar_lea.sflag [#allocation5], %s1572_s12 }
  0x53   : > { %s1584_s20 = scalar_lea.vmem [#allocation4], %s1030_s7 }
  0x54   : > { %1381 = dma.done.wait (%p1754_p8), %s219_s11, 64  }
  0x55   : > { %1383 = vsyncadd (%p1754_p8), %s219_s11, 4294967232  ;;  %v1177_v0 = vld [vmem:[%s1576_s6 + $0x4] ss:$16 sps:$4 sm:$0xff]   ;;  %v1179_v1 = vld [vmem:[%s1576_s6 + $0xc] ss:$16 sps:$4 sm:$0xff]   ;;  %s1031_s27 = sshll.u32 %s1572_s12, 5 }
  0x56   : > { %684 = vmatprep.subr.bf16.mxu0 %v1177_v0  ;;  %v1181_v2 = vld [vmem:[%s1576_s6] ss:$16 sps:$4 sm:$0xff]   ;;  %v1182_v3 = vld [vmem:[%s1576_s6 + $0x8] ss:$16 sps:$4 sm:$0xff]   ;;  %727 = vmatprep.subr.bf16.mxu1 %v1179_v1  ;;  %v1183_v4 = vld [vmem:[%s1576_s6 + $0x24] ss:$16 sps:$4 sm:$0xff]  }
  0x57   : > { %685 = vmatpush1.bf16.msra.mxu0 %v1181_v2  ;;  %728 = vmatpush1.bf16.msra.mxu1 %v1182_v3  ;;  %v1185_v5 = vld [vmem:[%s1576_s6 + $0x2c] ss:$16 sps:$4 sm:$0xff]   ;;  %v1187_v6 = vld [vmem:[%s1576_s6 + $0x20] ss:$16 sps:$4 sm:$0xff]   ;;  %v1188_v7 = vld [vmem:[%s1576_s6 + $0x28] ss:$16 sps:$4 sm:$0xff]   ;;  %v334_v2 = vlaneseq }
  0x58   : > { %686 = vmatprep.subr.bf16.mxu0 %v1183_v4  ;;  %729 = vmatprep.subr.bf16.mxu1 %v1185_v5  ;;  %v1189_v8 = vld [vmem:[%s1576_s6 + $0x44] ss:$16 sps:$4 sm:$0xff]   ;;  %v1191_v9 = vld [vmem:[%s1576_s6 + $0x4c] ss:$16 sps:$4 sm:$0xff]   ;;  %v1193_v10 = vld [vmem:[%s1576_s6 + $0x40] ss:$16 sps:$4 sm:$0xff]  }
  0x59   : > { %v1194_v11 = vld [vmem:[%s1576_s6 + $0x48] ss:$16 sps:$4 sm:$0xff]   ;;  %v1195_v12 = vld [vmem:[%s1576_s6 + $0x64] ss:$16 sps:$4 sm:$0xff]   ;;  %v1197_v13 = vld [vmem:[%s1576_s6 + $0x6c] ss:$16 sps:$4 sm:$0xff]  }
  0x5a   : > { %v1199_v14 = vld [vmem:[%s1576_s6 + $0x60] ss:$16 sps:$4 sm:$0xff]   ;;  %v1200_v15 = vld [vmem:[%s1576_s6 + $0x68] ss:$16 sps:$4 sm:$0xff]   ;;  %v1201_v16 = vld [vmem:[%s1576_s6 + $0x84] ss:$16 sps:$4 sm:$0xff]  }
  0x5b   : > { %687 = vmatpush1.bf16.msra.mxu0 %v1187_v6  ;;  %730 = vmatpush1.bf16.msra.mxu1 %v1188_v7  ;;  %v1203_v17 = vld [vmem:[%s1576_s6 + $0x8c] ss:$16 sps:$4 sm:$0xff]   ;;  %v1205_v18 = vld [vmem:[%s1576_s6 + $0x80] ss:$16 sps:$4 sm:$0xff]   ;;  %v1206_v19 = vld [vmem:[%s1576_s6 + $0x88] ss:$16 sps:$4 sm:$0xff]  }
  0x5c   : > { %688 = vmatprep.subr.bf16.mxu0 %v1189_v8  ;;  %731 = vmatprep.subr.bf16.mxu1 %v1191_v9  ;;  %v1207_v20 = vld [vmem:[%s1576_s6 + $0xa4] ss:$16 sps:$4 sm:$0xff]   ;;  %v1209_v21 = vld [vmem:[%s1576_s6 + $0xac] ss:$16 sps:$4 sm:$0xff]   ;;  %v1211_v22 = vld [vmem:[%s1576_s6 + $0xa0] ss:$16 sps:$4 sm:$0xff]  }
  0x5d   : > { %v1212_v23 = vld [vmem:[%s1576_s6 + $0xa8] ss:$16 sps:$4 sm:$0xff]   ;;  %v1213_v24 = vld [vmem:[%s1576_s6 + $0xc4] ss:$16 sps:$4 sm:$0xff]   ;;  %v1215_v25 = vld [vmem:[%s1576_s6 + $0xcc] ss:$16 sps:$4 sm:$0xff]  }
  0x5e   : > { %v1217_v26 = vld [vmem:[%s1576_s6 + $0xc0] ss:$16 sps:$4 sm:$0xff]   ;;  %v1218_v27 = vld [vmem:[%s1576_s6 + $0xc8] ss:$16 sps:$4 sm:$0xff]   ;;  %v1219_v28 = vld [vmem:[%s1576_s6 + $0xe4] ss:$16 sps:$4 sm:$0xff]  }
  0x5f   : > { %689 = vmatpush1.bf16.msra.mxu0 %v1193_v10  ;;  %732 = vmatpush1.bf16.msra.mxu1 %v1194_v11  ;;  %v1221_v29 = vld [vmem:[%s1576_s6 + $0xec] ss:$16 sps:$4 sm:$0xff]   ;;  %v1223_v30 = vld [vmem:[%s1576_s6 + $0xe0] ss:$16 sps:$4 sm:$0xff]   ;;  %v1224_v31 = vld [vmem:[%s1576_s6 + $0xe8] ss:$16 sps:$4 sm:$0xff]  }
  0x60   : > { %690 = vmatprep.subr.bf16.mxu0 %v1195_v12  ;;  %733 = vmatprep.subr.bf16.mxu1 %v1197_v13  ;;  %v1225_v32 = vld [vmem:[%s1576_s6 + $0x104] ss:$16 sps:$4 sm:$0xff]   ;;  %v1227_v33 = vld [vmem:[%s1576_s6 + $0x10c] ss:$16 sps:$4 sm:$0xff]   ;;  %v1229_v34 = vld [vmem:[%s1576_s6 + $0x100] ss:$16 sps:$4 sm:$0xff]  }
  0x61   : > { %v1230_v35 = vld [vmem:[%s1576_s6 + $0x108] ss:$16 sps:$4 sm:$0xff]   ;;  %v1231_v36 = vld [vmem:[%s1576_s6 + $0x124] ss:$16 sps:$4 sm:$0xff]   ;;  %v1233_v37 = vld [vmem:[%s1576_s6 + $0x12c] ss:$16 sps:$4 sm:$0xff]  }
  0x62   : > { %v1235_v38 = vld [vmem:[%s1576_s6 + $0x120] ss:$16 sps:$4 sm:$0xff]   ;;  %v1236_v39 = vld [vmem:[%s1576_s6 + $0x128] ss:$16 sps:$4 sm:$0xff]   ;;  %v1237_v40 = vld [vmem:[%s1576_s6 + $0x144] ss:$16 sps:$4 sm:$0xff]  }
  0x63   : > { %691 = vmatpush1.bf16.msra.mxu0 %v1199_v14  ;;  %734 = vmatpush1.bf16.msra.mxu1 %v1200_v15  ;;  %v1239_v41 = vld [vmem:[%s1576_s6 + $0x14c] ss:$16 sps:$4 sm:$0xff]   ;;  %v1241_v42 = vld [vmem:[%s1576_s6 + $0x140] ss:$16 sps:$4 sm:$0xff]   ;;  %v1242_v43 = vld [vmem:[%s1576_s6 + $0x148] ss:$16 sps:$4 sm:$0xff]  }
  0x64   : > { %692 = vmatprep.subr.bf16.mxu0 %v1201_v16  ;;  %735 = vmatprep.subr.bf16.mxu1 %v1203_v17  ;;  %v1243_v44 = vld [vmem:[%s1576_s6 + $0x164] ss:$16 sps:$4 sm:$0xff]   ;;  %v1245_v45 = vld [vmem:[%s1576_s6 + $0x16c] ss:$16 sps:$4 sm:$0xff]   ;;  %v1247_v47 = vld [vmem:[%s1576_s6 + $0x160] ss:$16 sps:$4 sm:$0xff]  }
  0x65   : > { %v1275_v46 = vld [vmem:[%s1742_s0 + $0x4] ss:$8 sps:$4 sm:$0xff]   ;;  %v1248_v48 = vld [vmem:[%s1576_s6 + $0x168] ss:$16 sps:$4 sm:$0xff]   ;;  %v1253_v51 = vld [vmem:[%s1576_s6 + $0x180] ss:$16 sps:$4 sm:$0xff]  }
  0x66   : > { %v1249_v49 = vld [vmem:[%s1576_s6 + $0x184] ss:$16 sps:$4 sm:$0xff]   ;;  %v1251_v50 = vld [vmem:[%s1576_s6 + $0x18c] ss:$16 sps:$4 sm:$0xff]   ;;  %716 = vmatprep.mubr.bf16.mxu0 %v1275_v46  ;;  %759 = vmatprep.mubr.bf16.mxu1 %v1275_v46  ;;  %v1254_v52 = vld [vmem:[%s1576_s6 + $0x188] ss:$16 sps:$4 sm:$0xff]  }
  0x67   : > { %693 = vmatpush1.bf16.msra.mxu0 %v1205_v18  ;;  %736 = vmatpush1.bf16.msra.mxu1 %v1206_v19  ;;  %v1255_v53 = vld [vmem:[%s1576_s6 + $0x1a4] ss:$16 sps:$4 sm:$0xff]   ;;  %v1257_v54 = vld [vmem:[%s1576_s6 + $0x1ac] ss:$16 sps:$4 sm:$0xff]   ;;  %v1259_v55 = vld [vmem:[%s1576_s6 + $0x1a0] ss:$16 sps:$4 sm:$0xff]  }
  0x68   : > { %694 = vmatprep.subr.bf16.mxu0 %v1207_v20  ;;  %737 = vmatprep.subr.bf16.mxu1 %v1209_v21  ;;  %v1260_v56 = vld [vmem:[%s1576_s6 + $0x1a8] ss:$16 sps:$4 sm:$0xff]   ;;  %v1261_v57 = vld [vmem:[%s1576_s6 + $0x1c4] ss:$16 sps:$4 sm:$0xff]   ;;  %v1263_v58 = vld [vmem:[%s1576_s6 + $0x1cc] ss:$16 sps:$4 sm:$0xff]  }
  0x69   : > { %v1265_v59 = vld [vmem:[%s1576_s6 + $0x1c0] ss:$16 sps:$4 sm:$0xff]   ;;  %v1266_v60 = vld [vmem:[%s1576_s6 + $0x1c8] ss:$16 sps:$4 sm:$0xff]   ;;  %v1267_v61 = vld [vmem:[%s1576_s6 + $0x1e4] ss:$16 sps:$4 sm:$0xff]  }
  0x6a   : > { %v1269_v62 = vld [vmem:[%s1576_s6 + $0x1ec] ss:$16 sps:$4 sm:$0xff]   ;;  %v1271_v63 = vld [vmem:[%s1576_s6 + $0x1e0] ss:$16 sps:$4 sm:$0xff]   ;;  %v1272_v0 = vld [vmem:[%s1576_s6 + $0x1e8] ss:$16 sps:$4 sm:$0xff]  }
  0x6b   : > { %695 = vmatpush1.bf16.msra.mxu0 %v1211_v22  ;;  %738 = vmatpush1.bf16.msra.mxu1 %v1212_v23  ;;  %v1273_v1 = vld [vmem:[%s1742_s0] ss:$8 sps:$4 sm:$0xff]   ;;  %v335_v3 = vshrl.u32 %v334_v2, 7  ;;  %v332_v6 = vld [vmem:[%s1584_s20] sm:$0xf]  ;;  %s254_s28 = scalar_lea.vmem [#allocation6], %s1031_s27 }
  0x6c   : > { %696 = vmatprep.subr.bf16.mxu0 %v1213_v24  ;;  %739 = vmatprep.subr.bf16.mxu1 %v1215_v25  ;;  %p1755_p11 = scmp.ne.s32.totalorder %s1749_s25, 0 }
  0x6d   : > { %v336_v4 = vsub.s32 0, %v335_v3  ;;  %v344_v5 = vsub.s32 2, %v335_v3  ;;  %v340_v7 = vsub.s32 1, %v335_v3  ;;  %v348_v8 = vsub.s32 3, %v335_v3  ;;  %s1113_s29 = sshll.u32 (%p1755_p11), %s1398_s15, 4 }
  0x6e   : > { %s882_s5 = scalar_lea.vmem (%p1755_p11), %s1745_s3, %s1113_s29 }
  0x6f   : > { %697 = vmatpush1.bf16.msra.mxu0 %v1217_v26  ;;  %740 = vmatpush1.bf16.msra.mxu1 %v1218_v27  ;;  %v337_v9 = vrot.slane %v332_v6, %v336_v4  ;;  %v345_v10 = vrot.slane %v332_v6, %v344_v5  ;;  %v341_v11 = vrot.slane %v332_v6, %v340_v7 }
  0x70   : > { %698 = vmatprep.subr.bf16.mxu0 %v1219_v28  ;;  %741 = vmatprep.subr.bf16.mxu1 %v1221_v29  ;;  %v349_v12 = vrot.slane %v332_v6, %v348_v8 }
  0x73   : > { %699 = vmatpush1.bf16.msra.mxu0 %v1223_v30  ;;  %742 = vmatpush1.bf16.msra.mxu1 %v1224_v31 }
  0x74   : > { %700 = vmatprep.subr.bf16.mxu0 %v1225_v32  ;;  %743 = vmatprep.subr.bf16.mxu1 %v1227_v33 }
  0x77   : > { %701 = vmatpush1.bf16.msra.mxu0 %v1229_v34  ;;  %744 = vmatpush1.bf16.msra.mxu1 %v1230_v35 }
  0x78   : > { %702 = vmatprep.subr.bf16.mxu0 %v1231_v36  ;;  %745 = vmatprep.subr.bf16.mxu1 %v1233_v37 }
  0x7b   : > { %703 = vmatpush1.bf16.msra.mxu0 %v1235_v38  ;;  %746 = vmatpush1.bf16.msra.mxu1 %v1236_v39 }
  0x7c   : > { %704 = vmatprep.subr.bf16.mxu0 %v1237_v40  ;;  %747 = vmatprep.subr.bf16.mxu1 %v1239_v41 }
  0x7f   : > { %705 = vmatpush1.bf16.msra.mxu0 %v1241_v42  ;;  %748 = vmatpush1.bf16.msra.mxu1 %v1242_v43 }
  0x80   : > { %706 = vmatprep.subr.bf16.mxu0 %v1243_v44  ;;  %749 = vmatprep.subr.bf16.mxu1 %v1245_v45 }
  0x83   : > { %707 = vmatpush1.bf16.msra.mxu0 %v1247_v47  ;;  %750 = vmatpush1.bf16.msra.mxu1 %v1248_v48 }
  0x84   : > { %708 = vmatprep.subr.bf16.mxu0 %v1249_v49  ;;  %751 = vmatprep.subr.bf16.mxu1 %v1251_v50 }
  0x87   : > { %709 = vmatpush1.bf16.msra.mxu0 %v1253_v51  ;;  %752 = vmatpush1.bf16.msra.mxu1 %v1254_v52 }
  0x88   : > { %710 = vmatprep.subr.bf16.mxu0 %v1255_v53  ;;  %753 = vmatprep.subr.bf16.mxu1 %v1257_v54 }
  0x8b   : > { %711 = vmatpush1.bf16.msra.mxu0 %v1259_v55  ;;  %754 = vmatpush1.bf16.msra.mxu1 %v1260_v56 }
  0x8c   : > { %712 = vmatprep.subr.bf16.mxu0 %v1261_v57  ;;  %755 = vmatprep.subr.bf16.mxu1 %v1263_v58 }
  0x8f   : > { %713 = vmatpush1.bf16.msra.mxu0 %v1265_v59  ;;  %756 = vmatpush1.bf16.msra.mxu1 %v1266_v60 }
  0x90   : > { %714 = vmatprep.subr.bf16.mxu0 %v1267_v61  ;;  %757 = vmatprep.subr.bf16.mxu1 %v1269_v62 }
  0x93   : > { %715 = vmatpush1.bf16.msra.mxu0 %v1271_v63  ;;  %758 = vmatpush1.bf16.msra.mxu1 %v1272_v0 }
  0x96   : > { %717 = vmatmul.mubr.bf16.vlgmr.msra.gmra.mrb[0].mxu0 %v1273_v1  ;;  %760 = vmatmul.mubr.bf16.vlgmr.msra.gmra.mrb[0].mxu1 %v1273_v1 }
 0x169   : > { %v718_v13 = vpop.f32.mrb[0].mxu0  ;;  %v761_v14 = vpop.f32.mrb[0].mxu1 }
 0x16a   : > { %v1661_v15 = vadd.f32 %v718_v13, %v337_v9  ;;  %v1663_v16 = vadd.f32 %v761_v14, %v345_v10  ;;  %v720_v17 = vpop.f32.mrb[1].mxu0  ;;  %v763_v18 = vpop.f32.mrb[1].mxu1 }
 0x16b   : > { %v1665_v19 = vadd.f32 %v720_v17, %v341_v11  ;;  %v1667_v20 = vadd.f32 %v763_v18, %v349_v12  ;;  %v722_v21 = vpop.f32.mrb[2].mxu0  ;;  %v765_v22 = vpop.f32.mrb[2].mxu1 }
 0x16c   : > { %v778_v23 = vmul.f32 0.044715, %v1661_v15  ;;  %v780_v24 = vmul.f32 0.044715, %v1663_v16  ;;  %v1675_v29 = vadd.f32 %v722_v21, %v337_v9  ;;  %v1677_v30 = vadd.f32 %v765_v22, %v345_v10  ;;  %v724_v31 = vpop.f32.mrb[3].mxu0  ;;  %v767_v32 = vpop.f32.mrb[3].mxu1 }
 0x16d   : > { %v779_v25 = vmul.f32 0.044715, %v1665_v19  ;;  %v781_v26 = vmul.f32 0.044715, %v1667_v20  ;;  %v1681_v35 = vadd.f32 %v724_v31, %v341_v11  ;;  %v1692_v45 = vadd.f32 %v767_v32, %v349_v12 }
 0x16e   : > { %v786_v27 = vmul.f32 %v778_v23, %v1661_v15  ;;  %v788_v28 = vmul.f32 %v780_v24, %v1663_v16  ;;  %v782_v38 = vmul.f32 0.044715, %v1675_v29  ;;  %v784_v41 = vmul.f32 0.044715, %v1677_v30 }
 0x16f   : > { %v787_v33 = vmul.f32 %v779_v25, %v1665_v19  ;;  %v789_v34 = vmul.f32 %v781_v26, %v1667_v20  ;;  %v783_v49 = vmul.f32 0.044715, %v1681_v35  ;;  %v785_v58 = vmul.f32 0.044715, %v1692_v45 }
 0x170   : > { %v794_v36 = vmul.f32 %v786_v27, %v1661_v15  ;;  %v796_v37 = vmul.f32 %v788_v28, %v1663_v16  ;;  %v790_v44 = vmul.f32 %v782_v38, %v1675_v29  ;;  %v792_v48 = vmul.f32 %v784_v41, %v1677_v30 }
 0x171   : > { %v795_v39 = vmul.f32 %v787_v33, %v1665_v19  ;;  %v797_v40 = vmul.f32 %v789_v34, %v1667_v20  ;;  %v791_v56 = vmul.f32 %v783_v49, %v1681_v35  ;;  %v793_v62 = vmul.f32 %v785_v58, %v1692_v45 }
 0x172   : > { %v802_v42 = vadd.f32 %v794_v36, %v1661_v15  ;;  %v804_v43 = vadd.f32 %v796_v37, %v1663_v16  ;;  %v798_v52 = vmul.f32 %v790_v44, %v1675_v29  ;;  %v800_v55 = vmul.f32 %v792_v48, %v1677_v30 }
 0x173   : > { %v803_v46 = vadd.f32 %v795_v39, %v1665_v19  ;;  %v805_v47 = vadd.f32 %v797_v40, %v1667_v20  ;;  %v799_v60 = vmul.f32 %v791_v56, %v1681_v35  ;;  %v801_v1 = vmul.f32 %v793_v62, %v1692_v45 }
 0x174   : > { %v810_v50 = vmul.f32 0.7978846, %v802_v42  ;;  %v812_v51 = vmul.f32 0.7978846, %v804_v43  ;;  %v806_v57 = vadd.f32 %v798_v52, %v1675_v29  ;;  %v808_v59 = vadd.f32 %v800_v55, %v1677_v30 }
 0x175   : > { %v811_v53 = vmul.f32 0.7978846, %v803_v46  ;;  %v813_v54 = vmul.f32 0.7978846, %v805_v47  ;;  %v807_v0 = vadd.f32 %v799_v60, %v1681_v35  ;;  %v809_v3 = vadd.f32 %v801_v1, %v1692_v45 }
 0x176   : > { %1276 = vtanh.f32 %v810_v50  ;;  %v814_v61 = vmul.f32 0.7978846, %v806_v57  ;;  %v816_v63 = vmul.f32 0.7978846, %v808_v59  ;;  %v770_v7 = vmul.f32 0.5, %v1661_v15 }
 0x177   : > { %1278 = vtanh.f32 %v812_v51  ;;  %v815_v2 = vmul.f32 0.7978846, %v807_v0  ;;  %v817_v4 = vmul.f32 0.7978846, %v809_v3  ;;  %v772_v10 = vmul.f32 0.5, %v1663_v16 }
 0x178   : > { %1280 = vtanh.f32 %v811_v53  ;;  %v771_v14 = vmul.f32 0.5, %v1665_v19  ;;  %v773_v22 = vmul.f32 0.5, %v1667_v20  ;;  %v774_v27 = vmul.f32 0.5, %v1675_v29 }
 0x179   : > { %1282 = vtanh.f32 %v813_v54  ;;  %v775_v34 = vmul.f32 0.5, %v1681_v35  ;;  %v776_v36 = vmul.f32 0.5, %v1677_v30  ;;  %v777_v39 = vmul.f32 0.5, %v1692_v45 }
 0x17a   : > { %1284 = vtanh.f32 %v814_v61 }
 0x17b   : > { %1286 = vtanh.f32 %v816_v63 }
 0x17c   : > { %1288 = vtanh.f32 %v815_v2 }
 0x17d   : > { %1290 = vtanh.f32 %v817_v4 }
 0x180   : > { %v1277_v5 = vpop.eup %1276 }
 0x181   : > { %v1279_v6 = vpop.eup %1278  ;;  %v826_v8 = vadd.f32 1.0, %v1277_v5 }
 0x182   : > { %v1281_v9 = vpop.eup %1280  ;;  %v828_v11 = vadd.f32 1.0, %v1279_v6 }
 0x183   : > { %v1283_v12 = vpop.eup %1282  ;;  %v834_v13 = vmul.f32 %v826_v8, %v770_v7  ;;  %v827_v17 = vadd.f32 1.0, %v1281_v9 }
 0x184   : > { %v1285_v18 = vpop.eup %1284  ;;  %v836_v21 = vmul.f32 %v828_v11, %v772_v10  ;;  %v829_v23 = vadd.f32 1.0, %v1283_v12 }
 0x185   : > { %v1287_v24 = vpop.eup %1286  ;;  %v835_v25 = vmul.f32 %v827_v17, %v771_v14  ;;  %v830_v26 = vadd.f32 1.0, %v1285_v18 }
 0x186   : > { %v837_v15 = vmul.f32 %v829_v23, %v773_v22  ;;  %v1289_v28 = vpop.eup %1288  ;;  %v832_v31 = vadd.f32 1.0, %v1287_v24 }
 0x187   : > { %v1109_v16 = vpack.c.bf16 %v835_v25, %v834_v13  ;;  %v838_v33 = vmul.f32 %v830_v26, %v774_v27  ;;  %v831_v19 = vadd.f32 1.0, %v1289_v28  ;;  %v1291_v20 = vpop.eup %1290 }
 0x188   : > { %v1110_v32 = vpack.c.bf16 %v837_v15, %v836_v21  ;;  %v840_v38 = vmul.f32 %v832_v31, %v776_v36  ;;  %v833_v40 = vadd.f32 1.0, %v1291_v20  ;;  %876 = sbr.rel (!%p1755_p11) target bundleno = 407 (0x197), region = 44 }
 0x189   : > { %866 = vst [vmem:[%s254_s28] sm:$0xff] %v1109_v16  ;;  %v839_v37 = vmul.f32 %v831_v19, %v775_v34 }
 0x18a   : > { %867 = vst [vmem:[%s254_s28 + $0x8] sm:$0xff] %v1110_v32  ;;  %v841_v41 = vmul.f32 %v833_v40, %v777_v39 }
 0x18b   : > { %v1111_v29 = vpack.c.bf16 %v839_v37, %v838_v33 }
 0x18c   : > { %v1112_v42 = vpack.c.bf16 %v841_v41, %v840_v38 }
 0x18d   : > { %868 = vst [vmem:[%s254_s28 + $0x10] sm:$0xff] %v1111_v29 }
 0x18e   : > { %869 = vst [vmem:[%s254_s28 + $0x18] sm:$0xff] %v1112_v42 }
 0x190   : > { %v895_v35 = vld [vmem:[%s254_s28] sm:$0xff] }
 0x191   : > { %v897_v43 = vld [vmem:[%s254_s28 + $0x8] sm:$0xff]  ;;  %896 = vst [vmem:[%s882_s5] sm:$0xff] %v895_v35 }
 0x192   : > { %898 = vst [vmem:[%s882_s5 + $0x8] sm:$0xff] %v897_v43 }
 0x194   : > { %v899_v30 = vld [vmem:[%s254_s28 + $0x10] sm:$0xff] }
 0x195   : > { %v901_v44 = vld [vmem:[%s254_s28 + $0x18] sm:$0xff]  ;;  %900 = vst [vmem:[%s882_s5 + $0x20] sm:$0xff] %v899_v30 }
 0x196   : > { %902 = vst [vmem:[%s882_s5 + $0x28] sm:$0xff] %v901_v44 }
 0x197 PF: > { %s19_s17 = sadd.s32 1, %s1406_s17   ;;  %s1756_s12 = smov %s1390_s13 }
 0x198   : > { %p16_p0 = scmp.ge.s32.totalorder %s19_s17, 4   ;;  %s1757_s13 = smov %s1394_s14 }
 0x199   : > { %s1758_s14 = smov %s1481_s24  ;;  %s1759_s15 = smov %s1402_s16 }
 0x19a   : > { %s1760_s16 = smov %s1762_s19  ;;  %18 = sbr.rel (!%p16_p0) target bundleno = 6 (0x6), region = 111 }
 0x1a1   :  { %918 = vsyncpa [#allocation3], 1 }
 0x1a2   :  { %920 = vsyncpa [#allocation3 + $0x1], 1 }
 0x1a3   :  { %921 = vsyncpa [#allocation5], 1 }
 0x1a4   :  { %923 = vsyncpa [#allocation5 + $0x1], 1 }

// kernel: _forward_jit.17
= control target key start
LH: loop header
LB: loop body
LE: loop exit
PB: predicated region body
PF: predicated region fallthrough
CT: control target
= control target key end

     0   :  { %11 = vsyncpa [#allocation3], 0  ;;  %s1778_s0 = inlined_call_operand.vmem [shape: bf16[16,1024], index: 0, kind: input, shape index: {}]   ;;  %s1779_s1 = inlined_call_operand.hbm [shape: bf16[1024,256], index: 1, kind: input, shape index: {}]   ;;  %s1780_s2 = inlined_call_operand.hbm [shape: f32[1,256], index: 2, kind: input, shape index: {}]   ;;  %s1781_s3 = inlined_call_operand.vmem [shape: bf16[16,256], index: 3, kind: input, shape index: {}]   ;;  %s1782_s4 = inlined_call_operand.hbm [shape: f32[1,256], index: 4, kind: input, shape index: {}]   ;;  %s1783_s5 = inlined_call_operand.hbm [shape: f32[1,256], index: 5, kind: input, shape index: {}]   ;;  %s1784_s6 = inlined_call_operand.vmem [shape: bf16[16,256], index: 6, kind: output, shape index: {}]  }
   0x1   :  { %12 = vsyncpa [#allocation5], 0 }
   0x2   :  { %13 = vsyncpa [#allocation8], 0  ;;  %s1620_s21 = smov [#allocation4]   ;;  %s1621_s23 = smov [#allocation2]  }
   0x3   :  { %s34_s22 = sshll.u32 %s1620_s21, 4  ;;  %s21_s24 = sshll.u32 %s1621_s23, 4  ;;  %s35_s22 = int_to_ptr.vmem [resolvable:$true] %s34_s22  ;;  %s1661_s24 = int_to_ptr.vmem [resolvable:$true] %s21_s24 }
   0x4   :  { %s1526_s27 = scalar_lea.hbm %s1780_s2, 32 }
   0x5   :  { %p1527_p0 = scmp.ne.s32.totalorder %s1780_s2, %s1526_s27  ;;  %p1530_p1 = scmp.lt.u32.totalorder %s1526_s27, %s1780_s2 }
   0x7   :  { %p1532_p2 = pnand %p1530_p1, %p1527_p0 }
   0x9   :  { %1535 = shalt.err (!%p1532_p2)
}
   0xa   :  { %s1536_s8 = scalar_lea.vmem %s35_s22, 32  ;;  %p1541_p4 = scmp.lt.s32.totalorder %s35_s22, %s35_s22 }
   0xb   :  { %p1537_p3 = scmp.ne.s32.totalorder %s35_s22, %s1536_s8  ;;  %p1542_p5 = scmp.lt.s32.totalorder %s1536_s8, %s1536_s8 }
   0xd   :  { %p1543_p6 = por %p1542_p5, %p1541_p4 }
   0xf   :  { %p1544_p7 = pnand %p1543_p6, %p1537_p3 }
  0x11   :  { %1547 = shalt.err (!%p1544_p7)
}
  0x12   :  { %37 = dma.hbm_to_vmem [thread:$0]  %s1780_s2, 32, %s35_s22, [#allocation5]  }
  0x13   :  { %s1548_s13 = scalar_lea.hbm %s1779_s1, 16384 }
  0x14   :  { %p1549_p8 = scmp.ne.s32.totalorder %s1779_s1, %s1548_s13  ;;  %p1552_p9 = scmp.lt.u32.totalorder %s1548_s13, %s1779_s1 }
  0x16   :  { %p1554_p10 = pnand %p1552_p9, %p1549_p8 }
  0x18   :  { %1557 = shalt.err (!%p1554_p10)
}
  0x19   :  { %s1558_s18 = scalar_lea.vmem %s1661_s24, 16384  ;;  %p1563_p12 = scmp.lt.s32.totalorder %s1661_s24, %s1661_s24 }
  0x1a   :  { %p1559_p11 = scmp.ne.s32.totalorder %s1661_s24, %s1558_s18  ;;  %p1564_p13 = scmp.lt.s32.totalorder %s1558_s18, %s1558_s18 }
  0x1c   :  { %p1565_p0 = por %p1564_p13, %p1563_p12 }
  0x1e   :  { %p1566_p1 = pnand %p1565_p0, %p1559_p11 }
  0x20   :  { %1569 = shalt.err (!%p1566_p1)
}
  0x21   :  { %s1622_s2 = smov 128   ;;  %s1623_s19 = smov 8  }
  0x22   :  { %27 = dma.hbm_to_vmem [thread:$0]  %s1779_s1, 16384, %s1661_s24, [#allocation3], %s1622_s2, %s1622_s2, %s1623_s19  }
  0x23   :  { %s1624_s22 = smov [#allocation6]   ;;  %s1625_s25 = smov [#allocation7]  }
  0x24   :  { %s46_s23 = sshll.u32 %s1624_s22, 4  ;;  %s56_s26 = sshll.u32 %s1625_s25, 4  ;;  %s47_s23 = int_to_ptr.vmem [resolvable:$true] %s46_s23  ;;  %s57_s26 = int_to_ptr.vmem [resolvable:$true] %s56_s26 }
  0x25   :  { %s1570_s29 = scalar_lea.hbm %s1782_s4, 32 }
  0x26   :  { %p1571_p2 = scmp.ne.s32.totalorder %s1782_s4, %s1570_s29  ;;  %p1574_p3 = scmp.lt.u32.totalorder %s1570_s29, %s1782_s4 }
  0x28   :  { %p1576_p4 = pnand %p1574_p3, %p1571_p2 }
  0x2a   :  { %1579 = shalt.err (!%p1576_p4)
}
  0x2b   :  { %s1580_s1 = scalar_lea.vmem %s47_s23, 32  ;;  %p1585_p6 = scmp.lt.s32.totalorder %s47_s23, %s47_s23 }
  0x2c   :  { %p1581_p5 = scmp.ne.s32.totalorder %s47_s23, %s1580_s1  ;;  %p1586_p7 = scmp.lt.s32.totalorder %s1580_s1, %s1580_s1 }
  0x2e   :  { %p1587_p8 = por %p1586_p7, %p1585_p6 }
  0x30   :  { %p1588_p9 = pnand %p1587_p8, %p1581_p5 }
  0x32   :  { %1591 = shalt.err (!%p1588_p9)
}
  0x33   :  { %49 = dma.hbm_to_vmem [thread:$0]  %s1782_s4, 32, %s47_s23, [#allocation5]  }
  0x34   :  { %s1592_s13 = scalar_lea.hbm %s1783_s5, 32 }
  0x35   :  { %p1593_p10 = scmp.ne.s32.totalorder %s1783_s5, %s1592_s13  ;;  %p1596_p11 = scmp.lt.u32.totalorder %s1592_s13, %s1783_s5 }
  0x37   :  { %p1598_p12 = pnand %p1596_p11, %p1593_p10 }
  0x39   :  { %1601 = shalt.err (!%p1598_p12)
}
  0x3a   :  { %s1602_s18 = scalar_lea.vmem %s57_s26, 32  ;;  %p1607_p0 = scmp.lt.s32.totalorder %s57_s26, %s57_s26 }
  0x3b   :  { %p1603_p13 = scmp.ne.s32.totalorder %s57_s26, %s1602_s18  ;;  %p1608_p1 = scmp.lt.s32.totalorder %s1602_s18, %s1602_s18 }
  0x3d   :  { %p1609_p2 = por %p1608_p1, %p1607_p0 }
  0x3f   :  { %p1610_p3 = pnand %p1609_p2, %p1603_p13 }
  0x41   :  { %1613 = shalt.err (!%p1610_p3)
}
  0x42   :  { %59 = dma.hbm_to_vmem [thread:$0]  %s1783_s5, 32, %s57_s26, [#allocation8]  }
  0x43   :  { %1614 = dma.done.wait [#allocation3], 16384  }
  0x44   :  { %1615 = vsyncadd [#allocation3], 4294950912 }
  0x45   :  { %1616 = dma.done.wait [#allocation5], 64  }
  0x46   :  { %1617 = vsyncadd [#allocation5], 4294967232 }
  0x47   :  { %1618 = dma.done.wait [#allocation8], 32  }
  0x48   :  { %1619 = vsyncadd [#allocation8], 4294967264  ;;  %v1330_v0 = vld [vmem:[#allocation2 + $0x4] ss:$8 sps:$4 sm:$0xff]   ;;  %v1334_v2 = vld [vmem:[#allocation2] ss:$8 sps:$4 sm:$0xff]  }
  0x49   :  { %v1332_v1 = vld [vmem:[#allocation2 + $0x204] ss:$8 sps:$4 sm:$0xff]   ;;  %900 = vmatprep.subr.bf16.mxu1 %v1330_v0  ;;  %v1335_v3 = vld [vmem:[#allocation2 + $0x200] ss:$8 sps:$4 sm:$0xff]   ;;  %v1336_v4 = vld [vmem:[#allocation2 + $0x14] ss:$8 sps:$4 sm:$0xff]  }
  0x4a   :  { %986 = vmatprep.subr.bf16.mxu0 %v1332_v1  ;;  %901 = vmatpush1.bf16.msra.mxu1 %v1334_v2  ;;  %v1338_v5 = vld [vmem:[#allocation2 + $0x214] ss:$8 sps:$4 sm:$0xff]   ;;  %v1340_v6 = vld [vmem:[#allocation2 + $0x10] ss:$8 sps:$4 sm:$0xff]   ;;  %v1342_v8 = vld [vmem:[#allocation2 + $0x24] ss:$8 sps:$4 sm:$0xff]  }
  0x4b   :  { %987 = vmatpush1.bf16.msra.mxu0 %v1335_v3  ;;  %902 = vmatprep.subr.bf16.mxu1 %v1336_v4  ;;  %v1341_v7 = vld [vmem:[#allocation2 + $0x210] ss:$8 sps:$4 sm:$0xff]   ;;  %v1344_v9 = vld [vmem:[#allocation2 + $0x224] ss:$8 sps:$4 sm:$0xff]   ;;  %v1346_v10 = vld [vmem:[#allocation2 + $0x20] ss:$8 sps:$4 sm:$0xff]  }
  0x4c   :  { %988 = vmatprep.subr.bf16.mxu0 %v1338_v5  ;;  %v1347_v11 = vld [vmem:[#allocation2 + $0x220] ss:$8 sps:$4 sm:$0xff]   ;;  %v1348_v12 = vld [vmem:[#allocation2 + $0x34] ss:$8 sps:$4 sm:$0xff]   ;;  %v1352_v14 = vld [vmem:[#allocation2 + $0x30] ss:$8 sps:$4 sm:$0xff]  }
  0x4d   :  { %v1350_v13 = vld [vmem:[#allocation2 + $0x234] ss:$8 sps:$4 sm:$0xff]   ;;  %v1353_v15 = vld [vmem:[#allocation2 + $0x230] ss:$8 sps:$4 sm:$0xff]   ;;  %v1354_v16 = vld [vmem:[#allocation2 + $0x44] ss:$8 sps:$4 sm:$0xff]  }
  0x4e   :  { %903 = vmatpush1.bf16.msra.mxu1 %v1340_v6  ;;  %v1356_v17 = vld [vmem:[#allocation2 + $0x244] ss:$8 sps:$4 sm:$0xff]   ;;  %v1358_v18 = vld [vmem:[#allocation2 + $0x40] ss:$8 sps:$4 sm:$0xff]   ;;  %v1360_v20 = vld [vmem:[#allocation2 + $0x54] ss:$8 sps:$4 sm:$0xff]  }
  0x4f   :  { %989 = vmatpush1.bf16.msra.mxu0 %v1341_v7  ;;  %904 = vmatprep.subr.bf16.mxu1 %v1342_v8  ;;  %v1359_v19 = vld [vmem:[#allocation2 + $0x240] ss:$8 sps:$4 sm:$0xff]   ;;  %v1362_v21 = vld [vmem:[#allocation2 + $0x254] ss:$8 sps:$4 sm:$0xff]   ;;  %v1364_v22 = vld [vmem:[#allocation2 + $0x50] ss:$8 sps:$4 sm:$0xff]  }
  0x50   :  { %990 = vmatprep.subr.bf16.mxu0 %v1344_v9  ;;  %v1365_v23 = vld [vmem:[#allocation2 + $0x250] ss:$8 sps:$4 sm:$0xff]   ;;  %v1366_v24 = vld [vmem:[#allocation2 + $0x64] ss:$8 sps:$4 sm:$0xff]   ;;  %v1370_v26 = vld [vmem:[#allocation2 + $0x60] ss:$8 sps:$4 sm:$0xff]  }
  0x51   :  { %v1368_v25 = vld [vmem:[#allocation2 + $0x264] ss:$8 sps:$4 sm:$0xff]   ;;  %v1371_v27 = vld [vmem:[#allocation2 + $0x260] ss:$8 sps:$4 sm:$0xff]   ;;  %v1372_v28 = vld [vmem:[#allocation2 + $0x74] ss:$8 sps:$4 sm:$0xff]  }
  0x52   :  { %905 = vmatpush1.bf16.msra.mxu1 %v1346_v10  ;;  %v1374_v29 = vld [vmem:[#allocation2 + $0x274] ss:$8 sps:$4 sm:$0xff]   ;;  %v1376_v30 = vld [vmem:[#allocation2 + $0x70] ss:$8 sps:$4 sm:$0xff]   ;;  %v1378_v32 = vld [vmem:[#allocation2 + $0x84] ss:$8 sps:$4 sm:$0xff]  }
  0x53   :  { %991 = vmatpush1.bf16.msra.mxu0 %v1347_v11  ;;  %906 = vmatprep.subr.bf16.mxu1 %v1348_v12  ;;  %v1377_v31 = vld [vmem:[#allocation2 + $0x270] ss:$8 sps:$4 sm:$0xff]   ;;  %v1380_v33 = vld [vmem:[#allocation2 + $0x284] ss:$8 sps:$4 sm:$0xff]   ;;  %v1382_v34 = vld [vmem:[#allocation2 + $0x80] ss:$8 sps:$4 sm:$0xff]  }
  0x54   :  { %992 = vmatprep.subr.bf16.mxu0 %v1350_v13  ;;  %v1383_v35 = vld [vmem:[#allocation2 + $0x280] ss:$8 sps:$4 sm:$0xff]   ;;  %v1384_v36 = vld [vmem:[#allocation2 + $0x94] ss:$8 sps:$4 sm:$0xff]   ;;  %v1388_v38 = vld [vmem:[#allocation2 + $0x90] ss:$8 sps:$4 sm:$0xff]  }
  0x55   :  { %v1386_v37 = vld [vmem:[#allocation2 + $0x294] ss:$8 sps:$4 sm:$0xff]   ;;  %v1389_v39 = vld [vmem:[#allocation2 + $0x290] ss:$8 sps:$4 sm:$0xff]   ;;  %v1390_v40 = vld [vmem:[#allocation2 + $0xa4] ss:$8 sps:$4 sm:$0xff]  }
  0x56   :  { %907 = vmatpush1.bf16.msra.mxu1 %v1352_v14  ;;  %v1392_v41 = vld [vmem:[#allocation2 + $0x2a4] ss:$8 sps:$4 sm:$0xff]   ;;  %v1394_v42 = vld [vmem:[#allocation2 + $0xa0] ss:$8 sps:$4 sm:$0xff]   ;;  %v1396_v44 = vld [vmem:[#allocation2 + $0xb4] ss:$8 sps:$4 sm:$0xff]  }
  0x57   :  { %993 = vmatpush1.bf16.msra.mxu0 %v1353_v15  ;;  %908 = vmatprep.subr.bf16.mxu1 %v1354_v16  ;;  %v1395_v43 = vld [vmem:[#allocation2 + $0x2a0] ss:$8 sps:$4 sm:$0xff]   ;;  %v1398_v45 = vld [vmem:[#allocation2 + $0x2b4] ss:$8 sps:$4 sm:$0xff]   ;;  %v1400_v46 = vld [vmem:[#allocation2 + $0xb0] ss:$8 sps:$4 sm:$0xff]  }
  0x58   :  { %994 = vmatprep.subr.bf16.mxu0 %v1356_v17  ;;  %v1401_v47 = vld [vmem:[#allocation2 + $0x2b0] ss:$8 sps:$4 sm:$0xff]   ;;  %v1402_v50 = vld [vmem:[#allocation2 + $0xc4] ss:$8 sps:$4 sm:$0xff]   ;;  %v1406_v56 = vld [vmem:[#allocation2 + $0xc0] ss:$8 sps:$4 sm:$0xff]  }
  0x59   :  { %v72_v48 = vld [vmem:[%s1778_s0] sm:$0xff]  ;;  %v1404_v51 = vld [vmem:[#allocation2 + $0x2c4] ss:$8 sps:$4 sm:$0xff]   ;;  %v1407_v57 = vld [vmem:[#allocation2 + $0x2c0] ss:$8 sps:$4 sm:$0xff]  }
  0x5a   :  { %909 = vmatpush1.bf16.msra.mxu1 %v1358_v18  ;;  %v76_v49 = vld [vmem:[%s1778_s0 + $0x20] sm:$0xff]  ;;  %v74_v53 = vld [vmem:[%s1778_s0 + $0x10] sm:$0xff] }
  0x5b   :  { %995 = vmatpush1.bf16.msra.mxu0 %v1359_v19  ;;  %910 = vmatprep.subr.bf16.mxu1 %v1360_v20  ;;  %v1169_v52 = vcombine.high %v72_v48, %v76_v49  ;;  %v78_v54 = vld [vmem:[%s1778_s0 + $0x30] sm:$0xff]  ;;  %v1408_v58 = vld [vmem:[#allocation2 + $0xd4] ss:$8 sps:$4 sm:$0xff]   ;;  %v1412_v60 = vld [vmem:[#allocation2 + $0xd0] ss:$8 sps:$4 sm:$0xff]   ;;  %v1168_v8 = vcombine.low %v72_v48, %v76_v49 }
  0x5c   :  { %996 = vmatprep.subr.bf16.mxu0 %v1362_v21  ;;  %v1173_v55 = vcombine.high %v74_v53, %v78_v54  ;;  %v1410_v59 = vld [vmem:[#allocation2 + $0x2d4] ss:$8 sps:$4 sm:$0xff]   ;;  %v1413_v61 = vld [vmem:[#allocation2 + $0x2d0] ss:$8 sps:$4 sm:$0xff]   ;;  %v1414_v62 = vld [vmem:[#allocation2 + $0xe4] ss:$8 sps:$4 sm:$0xff]   ;;  %v1172_v10 = vcombine.low %v74_v53, %v78_v54 }
  0x5d   :  { %932 = vmatprep.mubr.bf16.mxu1 %v1169_v52  ;;  %v1416_v63 = vld [vmem:[#allocation2 + $0x2e4] ss:$8 sps:$4 sm:$0xff]   ;;  %v1418_v0 = vld [vmem:[#allocation2 + $0xe0] ss:$8 sps:$4 sm:$0xff]   ;;  %v1420_v2 = vld [vmem:[#allocation2 + $0xf4] ss:$8 sps:$4 sm:$0xff]  }
  0x5e   :  { %911 = vmatpush1.bf16.msra.mxu1 %v1364_v22  ;;  %1018 = vmatprep.mubr.bf16.mxu0 %v1173_v55  ;;  %v1419_v1 = vld [vmem:[#allocation2 + $0x2e0] ss:$8 sps:$4 sm:$0xff]   ;;  %v1422_v3 = vld [vmem:[#allocation2 + $0x2f4] ss:$8 sps:$4 sm:$0xff]   ;;  %v1424_v4 = vld [vmem:[#allocation2 + $0xf0] ss:$8 sps:$4 sm:$0xff]  }
  0x5f   :  { %997 = vmatpush1.bf16.msra.mxu0 %v1365_v23  ;;  %912 = vmatprep.subr.bf16.mxu1 %v1366_v24  ;;  %v1425_v5 = vld [vmem:[#allocation2 + $0x2f0] ss:$8 sps:$4 sm:$0xff]   ;;  %v1428_v6 = vld [vmem:[#allocation2 + $0x104] ss:$8 sps:$4 sm:$0xff]   ;;  %v1426_v9 = vld [vmem:[#allocation2 + $0x100] ss:$8 sps:$4 sm:$0xff]  }
  0x60   :  { %998 = vmatprep.subr.bf16.mxu0 %v1368_v25  ;;  %v1431_v7 = vld [vmem:[#allocation2 + $0x304] ss:$8 sps:$4 sm:$0xff]   ;;  %v1429_v11 = vld [vmem:[#allocation2 + $0x300] ss:$8 sps:$4 sm:$0xff]   ;;  %v1434_v12 = vld [vmem:[#allocation2 + $0x114] ss:$8 sps:$4 sm:$0xff]  }
  0x61   :  { %v1437_v13 = vld [vmem:[#allocation2 + $0x314] ss:$8 sps:$4 sm:$0xff]   ;;  %v1432_v14 = vld [vmem:[#allocation2 + $0x110] ss:$8 sps:$4 sm:$0xff]   ;;  %v1440_v16 = vld [vmem:[#allocation2 + $0x124] ss:$8 sps:$4 sm:$0xff]  }
  0x62   :  { %913 = vmatpush1.bf16.msra.mxu1 %v1370_v26  ;;  %v1435_v15 = vld [vmem:[#allocation2 + $0x310] ss:$8 sps:$4 sm:$0xff]   ;;  %v1443_v17 = vld [vmem:[#allocation2 + $0x324] ss:$8 sps:$4 sm:$0xff]   ;;  %v1438_v18 = vld [vmem:[#allocation2 + $0x120] ss:$8 sps:$4 sm:$0xff]  }
  0x63   :  { %999 = vmatpush1.bf16.msra.mxu0 %v1371_v27  ;;  %914 = vmatprep.subr.bf16.mxu1 %v1372_v28  ;;  %v1441_v19 = vld [vmem:[#allocation2 + $0x320] ss:$8 sps:$4 sm:$0xff]   ;;  %v1446_v20 = vld [vmem:[#allocation2 + $0x134] ss:$8 sps:$4 sm:$0xff]   ;;  %v1444_v22 = vld [vmem:[#allocation2 + $0x130] ss:$8 sps:$4 sm:$0xff]  }
  0x64   :  { %1000 = vmatprep.subr.bf16.mxu0 %v1374_v29  ;;  %v1449_v21 = vld [vmem:[#allocation2 + $0x334] ss:$8 sps:$4 sm:$0xff]   ;;  %v1447_v23 = vld [vmem:[#allocation2 + $0x330] ss:$8 sps:$4 sm:$0xff]   ;;  %v1452_v24 = vld [vmem:[#allocation2 + $0x144] ss:$8 sps:$4 sm:$0xff]  }
  0x65   :  { %v1455_v25 = vld [vmem:[#allocation2 + $0x344] ss:$8 sps:$4 sm:$0xff]   ;;  %v1450_v26 = vld [vmem:[#allocation2 + $0x140] ss:$8 sps:$4 sm:$0xff]   ;;  %v1458_v28 = vld [vmem:[#allocation2 + $0x154] ss:$8 sps:$4 sm:$0xff]  }
  0x66   :  { %915 = vmatpush1.bf16.msra.mxu1 %v1376_v30  ;;  %v1453_v27 = vld [vmem:[#allocation2 + $0x340] ss:$8 sps:$4 sm:$0xff]   ;;  %v1461_v29 = vld [vmem:[#allocation2 + $0x354] ss:$8 sps:$4 sm:$0xff]   ;;  %v1456_v30 = vld [vmem:[#allocation2 + $0x150] ss:$8 sps:$4 sm:$0xff]  }
  0x67   :  { %1001 = vmatpush1.bf16.msra.mxu0 %v1377_v31  ;;  %916 = vmatprep.subr.bf16.mxu1 %v1378_v32  ;;  %v1459_v31 = vld [vmem:[#allocation2 + $0x350] ss:$8 sps:$4 sm:$0xff]   ;;  %v1464_v32 = vld [vmem:[#allocation2 + $0x164] ss:$8 sps:$4 sm:$0xff]   ;;  %v1474_v48 = vld [vmem:[#allocation2 + $0x180] ss:$8 sps:$4 sm:$0xff]  }
  0x68   :  { %1002 = vmatprep.subr.bf16.mxu0 %v1380_v33  ;;  %v1467_v33 = vld [vmem:[#allocation2 + $0x364] ss:$8 sps:$4 sm:$0xff]   ;;  %v1477_v49 = vld [vmem:[#allocation2 + $0x380] ss:$8 sps:$4 sm:$0xff]   ;;  %v1480_v52 = vld [vmem:[#allocation2 + $0x190] ss:$8 sps:$4 sm:$0xff]  }
  0x69   :  { %v1483_v53 = vld [vmem:[#allocation2 + $0x390] ss:$8 sps:$4 sm:$0xff]   ;;  %v1488_v54 = vld [vmem:[#allocation2 + $0x1a4] ss:$8 sps:$4 sm:$0xff]  }
  0x6a   :  { %917 = vmatpush1.bf16.msra.mxu1 %v1382_v34  ;;  %v1731_v34 = vld [vmem:[%s1778_s0 + $0x8] sm:$0xff]  ;;  %v1491_v55 = vld [vmem:[#allocation2 + $0x3a4] ss:$8 sps:$4 sm:$0xff]  }
  0x6b   :  { %1003 = vmatpush1.bf16.msra.mxu0 %v1383_v35  ;;  %918 = vmatprep.subr.bf16.mxu1 %v1384_v36  ;;  %v1736_v35 = vld [vmem:[%s1778_s0 + $0x28] sm:$0xff]  ;;  %v1741_v36 = vld [vmem:[%s1778_s0 + $0x18] sm:$0xff] }
  0x6c   :  { %1004 = vmatprep.subr.bf16.mxu0 %v1386_v37  ;;  %v1746_v37 = vld [vmem:[%s1778_s0 + $0x38] sm:$0xff] }
  0x6e   :  { %919 = vmatpush1.bf16.msra.mxu1 %v1388_v38  ;;  %v1462_v38 = vld [vmem:[#allocation2 + $0x160] ss:$8 sps:$4 sm:$0xff]  }
  0x6f   :  { %1005 = vmatpush1.bf16.msra.mxu0 %v1389_v39  ;;  %920 = vmatprep.subr.bf16.mxu1 %v1390_v40  ;;  %v1465_v39 = vld [vmem:[#allocation2 + $0x360] ss:$8 sps:$4 sm:$0xff]   ;;  %v1171_v40 = vcombine.high %v1731_v34, %v1736_v35 }
  0x70   :  { %1006 = vmatprep.subr.bf16.mxu0 %v1392_v41  ;;  %v1470_v41 = vld [vmem:[#allocation2 + $0x174] ss:$8 sps:$4 sm:$0xff]  }
  0x72   :  { %921 = vmatpush1.bf16.msra.mxu1 %v1394_v42  ;;  %v1473_v42 = vld [vmem:[#allocation2 + $0x374] ss:$8 sps:$4 sm:$0xff]  }
  0x73   :  { %1007 = vmatpush1.bf16.msra.mxu0 %v1395_v43  ;;  %922 = vmatprep.subr.bf16.mxu1 %v1396_v44  ;;  %v1175_v43 = vcombine.high %v1741_v36, %v1746_v37  ;;  %v1468_v44 = vld [vmem:[#allocation2 + $0x170] ss:$8 sps:$4 sm:$0xff]  }
  0x74   :  { %1008 = vmatprep.subr.bf16.mxu0 %v1398_v45  ;;  %v1471_v45 = vld [vmem:[#allocation2 + $0x370] ss:$8 sps:$4 sm:$0xff]  }
  0x76   :  { %923 = vmatpush1.bf16.msra.mxu1 %v1400_v46  ;;  %v1476_v46 = vld [vmem:[#allocation2 + $0x184] ss:$8 sps:$4 sm:$0xff]  }
  0x77   :  { %1009 = vmatpush1.bf16.msra.mxu0 %v1401_v47  ;;  %924 = vmatprep.subr.bf16.mxu1 %v1402_v50  ;;  %v1479_v47 = vld [vmem:[#allocation2 + $0x384] ss:$8 sps:$4 sm:$0xff]   ;;  %v1482_v50 = vld [vmem:[#allocation2 + $0x194] ss:$8 sps:$4 sm:$0xff]  }
  0x78   :  { %1010 = vmatprep.subr.bf16.mxu0 %v1404_v51  ;;  %v1485_v51 = vld [vmem:[#allocation2 + $0x394] ss:$8 sps:$4 sm:$0xff]  }
  0x7a   :  { %925 = vmatpush1.bf16.msra.mxu1 %v1406_v56  ;;  %v1486_v56 = vld [vmem:[#allocation2 + $0x1a0] ss:$8 sps:$4 sm:$0xff]  }
  0x7b   :  { %1011 = vmatpush1.bf16.msra.mxu0 %v1407_v57  ;;  %926 = vmatprep.subr.bf16.mxu1 %v1408_v58  ;;  %v1489_v57 = vld [vmem:[#allocation2 + $0x3a0] ss:$8 sps:$4 sm:$0xff]   ;;  %v1494_v58 = vld [vmem:[#allocation2 + $0x1b4] ss:$8 sps:$4 sm:$0xff]  }
  0x7c   :  { %1012 = vmatprep.subr.bf16.mxu0 %v1410_v59  ;;  %v1497_v59 = vld [vmem:[#allocation2 + $0x3b4] ss:$8 sps:$4 sm:$0xff]  }
  0x7e   :  { %927 = vmatpush1.bf16.msra.mxu1 %v1412_v60  ;;  %v1492_v60 = vld [vmem:[#allocation2 + $0x1b0] ss:$8 sps:$4 sm:$0xff]  }
  0x7f   :  { %1013 = vmatpush1.bf16.msra.mxu0 %v1413_v61  ;;  %928 = vmatprep.subr.bf16.mxu1 %v1414_v62  ;;  %v1495_v61 = vld [vmem:[#allocation2 + $0x3b0] ss:$8 sps:$4 sm:$0xff]   ;;  %v1500_v62 = vld [vmem:[#allocation2 + $0x1c4] ss:$8 sps:$4 sm:$0xff]  }
  0x80   :  { %1014 = vmatprep.subr.bf16.mxu0 %v1416_v63  ;;  %v1503_v63 = vld [vmem:[#allocation2 + $0x3c4] ss:$8 sps:$4 sm:$0xff]  }
  0x82   :  { %929 = vmatpush1.bf16.msra.mxu1 %v1418_v0  ;;  %v1498_v0 = vld [vmem:[#allocation2 + $0x1c0] ss:$8 sps:$4 sm:$0xff]  }
  0x83   :  { %1015 = vmatpush1.bf16.msra.mxu0 %v1419_v1  ;;  %930 = vmatprep.subr.bf16.mxu1 %v1420_v2  ;;  %v1501_v1 = vld [vmem:[#allocation2 + $0x3c0] ss:$8 sps:$4 sm:$0xff]   ;;  %v1506_v2 = vld [vmem:[#allocation2 + $0x1d4] ss:$8 sps:$4 sm:$0xff]  }
  0x84   :  { %1016 = vmatprep.subr.bf16.mxu0 %v1422_v3  ;;  %v1509_v3 = vld [vmem:[#allocation2 + $0x3d4] ss:$8 sps:$4 sm:$0xff]  }
  0x86   :  { %931 = vmatpush1.bf16.msra.mxu1 %v1424_v4  ;;  %v1504_v4 = vld [vmem:[#allocation2 + $0x1d0] ss:$8 sps:$4 sm:$0xff]  }
  0x87   :  { %1017 = vmatpush1.bf16.msra.mxu0 %v1425_v5  ;;  %943 = vmatprep.subr.bf16.mxu1 %v1428_v6  ;;  %v1507_v5 = vld [vmem:[#allocation2 + $0x3d0] ss:$8 sps:$4 sm:$0xff]   ;;  %v1512_v6 = vld [vmem:[#allocation2 + $0x1e4] ss:$8 sps:$4 sm:$0xff]  }
  0x88   :  { %1029 = vmatprep.subr.bf16.mxu0 %v1431_v7  ;;  %v1515_v7 = vld [vmem:[#allocation2 + $0x3e4] ss:$8 sps:$4 sm:$0xff]  }
  0x89   :  { %933 = vmatmul.mubr.bf16.vlgmr.msra.gmra.mrb[0].mxu1 %v1168_v8  ;;  %v1510_v8 = vld [vmem:[#allocation2 + $0x1e0] ss:$8 sps:$4 sm:$0xff]  }
  0x8a   :  { %1019 = vmatmul.mubr.bf16.vlgmr.msra.gmra.mrb[0].mxu0 %v1172_v10  ;;  %944 = vmatpush1.bf16.msra.mxu1 %v1426_v9  ;;  %v1513_v9 = vld [vmem:[#allocation2 + $0x3e0] ss:$8 sps:$4 sm:$0xff]   ;;  %v1518_v10 = vld [vmem:[#allocation2 + $0x1f4] ss:$8 sps:$4 sm:$0xff]  }
  0x8b   :  { %1030 = vmatpush1.bf16.msra.mxu0 %v1429_v11  ;;  %945 = vmatprep.subr.bf16.mxu1 %v1434_v12  ;;  %v1521_v11 = vld [vmem:[#allocation2 + $0x3f4] ss:$8 sps:$4 sm:$0xff]   ;;  %v1516_v12 = vld [vmem:[#allocation2 + $0x1f0] ss:$8 sps:$4 sm:$0xff]  }
  0x8c   :  { %1031 = vmatprep.subr.bf16.mxu0 %v1437_v13  ;;  %975 = vmatprep.mubr.bf16.mxu1 %v1171_v40  ;;  %v1519_v13 = vld [vmem:[#allocation2 + $0x3f0] ss:$8 sps:$4 sm:$0xff]  }
  0x8d   :  { %1061 = vmatprep.mubr.bf16.mxu0 %v1175_v43 }
  0x8e   :  { %946 = vmatpush1.bf16.msra.mxu1 %v1432_v14  ;;  %v1170_v14 = vcombine.low %v1731_v34, %v1736_v35 }
  0x8f   :  { %1032 = vmatpush1.bf16.msra.mxu0 %v1435_v15  ;;  %947 = vmatprep.subr.bf16.mxu1 %v1440_v16  ;;  %v1174_v15 = vcombine.low %v1741_v36, %v1746_v37  ;;  %v210_v16 = vlaneseq }
  0x90   :  { %1033 = vmatprep.subr.bf16.mxu0 %v1443_v17 }
  0x91   :  { %v211_v17 = vshrl.u32 %v210_v16, 7 }
  0x92   :  { %948 = vmatpush1.bf16.msra.mxu1 %v1438_v18 }
  0x93   :  { %1034 = vmatpush1.bf16.msra.mxu0 %v1441_v19  ;;  %949 = vmatprep.subr.bf16.mxu1 %v1446_v20  ;;  %v1756_v18 = vsub.s32 0, %v211_v17  ;;  %v208_v19 = vld [vmem:[#allocation4] sm:$0x3]  ;;  %v1758_v20 = vsub.s32 1, %v211_v17 }
  0x94   :  { %1035 = vmatprep.subr.bf16.mxu0 %v1449_v21 }
  0x95   :  { %v213_v21 = vrot.slane %v208_v19, %v1756_v18 }
  0x96   :  { %950 = vmatpush1.bf16.msra.mxu1 %v1444_v22  ;;  %v217_v22 = vrot.slane %v208_v19, %v1758_v20 }
  0x97   :  { %1036 = vmatpush1.bf16.msra.mxu0 %v1447_v23  ;;  %951 = vmatprep.subr.bf16.mxu1 %v1452_v24  ;;  %v1072_v23 = vld [vmem:[%s1781_s3] sm:$0xff] }
  0x98   :  { %1037 = vmatprep.subr.bf16.mxu0 %v1455_v25  ;;  %v1075_v34 = vunpack.c.h.bf16 %v1072_v23 }
  0x9a   :  { %952 = vmatpush1.bf16.msra.mxu1 %v1450_v26 }
  0x9b   :  { %1038 = vmatpush1.bf16.msra.mxu0 %v1453_v27  ;;  %953 = vmatprep.subr.bf16.mxu1 %v1458_v28 }
  0x9c   :  { %1039 = vmatprep.subr.bf16.mxu0 %v1461_v29  ;;  %v1073_v29 = vld [vmem:[%s1781_s3 + $0x8] sm:$0xff] }
  0x9d   :  { %v1076_v40 = vunpack.c.l.bf16 %v1073_v29 }
  0x9e   :  { %954 = vmatpush1.bf16.msra.mxu1 %v1456_v30  ;;  %v1074_v30 = vunpack.c.l.bf16 %v1072_v23 }
  0x9f   :  { %1040 = vmatpush1.bf16.msra.mxu0 %v1459_v31  ;;  %955 = vmatprep.subr.bf16.mxu1 %v1464_v32 }
  0xa0   :  { %1041 = vmatprep.subr.bf16.mxu0 %v1467_v33 }
  0xa2   :  { %956 = vmatpush1.bf16.msra.mxu1 %v1462_v38 }
  0xa3   :  { %1042 = vmatpush1.bf16.msra.mxu0 %v1465_v39  ;;  %957 = vmatprep.subr.bf16.mxu1 %v1470_v41 }
  0xa4   :  { %1043 = vmatprep.subr.bf16.mxu0 %v1473_v42  ;;  %v1077_v42 = vunpack.c.h.bf16 %v1073_v29 }
  0xa6   :  { %958 = vmatpush1.bf16.msra.mxu1 %v1468_v44 }
  0xa7   :  { %1044 = vmatpush1.bf16.msra.mxu0 %v1471_v45  ;;  %959 = vmatprep.subr.bf16.mxu1 %v1476_v46 }
  0xa8   :  { %1045 = vmatprep.subr.bf16.mxu0 %v1479_v47 }
  0xaa   :  { %960 = vmatpush1.bf16.msra.mxu1 %v1474_v48 }
  0xab   :  { %1046 = vmatpush1.bf16.msra.mxu0 %v1477_v49  ;;  %961 = vmatprep.subr.bf16.mxu1 %v1482_v50 }
  0xac   :  { %1047 = vmatprep.subr.bf16.mxu0 %v1485_v51 }
  0xae   :  { %962 = vmatpush1.bf16.msra.mxu1 %v1480_v52 }
  0xaf   :  { %1048 = vmatpush1.bf16.msra.mxu0 %v1483_v53  ;;  %963 = vmatprep.subr.bf16.mxu1 %v1488_v54 }
  0xb0   :  { %1049 = vmatprep.subr.bf16.mxu0 %v1491_v55 }
  0xb2   :  { %964 = vmatpush1.bf16.msra.mxu1 %v1486_v56 }
  0xb3   :  { %1050 = vmatpush1.bf16.msra.mxu0 %v1489_v57  ;;  %965 = vmatprep.subr.bf16.mxu1 %v1494_v58 }
  0xb4   :  { %1051 = vmatprep.subr.bf16.mxu0 %v1497_v59 }
  0xb6   :  { %966 = vmatpush1.bf16.msra.mxu1 %v1492_v60 }
  0xb7   :  { %1052 = vmatpush1.bf16.msra.mxu0 %v1495_v61  ;;  %967 = vmatprep.subr.bf16.mxu1 %v1500_v62 }
  0xb8   :  { %1053 = vmatprep.subr.bf16.mxu0 %v1503_v63 }
  0xba   :  { %968 = vmatpush1.bf16.msra.mxu1 %v1498_v0 }
  0xbb   :  { %1054 = vmatpush1.bf16.msra.mxu0 %v1501_v1  ;;  %969 = vmatprep.subr.bf16.mxu1 %v1506_v2 }
  0xbc   :  { %1055 = vmatprep.subr.bf16.mxu0 %v1509_v3 }
  0xbe   :  { %970 = vmatpush1.bf16.msra.mxu1 %v1504_v4 }
  0xbf   :  { %1056 = vmatpush1.bf16.msra.mxu0 %v1507_v5  ;;  %971 = vmatprep.subr.bf16.mxu1 %v1512_v6 }
  0xc0   :  { %1057 = vmatprep.subr.bf16.mxu0 %v1515_v7  ;;  %v1115_v7 = vld [vmem:[#allocation6] sm:$0x3] }
  0xc2   :  { %972 = vmatpush1.bf16.msra.mxu1 %v1510_v8  ;;  %v1131_v8 = vld [vmem:[#allocation7] sm:$0x3] }
  0xc3   :  { %1058 = vmatpush1.bf16.msra.mxu0 %v1513_v9  ;;  %973 = vmatprep.subr.bf16.mxu1 %v1518_v10  ;;  %v1120_v9 = vrot.slane %v1115_v7, %v1756_v18  ;;  %v1124_v10 = vrot.slane %v1115_v7, %v1758_v20 }
  0xc4   :  { %1059 = vmatprep.subr.bf16.mxu0 %v1521_v11 }
  0xc6   :  { %974 = vmatpush1.bf16.msra.mxu1 %v1516_v12  ;;  %v1136_v12 = vrot.slane %v1131_v8, %v1756_v18 }
  0xc7   :  { %1060 = vmatpush1.bf16.msra.mxu0 %v1519_v13  ;;  %v1140_v13 = vrot.slane %v1131_v8, %v1758_v20 }
  0xc9   :  { %976 = vmatmul.mubr.bf16.vlgmr.msra.gmra.mrb[0].mxu1 %v1170_v14 }
  0xca   :  { %1062 = vmatmul.mubr.bf16.vlgmr.msra.gmra.mrb[0].mxu0 %v1174_v15 }
 0x19c   :  { %v977_v24 = vpop.f32.mrb[0].mxu1 }
 0x19d   :  { %v1063_v25 = vpop.f32.mrb[0].mxu0  ;;  %v1308_v26 = vadd.f32 %v977_v24, %v213_v21  ;;  %v979_v27 = vpop.f32.mrb[1].mxu1 }
 0x19e   :  { %v1065_v28 = vpop.f32.mrb[1].mxu0  ;;  %v1310_v31 = vadd.f32 %v979_v27, %v217_v22  ;;  %v981_v32 = vpop.f32.mrb[2].mxu1 }
 0x19f   :  { %v1067_v33 = vpop.f32.mrb[2].mxu0  ;;  %v1309_v35 = vadd.f32 %v1308_v26, %v1063_v25  ;;  %v1312_v36 = vadd.f32 %v981_v32, %v213_v21  ;;  %v983_v37 = vpop.f32.mrb[3].mxu1 }
 0x1a0   :  { %v1069_v38 = vpop.f32.mrb[3].mxu0  ;;  %v1311_v39 = vadd.f32 %v1310_v31, %v1065_v28  ;;  %v1314_v41 = vadd.f32 %v983_v37, %v217_v22 }
 0x1a1   :  { %v1313_v43 = vadd.f32 %v1312_v36, %v1067_v33  ;;  %v1078_v44 = vadd.f32 %v1309_v35, %v1074_v30 }
 0x1a2   :  { %v1315_v45 = vadd.f32 %v1314_v41, %v1069_v38  ;;  %v1079_v46 = vadd.f32 %v1311_v39, %v1075_v34 }
 0x1a3   :  { %v1080_v47 = vadd.f32 %v1313_v43, %v1076_v40 }
 0x1a4   :  { %v1081_v48 = vadd.f32 %v1315_v45, %v1077_v42  ;;  %v1082_v49 = vadd.f32 %v1079_v46, %v1078_v44 }
 0x1a6   :  { %1083 = vadd.xlane.f32.xlu0 %v1082_v49  ;;  %v1085_v50 = vadd.f32 %v1081_v48, %v1080_v47 }
 0x1aa   :  { %1086 = vadd.xlane.f32.xlu0 %v1085_v50 }
 0x233   :  { %v1084_v51 = vpop.xlane.xlu0 %1083 }
 0x234   :  { %v1089_v52 = vmul.f32 0.00390625, %v1084_v51 }
 0x236   :  { %v1091_v53 = vsub.f32 %v1078_v44, %v1089_v52  ;;  %v1092_v54 = vsub.f32 %v1079_v46, %v1089_v52 }
 0x237   :  { %v1087_v55 = vpop.xlane.xlu0 %1086 }
 0x238   :  { %v1090_v56 = vmul.f32 0.00390625, %v1087_v55  ;;  %v1095_v57 = vmul.f32 %v1091_v53, %v1091_v53  ;;  %v1096_v58 = vmul.f32 %v1092_v54, %v1092_v54 }
 0x23a   :  { %v1093_v59 = vsub.f32 %v1080_v47, %v1090_v56  ;;  %v1094_v60 = vsub.f32 %v1081_v48, %v1090_v56  ;;  %v1099_v61 = vadd.f32 %v1096_v58, %v1095_v57 }
 0x23c   :  { %1100 = vadd.xlane.f32.xlu1 %v1099_v61  ;;  %v1097_v62 = vmul.f32 %v1093_v59, %v1093_v59  ;;  %v1098_v63 = vmul.f32 %v1094_v60, %v1094_v60 }
 0x23e   :  { %v1102_v0 = vadd.f32 %v1098_v63, %v1097_v62 }
 0x240   :  { %1103 = vadd.xlane.f32.xlu1 %v1102_v0 }
 0x2c9   :  { %v1101_v1 = vpop.xlane.xlu1 %1100 }
 0x2ca   :  { %v1105_v2 = vmul.f32 0.00390625, %v1101_v1 }
 0x2cc   :  { %v1107_v3 = vadd.f32 1e-05, %v1105_v2 }
 0x2cd   :  { %v1104_v4 = vpop.xlane.xlu1 %1103 }
 0x2ce   :  { %1522 = vrsqrt.f32 %v1107_v3  ;;  %v1106_v5 = vmul.f32 0.00390625, %v1104_v4 }
 0x2d0   :  { %v1108_v6 = vadd.f32 1e-05, %v1106_v5 }
 0x2d2   :  { %1524 = vrsqrt.f32 %v1108_v6 }
 0x2d8   :  { %v1523_v11 = vpop.eup %1522 }
 0x2d9   :  { %v1111_v14 = vmul.f32 %v1523_v11, %v1091_v53  ;;  %v1112_v15 = vmul.f32 %v1523_v11, %v1092_v54 }
 0x2db   :  { %v1127_v16 = vmul.f32 %v1120_v9, %v1111_v14  ;;  %v1128_v17 = vmul.f32 %v1124_v10, %v1112_v15 }
 0x2dc   :  { %v1525_v19 = vpop.eup %1524 }
 0x2dd   :  { %v1143_v21 = vadd.f32 %v1136_v12, %v1127_v16  ;;  %v1144_v22 = vadd.f32 %v1140_v13, %v1128_v17  ;;  %v1113_v23 = vmul.f32 %v1525_v19, %v1093_v59  ;;  %v1114_v24 = vmul.f32 %v1525_v19, %v1094_v60 }
 0x2df   :  { %v1306_v25 = vpack.c.bf16 %v1144_v22, %v1143_v21  ;;  %v1129_v26 = vmul.f32 %v1120_v9, %v1113_v23  ;;  %v1130_v27 = vmul.f32 %v1124_v10, %v1114_v24 }
 0x2e1   :  { %1159 = vst [vmem:[%s1784_s6] sm:$0xff] %v1306_v25  ;;  %v1145_v28 = vadd.f32 %v1136_v12, %v1129_v26  ;;  %v1146_v18 = vadd.f32 %v1140_v13, %v1130_v27 }
 0x2e3   :  { %v1307_v29 = vpack.c.bf16 %v1146_v18, %v1145_v28 }
 0x2e5   :  { %1160 = vst [vmem:[%s1784_s6 + $0x8] sm:$0xff] %v1307_v29 }
 0x2e6   :  { %1165 = vsyncpa [#allocation3], 1 }
 0x2e7   :  { %1166 = vsyncpa [#allocation5], 1 }
 0x2e8   :  { %1167 = vsyncpa [#allocation8], 1 }

// kernel: _forward_jit.23
= control target key start
LH: loop header
LB: loop body
LE: loop exit
PB: predicated region body
PF: predicated region fallthrough
CT: control target
= control target key end

     0   :  { %16 = vsyncpa [#allocation3], 0  ;;  %v70_v9 = vlaneseq  ;;  %v885_v10 = vmov 1966171168   ;;  %s1176_s0 = inlined_call_operand.vmem [shape: bf16[2,256], index: 0, kind: input, shape index: {}]   ;;  %s1177_s1 = inlined_call_operand.vmem [shape: bf16[256,256], index: 1, kind: input, shape index: {}]   ;;  %s1178_s2 = inlined_call_operand.vmem [shape: f32[1,256], index: 2, kind: input, shape index: {}]   ;;  %s1179_s3 = inlined_call_operand.vmem [shape: f32[1,256], index: 3, kind: input, shape index: {}]   ;;  %s1180_s4 = inlined_call_operand.vmem [shape: f32[1,256], index: 4, kind: input, shape index: {}]   ;;  %s1181_s5 = inlined_call_operand.vmem [shape: bf16[256,2], index: 5, kind: input, shape index: {}]   ;;  %s1182_s6 = inlined_call_operand.vmem [shape: f32[1,2], index: 6, kind: input, shape index: {}]   ;;  %s1183_s7 = inlined_call_operand.vmem [shape: s32[2,1], index: 7, kind: input, shape index: {}]   ;;  %s1184_s8 = inlined_call_operand.hbm [shape: f32[2,2], index: 8, kind: output, shape index: {0}]   ;;  %s1185_s9 = inlined_call_operand.hbm [shape: f32[1,1], index: 9, kind: output, shape index: {1}]   ;;  %s1186_s10 = inlined_call_operand.hbm [shape: s32[1,1], index: 10, kind: output, shape index: {2}]  }
   0x1   :  { %v741_v0 = vld [vmem:[%s1177_s1 + $0x4] ss:$8 sps:$4 sm:$0xff]   ;;  %v743_v1 = vld [vmem:[%s1177_s1] ss:$8 sps:$4 sm:$0xff]   ;;  %v744_v2 = vld [vmem:[%s1177_s1 + $0x14] ss:$8 sps:$4 sm:$0xff]   ;;  %v90_v11 = vunpack.c.l.s4 %v885_v10 }
   0x2   :  { %265 = vmatprep.subr.bf16.mxu0 %v741_v0  ;;  %v746_v3 = vld [vmem:[%s1177_s1 + $0x10] ss:$8 sps:$4 sm:$0xff]   ;;  %v747_v4 = vld [vmem:[%s1177_s1 + $0x24] ss:$8 sps:$4 sm:$0xff]   ;;  %v749_v5 = vld [vmem:[%s1177_s1 + $0x20] ss:$8 sps:$4 sm:$0xff]  }
   0x3   :  { %266 = vmatpush1.bf16.msra.mxu0 %v743_v1  ;;  %v750_v6 = vld [vmem:[%s1177_s1 + $0x34] ss:$8 sps:$4 sm:$0xff]   ;;  %v752_v7 = vld [vmem:[%s1177_s1 + $0x30] ss:$8 sps:$4 sm:$0xff]   ;;  %v753_v8 = vld [vmem:[%s1177_s1 + $0x44] ss:$8 sps:$4 sm:$0xff]   ;;  %v91_v15 = vunpack.c.0.s8 %v90_v11 }
   0x4   :  { %267 = vmatprep.subr.bf16.mxu0 %v744_v2  ;;  %v755_v12 = vld [vmem:[%s1177_s1 + $0x40] ss:$8 sps:$4 sm:$0xff]   ;;  %v756_v13 = vld [vmem:[%s1177_s1 + $0x54] ss:$8 sps:$4 sm:$0xff]   ;;  %v71_v14 = vshrl.u32 %v70_v9, 7 }
   0x5   :  { %v758_v16 = vld [vmem:[%s1177_s1 + $0x50] ss:$8 sps:$4 sm:$0xff]   ;;  %v759_v17 = vld [vmem:[%s1177_s1 + $0x64] ss:$8 sps:$4 sm:$0xff]   ;;  %v761_v19 = vld [vmem:[%s1177_s1 + $0x60] ss:$8 sps:$4 sm:$0xff]  }
   0x6   :  { %v94_v18 = vsub.s32 %v91_v15, %v71_v14  ;;  %v660_v20 = vld.sshfl [vmem:[%s1176_s0] sm:$0x11 pattern:$0x75316420]  ;;  %v762_v21 = vld [vmem:[%s1177_s1 + $0x74] ss:$8 sps:$4 sm:$0xff]  }
   0x7   :  { %268 = vmatpush1.bf16.msra.mxu0 %v746_v3  ;;  %v88_v22 = vcombine.high %v660_v20, %v660_v20  ;;  %v764_v24 = vld [vmem:[%s1177_s1 + $0x70] ss:$8 sps:$4 sm:$0xff]   ;;  %v765_v25 = vld [vmem:[%s1177_s1 + $0x84] ss:$8 sps:$4 sm:$0xff]   ;;  %v767_v26 = vld [vmem:[%s1177_s1 + $0x80] ss:$8 sps:$4 sm:$0xff]  }
   0x8   :  { %269 = vmatprep.subr.bf16.mxu0 %v747_v4  ;;  %v768_v27 = vld [vmem:[%s1177_s1 + $0x94] ss:$8 sps:$4 sm:$0xff]  }
   0x9   :  { %v102_v23 = vrot.slane %v88_v22, %v94_v18 }
   0xb   :  { %270 = vmatpush1.bf16.msra.mxu0 %v749_v5  ;;  %297 = vmatprep.mubr.bf16.mxu0 %v102_v23 }
   0xc   :  { %271 = vmatprep.subr.bf16.mxu0 %v750_v6 }
   0xf   :  { %272 = vmatpush1.bf16.msra.mxu0 %v752_v7 }
  0x10   :  { %273 = vmatprep.subr.bf16.mxu0 %v753_v8 }
  0x13   :  { %274 = vmatpush1.bf16.msra.mxu0 %v755_v12 }
  0x14   :  { %275 = vmatprep.subr.bf16.mxu0 %v756_v13 }
  0x17   :  { %276 = vmatpush1.bf16.msra.mxu0 %v758_v16 }
  0x18   :  { %277 = vmatprep.subr.bf16.mxu0 %v759_v17 }
  0x1b   :  { %278 = vmatpush1.bf16.msra.mxu0 %v761_v19 }
  0x1c   :  { %279 = vmatprep.subr.bf16.mxu0 %v762_v21 }
  0x1f   :  { %280 = vmatpush1.bf16.msra.mxu0 %v764_v24 }
  0x20   :  { %281 = vmatprep.subr.bf16.mxu0 %v765_v25 }
  0x21   :  { %17 = vsyncpa [#allocation5], 0  ;;  %v770_v28 = vld [vmem:[%s1177_s1 + $0x90] ss:$8 sps:$4 sm:$0xff]   ;;  %v771_v29 = vld [vmem:[%s1177_s1 + $0xa4] ss:$8 sps:$4 sm:$0xff]   ;;  %v95_v41 = vrot.slane %v660_v20, %v94_v18 }
  0x22   :  { %v773_v30 = vld [vmem:[%s1177_s1 + $0xa0] ss:$8 sps:$4 sm:$0xff]   ;;  %v774_v31 = vld [vmem:[%s1177_s1 + $0xb4] ss:$8 sps:$4 sm:$0xff]   ;;  %v776_v32 = vld [vmem:[%s1177_s1 + $0xb0] ss:$8 sps:$4 sm:$0xff]  }
  0x23   :  { %282 = vmatpush1.bf16.msra.mxu0 %v767_v26  ;;  %v777_v33 = vld [vmem:[%s1177_s1 + $0xc4] ss:$8 sps:$4 sm:$0xff]   ;;  %v779_v34 = vld [vmem:[%s1177_s1 + $0xc0] ss:$8 sps:$4 sm:$0xff]   ;;  %v780_v35 = vld [vmem:[%s1177_s1 + $0xd4] ss:$8 sps:$4 sm:$0xff]  }
  0x24   :  { %283 = vmatprep.subr.bf16.mxu0 %v768_v27  ;;  %v782_v36 = vld [vmem:[%s1177_s1 + $0xd0] ss:$8 sps:$4 sm:$0xff]   ;;  %v783_v37 = vld [vmem:[%s1177_s1 + $0xe4] ss:$8 sps:$4 sm:$0xff]   ;;  %v785_v38 = vld [vmem:[%s1177_s1 + $0xe0] ss:$8 sps:$4 sm:$0xff]  }
  0x25   :  { %v786_v39 = vld [vmem:[%s1177_s1 + $0xf4] ss:$8 sps:$4 sm:$0xff]   ;;  %v788_v40 = vld [vmem:[%s1177_s1 + $0xf0] ss:$8 sps:$4 sm:$0xff]   ;;  %v1046_v42 = vsub.s32 0, %v71_v14  ;;  %v1051_v44 = vsub.s32 1, %v71_v14 }
  0x26   :  { %v68_v43 = vld [vmem:[%s1178_s2] sm:$0x3]  ;;  %vm324_vm0 = vcmask 1041408   ;;  %v791_v13 = vld [vmem:[%s1181_s5 + $0x48] sm:$0xff]   ;;  %v793_v24 = vld [vmem:[%s1181_s5 + $0x50] sm:$0xff]   ;;  %vm551_vm1 = vcmask 9216  }
  0x27   :  { %284 = vmatpush1.bf16.msra.mxu0 %v770_v28  ;;  %v73_v45 = vrot.slane %v68_v43, %v1046_v42  ;;  %v77_v46 = vrot.slane %v68_v43, %v1051_v44  ;;  %v789_v11 = vld [vmem:[%s1181_s5 + $0x40] sm:$0xff]   ;;  %v792_v14 = vld [vmem:[%s1181_s5 + $0x8] sm:$0xff]   ;;  %v794_v25 = vld [vmem:[%s1181_s5 + $0x10] sm:$0xff]  }
  0x28   :  { %285 = vmatprep.subr.bf16.mxu0 %v771_v29  ;;  %v790_v12 = vld [vmem:[%s1181_s5] sm:$0xff]   ;;  %711 = vmatprep.subr.bf16.mxu1 %v789_v11  ;;  %v795_v26 = vld [vmem:[%s1181_s5 + $0x58] sm:$0xff]  }
  0x29   :  { %712 = vmatpush3.bf16.msra.mxu1 %v790_v12  ;;  %v796_v27 = vld [vmem:[%s1181_s5 + $0x18] sm:$0xff]   ;;  %v797_v28 = vld [vmem:[%s1181_s5 + $0x60] sm:$0xff]  }
  0x2a   :  { %713 = vmatprep.subr.bf16.mxu1 %v791_v13  ;;  %v798_v29 = vld [vmem:[%s1181_s5 + $0x20] sm:$0xff]  }
  0x2b   :  { %286 = vmatpush1.bf16.msra.mxu0 %v773_v30  ;;  %v799_v30 = vld [vmem:[%s1181_s5 + $0x68] sm:$0xff]  }
  0x2c   :  { %287 = vmatprep.subr.bf16.mxu0 %v774_v31  ;;  %v800_v31 = vld [vmem:[%s1181_s5 + $0x28] sm:$0xff]  }
  0x2d   :  { %714 = vmatpush3.bf16.msra.mxu1 %v792_v14 }
  0x2e   :  { %715 = vmatprep.subr.bf16.mxu1 %v793_v24 }
  0x2f   :  { %288 = vmatpush1.bf16.msra.mxu0 %v776_v32  ;;  %v801_v32 = vld [vmem:[%s1181_s5 + $0x70] sm:$0xff]  }
  0x30   :  { %289 = vmatprep.subr.bf16.mxu0 %v777_v33  ;;  %v802_v33 = vld [vmem:[%s1181_s5 + $0x30] sm:$0xff]  }
  0x31   :  { %716 = vmatpush3.bf16.msra.mxu1 %v794_v25 }
  0x32   :  { %717 = vmatprep.subr.bf16.mxu1 %v795_v26 }
  0x33   :  { %290 = vmatpush1.bf16.msra.mxu0 %v779_v34  ;;  %v803_v34 = vld [vmem:[%s1181_s5 + $0x78] sm:$0xff]  }
  0x34   :  { %291 = vmatprep.subr.bf16.mxu0 %v780_v35  ;;  %v804_v35 = vld [vmem:[%s1181_s5 + $0x38] sm:$0xff]  }
  0x35   :  { %718 = vmatpush3.bf16.msra.mxu1 %v796_v27 }
  0x36   :  { %719 = vmatprep.subr.bf16.mxu1 %v797_v28 }
  0x37   :  { %292 = vmatpush1.bf16.msra.mxu0 %v782_v36 }
  0x38   :  { %293 = vmatprep.subr.bf16.mxu0 %v783_v37 }
  0x39   :  { %720 = vmatpush3.bf16.msra.mxu1 %v798_v29 }
  0x3a   :  { %721 = vmatprep.subr.bf16.mxu1 %v799_v30 }
  0x3b   :  { %294 = vmatpush1.bf16.msra.mxu0 %v785_v38 }
  0x3c   :  { %295 = vmatprep.subr.bf16.mxu0 %v786_v39  ;;  %v346_v39 = vld [vmem:[%s1179_s3] sm:$0x3] }
  0x3d   :  { %722 = vmatpush3.bf16.msra.mxu1 %v800_v31  ;;  %v355_v43 = vrot.slane %v346_v39, %v1051_v44 }
  0x3e   :  { %723 = vmatprep.subr.bf16.mxu1 %v801_v32 }
  0x3f   :  { %296 = vmatpush1.bf16.msra.mxu0 %v788_v40  ;;  %v360_v40 = vld [vmem:[%s1180_s4] sm:$0x3] }
  0x41   :  { %724 = vmatpush3.bf16.msra.mxu1 %v802_v33 }
  0x42   :  { %298 = vmatmul.mubr.bf16.vlgmr.msra.gmra.mrb[0].mxu0 %v95_v41  ;;  %725 = vmatprep.subr.bf16.mxu1 %v803_v34  ;;  %v351_v41 = vrot.slane %v346_v39, %v1046_v42 }
  0x45   :  { %726 = vmatpush3.bf16.msra.mxu1 %v804_v35 }
 0x115   :  { %v299_v47 = vpop.f32.mrb[0].mxu0 }
 0x116   :  { %v300_v48 = vadd.f32 %v299_v47, %v73_v45  ;;  %v301_v49 = vpop.f32.mrb[1].mxu0  ;;  %v365_v47 = vrot.slane %v360_v40, %v1046_v42 }
 0x117   :  { %v302_v50 = vadd.f32 %v301_v49, %v77_v46  ;;  %v303_v51 = vpop.f32.mrb[2].mxu0 }
 0x118   :  { %v308_v52 = vmul.f32 0.044715, %v300_v48  ;;  %v304_v53 = vpop.f32.mrb[3].mxu0  ;;  %v306_v1 = vmul.f32 0.5, %v300_v48 }
 0x119   :  { %v309_v54 = vmul.f32 0.044715, %v302_v50  ;;  %v307_v3 = vmul.f32 0.5, %v302_v50 }
 0x11a   :  { %v310_v55 = vmul.f32 %v308_v52, %v300_v48 }
 0x11b   :  { %v311_v56 = vmul.f32 %v309_v54, %v302_v50 }
 0x11c   :  { %v312_v57 = vmul.f32 %v310_v55, %v300_v48 }
 0x11d   :  { %v313_v58 = vmul.f32 %v311_v56, %v302_v50 }
 0x11e   :  { %v314_v59 = vadd.f32 %v312_v57, %v300_v48  ;;  %v369_v48 = vrot.slane %v360_v40, %v1051_v44  ;;  %v693_v57 = vld [vmem:[%s1182_s6] ss:$0 sm:$0xff] }
 0x11f   :  { %v315_v60 = vadd.f32 %v313_v58, %v302_v50 }
 0x120   :  { %v316_v61 = vmul.f32 0.7978846, %v314_v59 }
 0x121   :  { %v317_v62 = vmul.f32 0.7978846, %v315_v60 }
 0x122   :  { %805 = vtanh.f32 %v316_v61 }
 0x123   :  { %807 = vtanh.f32 %v317_v62  ;;  %v886_v62 = vmov 0  }
 0x124   :  { %739 = vset.pattern.permute.xlu1 %v886_v62  ;;  %740 = vset.pattern.permute.xlu0 %v886_v62 }
 0x12c   :  { %v806_v63 = vpop.eup %805 }
 0x12d   :  { %v808_v0 = vpop.eup %807  ;;  %v320_v2 = vadd.f32 1.0, %v806_v63  ;;  %v555_v63 = vand.u32 127, %v70_v9 }
 0x12e   :  { %v321_v4 = vadd.f32 1.0, %v808_v0 }
 0x12f   :  { %v322_v5 = vmul.f32 %v320_v2, %v306_v1 }
 0x130   :  { %v323_v6 = vmul.f32 %v321_v4, %v307_v3 }
 0x131   :  { %v325_v7 = vsel %vm324_vm0, %v322_v5, 0.0 }
 0x132   :  { %v326_v8 = vsel %vm324_vm0, %v323_v6, 0.0 }
 0x133   :  { %v327_v10 = vadd.f32 %v326_v8, %v325_v7 }
 0x135   :  { %328 = vadd.xlane.f32.xlu0 %v327_v10  ;;  %v553_v10 = vld [vmem:[%s1183_s7] sm:$0x3]  ;;  %s888_s7 = smov [#allocation2]  }
 0x136   :  { %s625_s29 = sshll.u32 %s888_s7, 4  ;;  %s626_s29 = int_to_ptr.vmem [resolvable:$true] %s625_s29 }
 0x137   :  { %s815_s30 = scalar_lea.vmem %s626_s29, 32  ;;  %p820_p1 = scmp.lt.s32.totalorder %s626_s29, %s626_s29 }
 0x138   :  { %p816_p0 = scmp.ne.s32.totalorder %s626_s29, %s815_s30  ;;  %p821_p2 = scmp.lt.s32.totalorder %s815_s30, %s815_s30 }
 0x13a   :  { %p822_p3 = por %p821_p2, %p820_p1 }
 0x13c   :  { %p823_p4 = pnand %p822_p3, %p816_p0 }
 0x1c2   :  { %v329_v15 = vpop.xlane.xlu0 %328 }
 0x1c3   :  { %v331_v16 = vmul.f32 0.00390625, %v329_v15 }
 0x1c5   :  { %v332_v17 = vsub.f32 %v322_v5, %v331_v16  ;;  %v333_v18 = vsub.f32 %v323_v6, %v331_v16 }
 0x1c7   :  { %v334_v19 = vmul.f32 %v332_v17, %v332_v17  ;;  %v335_v20 = vmul.f32 %v333_v18, %v333_v18 }
 0x1c9   :  { %v336_v21 = vsel %vm324_vm0, %v334_v19, 0.0  ;;  %v337_v22 = vsel %vm324_vm0, %v335_v20, 0.0  ;;  %v887_v19 = vmov 0.0  }
 0x1ca   :  { %v338_v23 = vadd.f32 %v337_v22, %v336_v21 }
 0x1cc   :  { %339 = vadd.xlane.f32.xlu0 %v338_v23 }
 0x259   :  { %v340_v36 = vpop.xlane.xlu0 %339 }
 0x25a   :  { %v341_v37 = vmul.f32 0.00390625, %v340_v36 }
 0x25c   :  { %v342_v38 = vadd.f32 1e-05, %v341_v37 }
 0x25e   :  { %809 = vrsqrt.f32 %v342_v38 }
 0x268   :  { %v810_v45 = vpop.eup %809 }
 0x269   :  { %v345_v46 = vmul.f32 %v810_v45, %v333_v18  ;;  %v344_v49 = vmul.f32 %v810_v45, %v332_v17 }
 0x26b   :  { %v359_v50 = vmul.f32 %v355_v43, %v345_v46  ;;  %v358_v51 = vmul.f32 %v351_v41, %v344_v49 }
 0x26d   :  { %v373_v52 = vadd.f32 %v369_v48, %v359_v50  ;;  %v372_v53 = vadd.f32 %v365_v47, %v358_v51 }
 0x26f   :  { %v375_v54 = vpack.c.bf16 %v373_v52, %v373_v52  ;;  %v374_v55 = vpack.c.bf16 %v372_v53, %v372_v53 }
 0x271   :  { %543 = vmatprep.mubr.bf16.mxu1 %v375_v54 }
 0x272   :  { %544 = vmatmul.mubr.bf16.vlgmr.msra.gmra.mrb[0].mxu1 %v374_v55 }
 0x345   :  { %v727_v56 = vpop.f32.mrb[0].mxu1 }
 0x346   :  { %v728_v58 = vpop.f32.mrb[1].mxu1 }
 0x347   :  { %v729_v59 = vadd.f32 %v728_v58, %v727_v56  ;;  %v730_v60 = vpop.f32.mrb[2].mxu1 }
 0x348   :  { %v731_v42 = vpop.f32.mrb[3].mxu1 }
 0x349   :  { %v546_v44 = vadd.f32 %v729_v59, %v693_v57 }
 0x34b   :  { %v562_v61 = vsel %vm551_vm1, %v546_v44, -inf  ;;  %552 = vst.msk [vmem:[#allocation2] sm:$0x3] %vm551_vm1, %v546_v44 }
 0x34c   :  { %563 = vmax.xlane.f32.xlu1 %v562_v61 }
 0x3d9   :  { %v564_v0 = vpop.xlane.xlu1 %563 }
 0x3da   :  { %v565_v1 = vsub.f32 %v546_v44, %v564_v0  ;;  %vm591_vm2 = vcmp.eq.f32.partialorder %v546_v44, %v564_v0 }
 0x3db   :  { %v592_v2 = vsel %vm591_vm2, %v555_v63, 2 }
 0x3dc   :  { %v566_v3 = vmul.f32 1.442695, %v565_v1  ;;  %v593_v4 = vsel %vm551_vm1, %v592_v2, 2147483647 }
 0x3dd   :  { %v595_v5 = vshra.s32 %v593_v4, 16  ;;  %v594_v9 = vand.u32 65535, %v593_v4 }
 0x3de   :  { %811 = vpow2.f32 %v566_v3 }
 0x3df   :  { %v597_v6 = vcvt.s32.f32 %v595_v5  ;;  %v596_v12 = vcvt.s32.f32 %v594_v9 }
 0x3e1   :  { %598 = vmin.xlane.f32.xlu0 %v597_v6 }
 0x3e8   :  { %v812_v7 = vpop.eup %811 }
 0x3e9   :  { %v568_v8 = vsel %vm551_vm1, %v812_v7, 0.0 }
 0x3ea   :  { %569 = vadd.xlane.f32.xlu1 %v568_v8 }
 0x3fb   :  { %557 = vperm.xlu1 %739, %v553_v10  }
 0x46e   :  { %v599_v11 = vpop.xlane.xlu0 %598 }
 0x46f   :  { %vm600_vm3 = vcmp.eq.f32.partialorder %v597_v6, %v599_v11 }
 0x470   :  { %v601_v13 = vsel %vm600_vm3, %v596_v12, inf }
 0x471   :  { %602 = vmin.xlane.f32.xlu0 %v601_v13 }
 0x477   :  { %v570_v14 = vpop.xlane.xlu1 %569 }
 0x478   :  { %813 = vlog2.f32 %v570_v14 }
 0x47b   :  { %v558_v15 = vpop.permute.xlu1 %557 }
 0x47c   :  { %vm559_vm4 = vcmp.eq.s32.totalorder %v555_v63, %v558_v15 }
 0x47d   :  { %v710_v20 = vsel %vm559_vm4, 1.0, %v887_v19 }
 0x482   :  { %v814_v16 = vpop.eup %813 }
 0x483   :  { %v572_v17 = vmul.f32 0.6931472, %v814_v16 }
 0x485   :  { %v573_v18 = vadd.f32 %v572_v17, %v564_v0 }
 0x487   :  { %v574_v21 = vsub.f32 %v546_v44, %v573_v18 }
 0x489   :  { %v575_v22 = vmul.f32 %v710_v20, %v574_v21 }
 0x48b   :  { %v576_v23 = vsel %vm551_vm1, %v575_v22, 0.0 }
 0x48c   :  { %577 = vadd.xlane.f32.xlu0 %v576_v23 }
 0x48d   :  { %826 = shalt.err (!%p823_p4)
}
 0x48e   :  { %s827_s13 = scalar_lea.hbm %s1184_s8, 32 }
 0x48f   :  { %p828_p5 = scmp.ne.s32.totalorder %s1184_s8, %s827_s13  ;;  %p831_p6 = scmp.lt.u32.totalorder %s827_s13, %s1184_s8 }
 0x491   :  { %p833_p7 = pnand %p831_p6, %p828_p5 }
 0x493   :  { %836 = shalt.err (!%p833_p7)
}
 0x494   :  { %628 = dma.vmem_to_hbm [thread:$0]  %s626_s29, 32, %s1184_s8, [#allocation3]   ;;  %v605_v24 = vcvt.f32.s32 %v599_v11  ;;  %vm610_vm5 = vcmask 1024   ;;  %vm589_vm7 = vcmask 0  }
 0x495   :  { %s889_s8 = smov [#allocation4]   ;;  %s890_s19 = smov [#allocation6]  }
 0x496   :  { %v606_v26 = vshll.u32 %v605_v24, 16  ;;  %s635_s2 = sshll.u32 %s889_s8, 4  ;;  %s645_s20 = sshll.u32 %s890_s19, 4  ;;  %s636_s2 = int_to_ptr.vmem [resolvable:$true] %s635_s2  ;;  %s1143_s20 = int_to_ptr.vmem [resolvable:$true] %s645_s20 }
 0x497   :  { %s837_s21 = scalar_lea.vmem %s636_s2, 16  ;;  %s841_s22 = scalar_lea.vmem %s636_s2, 32 }
 0x498   :  { %p838_p8 = scmp.ne.s32.totalorder %s636_s2, %s837_s21  ;;  %p842_p9 = scmp.lt.s32.totalorder %s636_s2, %s636_s2 }
 0x499   :  { %p843_p10 = scmp.lt.s32.totalorder %s841_s22, %s837_s21 }
 0x49b   :  { %p844_p11 = por %p843_p10, %p842_p9 }
 0x49d   :  { %p845_p12 = pnand %p844_p11, %p838_p8 }
 0x4fe   :  { %v603_v25 = vpop.xlane.xlu0 %602 }
 0x4ff   :  { %v604_v27 = vcvt.f32.s32 %v603_v25 }
 0x501   :  { %v607_v28 = vadd.s32 %v606_v26, %v604_v27 }
 0x503   :  { %vm608_vm6 = vcmp.eq.s32.totalorder %v607_v28, %v553_v10 }
 0x504   :  { %v609_v29 = vsel %vm608_vm6, 1, %v886_v62 }
 0x505   :  { %v611_v30 = vsel %vm610_vm5, %v609_v29, 0 }
 0x506   :  { %v612_v31 = vrot.slane %v611_v30, 4 }
 0x508   :  { %v613_v32 = vadd.s32 %v612_v31, %v611_v30 }
 0x50a   :  { %v614_v33 = vrot.slane %v613_v32, 2 }
 0x50c   :  { %v615_v34 = vadd.s32 %v614_v33, %v613_v32 }
 0x50e   :  { %v616_v35 = vrot.slane %v615_v34, 1 }
 0x510   :  { %v617_v36 = vadd.s32 %v616_v35, %v615_v34 }
 0x512   :  { %618 = vst.msk [vmem:[#allocation6] sm:$0x1] %vm589_vm7, %v617_v36 }
 0x519   :  { %v578_v37 = vpop.xlane.xlu0 %577 }
 0x51a   :  { %v579_v38 = vsub.f32 0.0, %v578_v37 }
 0x51c   :  { %v580_v39 = vsel %vm324_vm0, %v579_v38, 0.0 }
 0x51d   :  { %v581_v40 = vrot.slane %v580_v39, 4 }
 0x51f   :  { %v582_v41 = vadd.f32 %v581_v40, %v580_v39 }
 0x521   :  { %v583_v43 = vrot.slane %v582_v41, 2 }
 0x523   :  { %v584_v45 = vadd.f32 %v583_v43, %v582_v41 }
 0x525   :  { %v585_v46 = vrot.slane %v584_v45, 1 }
 0x527   :  { %v586_v47 = vadd.f32 %v585_v46, %v584_v45 }
 0x529   :  { %v588_v48 = vmul.f32 0.5, %v586_v47 }
 0x52b   :  { %590 = vst.msk [vmem:[#allocation4] sm:$0x1] %vm589_vm7, %v588_v48 }
 0x52c   :  { %848 = shalt.err (!%p845_p12)
}
 0x52d   :  { %s849_s25 = scalar_lea.hbm %s1185_s9, 16 }
 0x52e   :  { %p850_p13 = scmp.ne.s32.totalorder %s1185_s9, %s849_s25  ;;  %p853_p0 = scmp.lt.u32.totalorder %s849_s25, %s1185_s9 }
 0x530   :  { %p855_p1 = pnand %p853_p0, %p850_p13 }
 0x532   :  { %858 = shalt.err (!%p855_p1)
}
 0x533   :  { %638 = dma.vmem_to_hbm [thread:$0]  %s636_s2, 16, %s1185_s9, [#allocation5]  }
 0x534   :  { %s859_s5 = scalar_lea.vmem %s1143_s20, 16  ;;  %s863_s6 = scalar_lea.vmem %s1143_s20, 32 }
 0x535   :  { %p860_p2 = scmp.ne.s32.totalorder %s1143_s20, %s859_s5  ;;  %p864_p3 = scmp.lt.s32.totalorder %s1143_s20, %s1143_s20 }
 0x536   :  { %p865_p4 = scmp.lt.s32.totalorder %s863_s6, %s859_s5 }
 0x538   :  { %p866_p5 = por %p865_p4, %p864_p3 }
 0x53a   :  { %p867_p6 = pnand %p866_p5, %p860_p2 }
 0x53c   :  { %870 = shalt.err (!%p867_p6)
}
 0x53d   :  { %s871_s30 = scalar_lea.hbm %s1186_s10, 16 }
 0x53e   :  { %p872_p7 = scmp.ne.s32.totalorder %s1186_s10, %s871_s30  ;;  %p875_p8 = scmp.lt.u32.totalorder %s871_s30, %s1186_s10 }
 0x540   :  { %p877_p9 = pnand %p875_p8, %p872_p7 }
 0x542   :  { %880 = shalt.err (!%p877_p9)
}
 0x543   :  { %648 = dma.vmem_to_hbm [thread:$0]  %s1143_s20, 16, %s1186_s10, [#allocation5]  }
 0x544   :  { %881 = dma.done.wait [#allocation3], 32  }
 0x545   :  { %882 = vsyncadd [#allocation3], 4294967264 }
 0x546   :  { %883 = dma.done.wait [#allocation5], 32  }
 0x547   :  { %884 = vsyncadd [#allocation5], 4294967264 }
 0x548   :  { %658 = vsyncpa [#allocation3], 1 }
 0x549   :  { %659 = vsyncpa [#allocation5], 1 }

</bundles_post_ra>
